<compile_context>
chip_gen: v5e
topology: v5e:2x2
jax: 0.10.0
libtpu: 0.0.40
codegen_flags: <defaults>
</compile_context>

<pallas_src>
import jax
import jax.numpy as jnp
from jax.experimental import pallas as pl
from jax.experimental.pallas import tpu as pltpu


# NA_PRIMITIVES = ['gcn', 'sage'(mean), 'sage_sum', 'sage_max', 'gin']
_NUM_PRIMITIVES = 5


def _round_up(v, m):
    return ((v + m - 1) // m) * m


# ----------------------------------------------------------------------------
# Pallas kernel: fused  sum_k w_k * elu(agg_k @ W_k + b_k [+ x @ W_lin + b_lin])
# ----------------------------------------------------------------------------
def _make_na_mixed_kernel(with_linear):
    def kernel(w_ref, gcn_ref, sum_ref, max_ref, x_ref, invdeg_ref,
               wk_ref, bk_ref, *rest):
        # w_ref:      SMEM (K,) f32             architecture weights (prefetch)
        # gcn/sum/max/x_ref: VMEM (TILE, IN_P)  bf16 feature streams
        # invdeg_ref: VMEM (TILE, 1) f32        1 / max(in_degree, 1)
        # wk_ref:     VMEM (K, IN_P, OUT_P)     bf16 per-primitive projections
        # bk_ref:     VMEM (K, 1, OUT_P)  f32   b_k (+ b_lin folded in)
        # [wl_ref:    VMEM (IN_P, OUT_P)  bf16] shared linear (with_linear)
        # o_ref:      VMEM (TILE, OUT_P)
        if with_linear:
            wl_ref, o_ref = rest
        else:
            (o_ref,) = rest

        a_sum = sum_ref[...]                                   # bf16
        x_t = x_ref[...]                                       # bf16
        inv_deg = invdeg_ref[...].astype(a_sum.dtype)          # bf16 (TILE,1)

        # Reconstruct the two affine streams on the VPU (kernel is HBM-bound,
        # so this is free) instead of streaming them from HBM.
        a_mean = inv_deg * a_sum                               # sage (mean)
        a_gin = 1.1 * x_t + a_sum                              # gin, eps = 0.1

        if with_linear:
            lin = jnp.dot(x_t, wl_ref[...],
                          preferred_element_type=jnp.float32)  # f32 (TILE,OUT)
        else:
            lin = 0.0

        streams = (gcn_ref[...], a_mean, a_sum, max_ref[...], a_gin)
        acc = jnp.zeros(o_ref.shape, jnp.float32)
        for k, s in enumerate(streams):                        # static unroll
            h = jnp.dot(s, wk_ref[k], preferred_element_type=jnp.float32)
            z = h + lin + bk_ref[k]
            # ELU(alpha=1); clamp the exp argument so the discarded branch of
            # jnp.where cannot overflow.
            e = jnp.where(z > 0, z, jnp.exp(jnp.minimum(z, 0.0)) - 1.0)
            acc = acc + w_ref[k] * e
        o_ref[...] = acc.astype(o_ref.dtype)

    return kernel


# ----------------------------------------------------------------------------
# Sparse neighbor aggregation (plain JAX) producing padded, deduped streams.
# ----------------------------------------------------------------------------
# TODO(synk): data-dependent edge gather/scatter has no clean BlockSpec form;
#             it stays in JAX segment ops.
# TODO(synk): attention NA primitives (gat, gat_sym, gat_cos, ...) need a
#             per-edge softmax and are not implemented here.
# TODO(synk): GIN uses fixed eps=0.1 and a single linear (PyG GINConv defaults
#             eps=0, often learnable, with an MLP) — fidelity gap outside the
#             Pallas kernel.
def build_aggregation_streams(x, edge_index, padded_nodes, in_p):
    """Returns bf16 streams (agg_gcn, agg_sum, agg_max, x) of shape
    [padded_nodes, in_p] plus f32 inv_deg [padded_nodes, 1].  The padded rows /
    feature columns are zero, so they never touch the valid outputs."""
    N, IN = x.shape
    f32, bf = jnp.float32, jnp.bfloat16

    # Single small pad of x; all big streams are born already padded so they
    # are materialized exactly once in HBM before the kernel reads them.
    x_p = jnp.zeros((padded_nodes, in_p), f32).at[:N, :IN].set(x.astype(f32))

    src, dst = edge_index[0], edge_index[1]
    xs = x_p[src]
    ones = jnp.ones((src.shape[0],), f32)
    deg = jax.ops.segment_sum(ones, dst, num_segments=padded_nodes)

    agg_sum = jax.ops.segment_sum(xs, dst, num_segments=padded_nodes)
    agg_max = jax.ops.segment_max(xs, dst, num_segments=padded_nodes)
    agg_max = jnp.where(deg[:, None] > 0, agg_max, 0.0)

    # GCN sym-norm with self loops (matches PyG gcn_norm, in-degree based).
    dinv = jax.lax.rsqrt(deg + 1.0)
    coeff = dinv[src] * dinv[dst]
    agg_gcn = jax.ops.segment_sum(xs * coeff[:, None], dst,
                                  num_segments=padded_nodes)
    agg_gcn = agg_gcn + (dinv * dinv)[:, None] * x_p

    inv_deg = (1.0 / jnp.maximum(deg, 1.0))[:, None]           # mean = inv*sum

    return (agg_gcn.astype(bf), agg_sum.astype(bf), agg_max.astype(bf),
            x_p.astype(bf), inv_deg.astype(f32))


def _choose_tile_n(n, in_p, out_p, K, with_linear, requested,
                   vmem_budget=20 * 1024 * 1024):
    """Row tile: as large as possible (mem-bound roofline), but >= 2 grid steps
    so v7x megacore gets work, and within v7x's 32 MiB scoped VMEM default."""
    n8 = _round_up(n, 8)
    tile = min(_round_up(requested, 8), n8)
    if n8 >= 16:
        tile = min(tile, _round_up(pl.cdiv(n, 2), 8))
    tile = max(tile, 8)

    def vmem(t):
        streams = 4 * t * in_p * 2 + t * 4 + t * out_p * 4     # in/out blocks
        weights = (K * in_p * out_p * 2 + K * out_p * 4
                   + (in_p * out_p * 2 if with_linear else 0))
        temps = 2 * t * in_p * 2 + 4 * t * out_p * 4           # mean/gin/acc/..
        return 2 * streams + 2 * weights + temps               # double-buffered

    while tile > 256 and vmem(tile) > vmem_budget:
        tile = max(256, _round_up(tile // 2, 8))
    return tile


# ----------------------------------------------------------------------------
# Forward: NAMixedOp.forward(x, edge_index, weights)
# ----------------------------------------------------------------------------
def na_mixed_op(x, edge_index, weights, op_weights, op_biases,
                lin_weight=None, lin_bias=None, *, tile_n=1024):
    """x: [N, IN], edge_index: [2, E] (src, dst), weights: [K] arch weights,
    op_weights: [K, IN, OUT], op_biases: [K, OUT],
    lin_weight/lin_bias: [IN, OUT]/[OUT] or None.  Returns [N, OUT]."""
    N, IN = x.shape
    K, _, OUT = op_weights.shape
    assert K == _NUM_PRIMITIVES, "expects [gcn, sage, sage_sum, sage_max, gin]"
    with_linear = lin_weight is not None
    f32, bf = jnp.float32, jnp.bfloat16

    in_p, out_p = _round_up(IN, 128), _round_up(OUT, 128)       # lane-dense
    tile = _choose_tile_n(N, in_p, out_p, K, with_linear, tile_n)
    n_tiles = pl.cdiv(N, tile)
    n_p = n_tiles * tile

    gcn, asum, amax, x_bf, inv_deg = build_aggregation_streams(
        x, edge_index, n_p, in_p)

    # Parameter padding (bf16 for the MXU operands, f32 biases).
    # TODO(synk): hoist this out of the call when running inside a NAS loop.
    wk_p = jnp.zeros((K, in_p, out_p), bf).at[:, :IN, :OUT].set(
        op_weights.astype(bf))
    b_comb = op_biases.astype(f32)
    if with_linear:
        b_comb = b_comb + lin_bias.astype(f32)[None, :]         # fold b_lin
    bk_p = jnp.zeros((K, 1, out_p), f32).at[:, 0, :OUT].set(b_comb)

    stream_spec = pl.BlockSpec((tile, in_p), lambda i, w: (i, 0))
    inputs = [gcn, asum, amax, x_bf, inv_deg, wk_p, bk_p]
    in_specs = [
        stream_spec, stream_spec, stream_spec, stream_spec,
        pl.BlockSpec((tile, 1), lambda i, w: (i, 0)),
        # Constant index maps -> Pallas elides the re-DMA across grid steps.
        pl.BlockSpec((K, in_p, out_p), lambda i, w: (0, 0, 0)),
        pl.BlockSpec((K, 1, out_p), lambda i, w: (0, 0, 0)),
    ]
    if with_linear:
        wl_p = jnp.zeros((in_p, out_p), bf).at[:IN, :OUT].set(
            lin_weight.astype(bf))
        inputs.append(wl_p)
        in_specs.append(pl.BlockSpec((in_p, out_p), lambda i, w: (0, 0)))

    n_mm = K + int(with_linear)
    out_item = jnp.dtype(x.dtype).itemsize
    cost = pl.CostEstimate(
        flops=2 * n_p * in_p * out_p * n_mm + 8 * K * n_p * out_p,
        transcendentals=K * n_p * out_p,
        bytes_accessed=(2 * 4 * n_p * in_p            # 4 bf16 feature streams
                        + 4 * n_p                      # inv_deg f32
                        + 2 * n_mm * in_p * out_p      # bf16 weights
                        + 4 * K * out_p                # f32 biases
                        + out_item * n_p * out_p),     # output
    )

    out_padded = pl.pallas_call(
        _make_na_mixed_kernel(with_linear),
        out_shape=jax.ShapeDtypeStruct((n_p, out_p), x.dtype),
        grid_spec=pltpu.PrefetchScalarGridSpec(
            num_scalar_prefetch=1,
            grid=(n_tiles,),
            in_specs=in_specs,
            out_specs=pl.BlockSpec((tile, out_p), lambda i, w: (i, 0)),
        ),
        compiler_params=pltpu.CompilerParams(
            dimension_semantics=("parallel",),   # megacore sharding on v7x
        ),
        cost_estimate=cost,
    )(weights.astype(f32), *inputs)

    return out_padded[:N, :OUT]


# ----------------------------------------------------------------------------
# Pure-JAX reference mirroring the kernel's bf16-operand / f32-accumulate math.
# ----------------------------------------------------------------------------
def reference_na_mixed(x, edge_index, weights, op_w, op_b,
                       lin_w=None, lin_b=None):
    N = x.shape[0]
    f32, bf = jnp.float32, jnp.bfloat16
    src, dst = edge_index[0], edge_index[1]
    xs = x.astype(f32)[src]
    ones = jnp.ones((src.shape[0],), f32)
    deg = jax.ops.segment_sum(ones, dst, num_segments=N)
    agg_sum = jax.ops.segment_sum(xs, dst, num_segments=N)
    agg_max = jnp.where(deg[:, None] > 0,
                        jax.ops.segment_max(xs, dst, num_segments=N), 0.0)
    dinv = jax.lax.rsqrt(deg + 1.0)
    agg_gcn = (jax.ops.segment_sum(xs * (dinv[src] * dinv[dst])[:, None], dst,
                                   num_segments=N)
               + (dinv * dinv)[:, None] * x.astype(f32))
    inv_deg = (1.0 / jnp.maximum(deg, 1.0))[:, None]

    x_bf = x.astype(bf)
    a_sum = agg_sum.astype(bf)
    streams = [agg_gcn.astype(bf),
               inv_deg.astype(bf) * a_sum,
               a_sum,
               agg_max.astype(bf),
               1.1 * x_bf + a_sum]
    if lin_w is not None:
        lin = (jnp.dot(x_bf, lin_w.astype(bf), preferred_element_type=f32)
               + lin_b.astype(f32))
    else:
        lin = 0.0
    out = 0.0
    for k in range(_NUM_PRIMITIVES):
        h = jnp.dot(streams[k], op_w[k].astype(bf), preferred_element_type=f32)
        out = out + weights[k] * jax.nn.elu(h + op_b[k].astype(f32) + lin)
    return out


if __name__ == "__main__":
    key = jax.random.PRNGKey(0)
    kx, ke1, ke2, kw, kwk, kbk, kwl, kbl = jax.random.split(key, 8)

    # Small lane-dense demo: 512 nodes, 128 -> 128 features, 5 primitives,
    # 4096 random directed edges.  Grid = 2 row tiles of 256 (both v7x TCs).
    N, IN, OUT, E, K = 512, 128, 128, 4096, _NUM_PRIMITIVES
    x = jax.random.normal(kx, (N, IN), dtype=jnp.float32)
    src = jax.random.randint(ke1, (E,), 0, N)
    dst = jax.random.randint(ke2, (E,), 0, N)
    edge_index = jnp.stack([src, dst], axis=0)

    weights = jax.nn.softmax(jax.random.normal(kw, (K,), dtype=jnp.float32))
    op_w = jax.random.normal(kwk, (K, IN, OUT), jnp.float32) / jnp.sqrt(IN)
    op_b = 0.1 * jax.random.normal(kbk, (K, OUT), jnp.float32)
    lin_w = jax.random.normal(kwl, (IN, OUT), jnp.float32) / jnp.sqrt(IN)
    lin_b = 0.1 * jax.random.normal(kbl, (OUT,), jnp.float32)

    fwd = jax.jit(na_mixed_op)

    # with_linear = True
    out = jax.block_until_ready(
        fwd(x, edge_index, weights, op_w, op_b, lin_w, lin_b))
    ref = reference_na_mixed(x, edge_index, weights, op_w, op_b, lin_w, lin_b)
    assert out.shape == (N, OUT)
    assert jnp.allclose(out, ref, atol=5e-3, rtol=5e-3), \
        float(jnp.max(jnp.abs(out - ref)))

    # with_linear = False
    out2 = jax.block_until_ready(fwd(x, edge_index, weights, op_w, op_b))
    ref2 = reference_na_mixed(x, edge_index, weights, op_w, op_b)
    assert jnp.allclose(out2, ref2, atol=5e-3, rtol=5e-3), \
        float(jnp.max(jnp.abs(out2 - ref2)))

    print("KERNEL_OK")
</pallas_src>

<mosaic_0001>
module attributes {stable_mosaic.version = 11 : i64} {
  func.func @kernel(%arg0: i32, %arg1: memref<5xf32, #tpu.memory_space<smem>>, %arg2: memref<256x128xbf16, #tpu.memory_space<vmem>>, %arg3: memref<256x128xbf16, #tpu.memory_space<vmem>>, %arg4: memref<256x128xbf16, #tpu.memory_space<vmem>>, %arg5: memref<256x128xbf16, #tpu.memory_space<vmem>>, %arg6: memref<256x1xf32, #tpu.memory_space<vmem>>, %arg7: memref<5x128x128xbf16, #tpu.memory_space<vmem>>, %arg8: memref<5x1x128xf32, #tpu.memory_space<vmem>>, %arg9: memref<128x128xbf16, #tpu.memory_space<vmem>>, %arg10: memref<256x128xf32, #tpu.memory_space<vmem>>) attributes {dimension_semantics = [#tpu.dimension_semantics<parallel>], iteration_bounds = array<i64: 2>, scalar_prefetch = 1 : i64, scratch_operands = 0 : i64, tpu.core_type = #tpu.core_type<tc>, window_params = [{transform_indices = @transform_0, window_bounds = array<i64: 256, 128>}, {transform_indices = @transform_1, window_bounds = array<i64: 256, 128>}, {transform_indices = @transform_2, window_bounds = array<i64: 256, 128>}, {transform_indices = @transform_3, window_bounds = array<i64: 256, 128>}, {transform_indices = @transform_4, window_bounds = array<i64: 256, 1>}, {pipeline_mode = #tpu.pipeline_mode<synchronous>, transform_indices = @transform_5, window_bounds = array<i64: 5, 128, 128>}, {pipeline_mode = #tpu.pipeline_mode<synchronous>, transform_indices = @transform_6, window_bounds = array<i64: 5, 1, 128>}, {pipeline_mode = #tpu.pipeline_mode<synchronous>, transform_indices = @transform_7, window_bounds = array<i64: 128, 128>}, {transform_indices = @transform_8, window_bounds = array<i64: 256, 128>}]} {
    %c0 = arith.constant 0 : index
    %c0_0 = arith.constant 0 : index
    %0 = vector.load %arg3[%c0, %c0_0] : memref<256x128xbf16, #tpu.memory_space<vmem>>, vector<256x128xbf16>
    %c0_1 = arith.constant 0 : index
    %c0_2 = arith.constant 0 : index
    %1 = vector.load %arg5[%c0_1, %c0_2] : memref<256x128xbf16, #tpu.memory_space<vmem>>, vector<256x128xbf16>
    %c0_3 = arith.constant 0 : index
    %c0_4 = arith.constant 0 : index
    %2 = vector.load %arg6[%c0_3, %c0_4] : memref<256x1xf32, #tpu.memory_space<vmem>>, vector<256x1xf32>
    %3 = arith.truncf %2 : vector<256x1xf32> to vector<256x1xbf16>
    %4 = vector.broadcast %3 : vector<256x1xbf16> to vector<256x128xbf16>
    %5 = arith.mulf %4, %0 : vector<256x128xbf16>
    %cst = arith.constant 1.101560e+00 : bf16
    %6 = vector.broadcast %cst : bf16 to vector<256x128xbf16>
    %7 = arith.mulf %6, %1 : vector<256x128xbf16>
    %8 = arith.addf %7, %0 : vector<256x128xbf16>
    %c0_5 = arith.constant 0 : index
    %c0_6 = arith.constant 0 : index
    %9 = vector.load %arg9[%c0_5, %c0_6] : memref<128x128xbf16, #tpu.memory_space<vmem>>, vector<128x128xbf16>
    %cst_7 = arith.constant dense<0.000000e+00> : vector<256x128xf32>
    %10 = tpu.matmul %1, %9, %cst_7 {dimension_numbers = #tpu.dot_dimension_numbers<[1], [0], [0], [1], [0, 0, 1, 1], [], []>} : vector<256x128xbf16>, vector<128x128xbf16>, vector<256x128xf32> -> vector<256x128xf32>
    %c0_8 = arith.constant 0 : index
    %c0_9 = arith.constant 0 : index
    %11 = vector.load %arg2[%c0_8, %c0_9] : memref<256x128xbf16, #tpu.memory_space<vmem>>, vector<256x128xbf16>
    %c0_10 = arith.constant 0 : index
    %c0_11 = arith.constant 0 : index
    %12 = vector.load %arg4[%c0_10, %c0_11] : memref<256x128xbf16, #tpu.memory_space<vmem>>, vector<256x128xbf16>
    %cst_12 = arith.constant 0.000000e+00 : f32
    %13 = vector.broadcast %cst_12 : f32 to vector<256x128xf32>
    %c0_13 = arith.constant 0 : index
    %c0_14 = arith.constant 0 : index
    %c0_15 = arith.constant 0 : index
    %14 = vector.load %arg7[%c0_13, %c0_14, %c0_15] : memref<5x128x128xbf16, #tpu.memory_space<vmem>>, vector<1x128x128xbf16>
    %15 = vector.shape_cast %14 : vector<1x128x128xbf16> to vector<128x128xbf16>
    %cst_16 = arith.constant dense<0.000000e+00> : vector<256x128xf32>
    %16 = tpu.matmul %11, %15, %cst_16 {dimension_numbers = #tpu.dot_dimension_numbers<[1], [0], [0], [1], [0, 0, 1, 1], [], []>} : vector<256x128xbf16>, vector<128x128xbf16>, vector<256x128xf32> -> vector<256x128xf32>
    %17 = arith.addf %16, %10 : vector<256x128xf32>
    %c0_17 = arith.constant 0 : index
    %c0_18 = arith.constant 0 : index
    %c0_19 = arith.constant 0 : index
    %18 = vector.load %arg8[%c0_17, %c0_18, %c0_19] : memref<5x1x128xf32, #tpu.memory_space<vmem>>, vector<1x1x128xf32>
    %19 = vector.shape_cast %18 : vector<1x1x128xf32> to vector<1x128xf32>
    %20 = vector.broadcast %19 : vector<1x128xf32> to vector<256x128xf32>
    %21 = arith.addf %17, %20 : vector<256x128xf32>
    %cst_20 = arith.constant 0.000000e+00 : f32
    %22 = vector.broadcast %cst_20 : f32 to vector<256x128xf32>
    %23 = arith.cmpf ogt, %21, %22 : vector<256x128xf32>
    %cst_21 = arith.constant 0.000000e+00 : f32
    %24 = vector.broadcast %cst_21 : f32 to vector<256x128xf32>
    %25 = arith.minimumf %21, %24 : vector<256x128xf32>
    %26 = math.exp %25 : vector<256x128xf32>
    %cst_22 = arith.constant 1.000000e+00 : f32
    %27 = vector.broadcast %cst_22 : f32 to vector<256x128xf32>
    %28 = arith.subf %26, %27 : vector<256x128xf32>
    %29 = arith.select %23, %21, %28 : vector<256x128xi1>, vector<256x128xf32>
    %c0_23 = arith.constant 0 : index
    %30 = memref.load %arg1[%c0_23] : memref<5xf32, #tpu.memory_space<smem>>
    %31 = vector.broadcast %30 : f32 to vector<256x128xf32>
    %32 = arith.mulf %31, %29 : vector<256x128xf32>
    %33 = arith.addf %13, %32 : vector<256x128xf32>
    %c1 = arith.constant 1 : index
    %c0_24 = arith.constant 0 : index
    %c0_25 = arith.constant 0 : index
    %34 = vector.load %arg7[%c1, %c0_24, %c0_25] : memref<5x128x128xbf16, #tpu.memory_space<vmem>>, vector<1x128x128xbf16>
    %35 = vector.shape_cast %34 : vector<1x128x128xbf16> to vector<128x128xbf16>
    %cst_26 = arith.constant dense<0.000000e+00> : vector<256x128xf32>
    %36 = tpu.matmul %5, %35, %cst_26 {dimension_numbers = #tpu.dot_dimension_numbers<[1], [0], [0], [1], [0, 0, 1, 1], [], []>} : vector<256x128xbf16>, vector<128x128xbf16>, vector<256x128xf32> -> vector<256x128xf32>
    %37 = arith.addf %36, %10 : vector<256x128xf32>
    %c1_27 = arith.constant 1 : index
    %c0_28 = arith.constant 0 : index
    %c0_29 = arith.constant 0 : index
    %38 = vector.load %arg8[%c1_27, %c0_28, %c0_29] : memref<5x1x128xf32, #tpu.memory_space<vmem>>, vector<1x1x128xf32>
    %39 = vector.shape_cast %38 : vector<1x1x128xf32> to vector<1x128xf32>
    %40 = vector.broadcast %39 : vector<1x128xf32> to vector<256x128xf32>
    %41 = arith.addf %37, %40 : vector<256x128xf32>
    %cst_30 = arith.constant 0.000000e+00 : f32
    %42 = vector.broadcast %cst_30 : f32 to vector<256x128xf32>
    %43 = arith.cmpf ogt, %41, %42 : vector<256x128xf32>
    %cst_31 = arith.constant 0.000000e+00 : f32
    %44 = vector.broadcast %cst_31 : f32 to vector<256x128xf32>
    %45 = arith.minimumf %41, %44 : vector<256x128xf32>
    %46 = math.exp %45 : vector<256x128xf32>
    %cst_32 = arith.constant 1.000000e+00 : f32
    %47 = vector.broadcast %cst_32 : f32 to vector<256x128xf32>
    %48 = arith.subf %46, %47 : vector<256x128xf32>
    %49 = arith.select %43, %41, %48 : vector<256x128xi1>, vector<256x128xf32>
    %c1_33 = arith.constant 1 : index
    %50 = memref.load %arg1[%c1_33] : memref<5xf32, #tpu.memory_space<smem>>
    %51 = vector.broadcast %50 : f32 to vector<256x128xf32>
    %52 = arith.mulf %51, %49 : vector<256x128xf32>
    %53 = arith.addf %33, %52 : vector<256x128xf32>
    %c2 = arith.constant 2 : index
    %c0_34 = arith.constant 0 : index
    %c0_35 = arith.constant 0 : index
    %54 = vector.load %arg7[%c2, %c0_34, %c0_35] : memref<5x128x128xbf16, #tpu.memory_space<vmem>>, vector<1x128x128xbf16>
    %55 = vector.shape_cast %54 : vector<1x128x128xbf16> to vector<128x128xbf16>
    %cst_36 = arith.constant dense<0.000000e+00> : vector<256x128xf32>
    %56 = tpu.matmul %0, %55, %cst_36 {dimension_numbers = #tpu.dot_dimension_numbers<[1], [0], [0], [1], [0, 0, 1, 1], [], []>} : vector<256x128xbf16>, vector<128x128xbf16>, vector<256x128xf32> -> vector<256x128xf32>
    %57 = arith.addf %56, %10 : vector<256x128xf32>
    %c2_37 = arith.constant 2 : index
    %c0_38 = arith.constant 0 : index
    %c0_39 = arith.constant 0 : index
    %58 = vector.load %arg8[%c2_37, %c0_38, %c0_39] : memref<5x1x128xf32, #tpu.memory_space<vmem>>, vector<1x1x128xf32>
    %59 = vector.shape_cast %58 : vector<1x1x128xf32> to vector<1x128xf32>
    %60 = vector.broadcast %59 : vector<1x128xf32> to vector<256x128xf32>
    %61 = arith.addf %57, %60 : vector<256x128xf32>
    %cst_40 = arith.constant 0.000000e+00 : f32
    %62 = vector.broadcast %cst_40 : f32 to vector<256x128xf32>
    %63 = arith.cmpf ogt, %61, %62 : vector<256x128xf32>
    %cst_41 = arith.constant 0.000000e+00 : f32
    %64 = vector.broadcast %cst_41 : f32 to vector<256x128xf32>
    %65 = arith.minimumf %61, %64 : vector<256x128xf32>
    %66 = math.exp %65 : vector<256x128xf32>
    %cst_42 = arith.constant 1.000000e+00 : f32
    %67 = vector.broadcast %cst_42 : f32 to vector<256x128xf32>
    %68 = arith.subf %66, %67 : vector<256x128xf32>
    %69 = arith.select %63, %61, %68 : vector<256x128xi1>, vector<256x128xf32>
    %c2_43 = arith.constant 2 : index
    %70 = memref.load %arg1[%c2_43] : memref<5xf32, #tpu.memory_space<smem>>
    %71 = vector.broadcast %70 : f32 to vector<256x128xf32>
    %72 = arith.mulf %71, %69 : vector<256x128xf32>
    %73 = arith.addf %53, %72 : vector<256x128xf32>
    %c3 = arith.constant 3 : index
    %c0_44 = arith.constant 0 : index
    %c0_45 = arith.constant 0 : index
    %74 = vector.load %arg7[%c3, %c0_44, %c0_45] : memref<5x128x128xbf16, #tpu.memory_space<vmem>>, vector<1x128x128xbf16>
    %75 = vector.shape_cast %74 : vector<1x128x128xbf16> to vector<128x128xbf16>
    %cst_46 = arith.constant dense<0.000000e+00> : vector<256x128xf32>
    %76 = tpu.matmul %12, %75, %cst_46 {dimension_numbers = #tpu.dot_dimension_numbers<[1], [0], [0], [1], [0, 0, 1, 1], [], []>} : vector<256x128xbf16>, vector<128x128xbf16>, vector<256x128xf32> -> vector<256x128xf32>
    %77 = arith.addf %76, %10 : vector<256x128xf32>
    %c3_47 = arith.constant 3 : index
    %c0_48 = arith.constant 0 : index
    %c0_49 = arith.constant 0 : index
    %78 = vector.load %arg8[%c3_47, %c0_48, %c0_49] : memref<5x1x128xf32, #tpu.memory_space<vmem>>, vector<1x1x128xf32>
    %79 = vector.shape_cast %78 : vector<1x1x128xf32> to vector<1x128xf32>
    %80 = vector.broadcast %79 : vector<1x128xf32> to vector<256x128xf32>
    %81 = arith.addf %77, %80 : vector<256x128xf32>
    %cst_50 = arith.constant 0.000000e+00 : f32
    %82 = vector.broadcast %cst_50 : f32 to vector<256x128xf32>
    %83 = arith.cmpf ogt, %81, %82 : vector<256x128xf32>
    %cst_51 = arith.constant 0.000000e+00 : f32
    %84 = vector.broadcast %cst_51 : f32 to vector<256x128xf32>
    %85 = arith.minimumf %81, %84 : vector<256x128xf32>
    %86 = math.exp %85 : vector<256x128xf32>
    %cst_52 = arith.constant 1.000000e+00 : f32
    %87 = vector.broadcast %cst_52 : f32 to vector<256x128xf32>
    %88 = arith.subf %86, %87 : vector<256x128xf32>
    %89 = arith.select %83, %81, %88 : vector<256x128xi1>, vector<256x128xf32>
    %c3_53 = arith.constant 3 : index
    %90 = memref.load %arg1[%c3_53] : memref<5xf32, #tpu.memory_space<smem>>
    %91 = vector.broadcast %90 : f32 to vector<256x128xf32>
    %92 = arith.mulf %91, %89 : vector<256x128xf32>
    %93 = arith.addf %73, %92 : vector<256x128xf32>
    %c4 = arith.constant 4 : index
    %c0_54 = arith.constant 0 : index
    %c0_55 = arith.constant 0 : index
    %94 = vector.load %arg7[%c4, %c0_54, %c0_55] : memref<5x128x128xbf16, #tpu.memory_space<vmem>>, vector<1x128x128xbf16>
    %95 = vector.shape_cast %94 : vector<1x128x128xbf16> to vector<128x128xbf16>
    %cst_56 = arith.constant dense<0.000000e+00> : vector<256x128xf32>
    %96 = tpu.matmul %8, %95, %cst_56 {dimension_numbers = #tpu.dot_dimension_numbers<[1], [0], [0], [1], [0, 0, 1, 1], [], []>} : vector<256x128xbf16>, vector<128x128xbf16>, vector<256x128xf32> -> vector<256x128xf32>
    %97 = arith.addf %96, %10 : vector<256x128xf32>
    %c4_57 = arith.constant 4 : index
    %c0_58 = arith.constant 0 : index
    %c0_59 = arith.constant 0 : index
    %98 = vector.load %arg8[%c4_57, %c0_58, %c0_59] : memref<5x1x128xf32, #tpu.memory_space<vmem>>, vector<1x1x128xf32>
    %99 = vector.shape_cast %98 : vector<1x1x128xf32> to vector<1x128xf32>
    %100 = vector.broadcast %99 : vector<1x128xf32> to vector<256x128xf32>
    %101 = arith.addf %97, %100 : vector<256x128xf32>
    %cst_60 = arith.constant 0.000000e+00 : f32
    %102 = vector.broadcast %cst_60 : f32 to vector<256x128xf32>
    %103 = arith.cmpf ogt, %101, %102 : vector<256x128xf32>
    %cst_61 = arith.constant 0.000000e+00 : f32
    %104 = vector.broadcast %cst_61 : f32 to vector<256x128xf32>
    %105 = arith.minimumf %101, %104 : vector<256x128xf32>
    %106 = math.exp %105 : vector<256x128xf32>
    %cst_62 = arith.constant 1.000000e+00 : f32
    %107 = vector.broadcast %cst_62 : f32 to vector<256x128xf32>
    %108 = arith.subf %106, %107 : vector<256x128xf32>
    %109 = arith.select %103, %101, %108 : vector<256x128xi1>, vector<256x128xf32>
    %c4_63 = arith.constant 4 : index
    %110 = memref.load %arg1[%c4_63] : memref<5xf32, #tpu.memory_space<smem>>
    %111 = vector.broadcast %110 : f32 to vector<256x128xf32>
    %112 = arith.mulf %111, %109 : vector<256x128xf32>
    %113 = arith.addf %93, %112 : vector<256x128xf32>
    %c0_64 = arith.constant 0 : index
    %c0_65 = arith.constant 0 : index
    %114 = vector.load %arg10[%c0_64, %c0_65] : memref<256x128xf32, #tpu.memory_space<vmem>>, vector<256x128xf32>
    tpu.vector_store %arg10[%c0_64, %c0_65], %113 {strides = array<i32>} : memref<256x128xf32, #tpu.memory_space<vmem>>, vector<256x128xf32>,
    return
  }
  func.func @transform_0(%arg0: i32, %arg1: memref<5xf32, #tpu.memory_space<smem>>) -> (i32, i32) {
    %c0_i32 = arith.constant 0 : i32
    %c0_i32_0 = arith.constant 0 : i32
    return %arg0, %c0_i32 : i32, i32
  }
  func.func @transform_1(%arg0: i32, %arg1: memref<5xf32, #tpu.memory_space<smem>>) -> (i32, i32) {
    %c0_i32 = arith.constant 0 : i32
    %c0_i32_0 = arith.constant 0 : i32
    return %arg0, %c0_i32 : i32, i32
  }
  func.func @transform_2(%arg0: i32, %arg1: memref<5xf32, #tpu.memory_space<smem>>) -> (i32, i32) {
    %c0_i32 = arith.constant 0 : i32
    %c0_i32_0 = arith.constant 0 : i32
    return %arg0, %c0_i32 : i32, i32
  }
  func.func @transform_3(%arg0: i32, %arg1: memref<5xf32, #tpu.memory_space<smem>>) -> (i32, i32) {
    %c0_i32 = arith.constant 0 : i32
    %c0_i32_0 = arith.constant 0 : i32
    return %arg0, %c0_i32 : i32, i32
  }
  func.func @transform_4(%arg0: i32, %arg1: memref<5xf32, #tpu.memory_space<smem>>) -> (i32, i32) {
    %c0_i32 = arith.constant 0 : i32
    %c0_i32_0 = arith.constant 0 : i32
    return %arg0, %c0_i32 : i32, i32
  }
  func.func @transform_5(%arg0: i32, %arg1: memref<5xf32, #tpu.memory_space<smem>>) -> (i32, i32, i32) {
    %c0_i32 = arith.constant 0 : i32
    %c0_i32_0 = arith.constant 0 : i32
    %c0_i32_1 = arith.constant 0 : i32
    %c0_i32_2 = arith.constant 0 : i32
    return %c0_i32, %c0_i32_0, %c0_i32_1 : i32, i32, i32
  }
  func.func @transform_6(%arg0: i32, %arg1: memref<5xf32, #tpu.memory_space<smem>>) -> (i32, i32, i32) {
    %c0_i32 = arith.constant 0 : i32
    %c0_i32_0 = arith.constant 0 : i32
    %c0_i32_1 = arith.constant 0 : i32
    %c0_i32_2 = arith.constant 0 : i32
    return %c0_i32, %c0_i32_0, %c0_i32_1 : i32, i32, i32
  }
  func.func @transform_7(%arg0: i32, %arg1: memref<5xf32, #tpu.memory_space<smem>>) -> (i32, i32) {
    %c0_i32 = arith.constant 0 : i32
    %c0_i32_0 = arith.constant 0 : i32
    %c0_i32_1 = arith.constant 0 : i32
    return %c0_i32, %c0_i32_0 : i32, i32
  }
  func.func @transform_8(%arg0: i32, %arg1: memref<5xf32, #tpu.memory_space<smem>>) -> (i32, i32) {
    %c0_i32 = arith.constant 0 : i32
    %c0_i32_0 = arith.constant 0 : i32
    return %arg0, %c0_i32 : i32, i32
  }
}

</mosaic_0001>

<bundles_post_ra>
// kernel: mul.1
= control target key start
LH: loop header
LB: loop body
LE: loop exit
PB: predicated region body
PF: predicated region fallthrough
CT: control target
= control target key end

     0   :  { %s100_s0 = inlined_call_operand.vmem [shape: f32[4096], index: 0, kind: input, shape index: {}]   ;;  %s101_s1 = inlined_call_operand.vmem [shape: f32[4096], index: 1, kind: input, shape index: {}]   ;;  %s102_s2 = inlined_call_operand.vmem [shape: f32[4096], index: 2, kind: output, shape index: {}]  }
   0x1   :  { %v3_v0 = vld [vmem:[%s100_s0] sm:$0xff]  ;;  %v40_v2 = vld [vmem:[%s100_s0 + $0x8] sm:$0xff]  ;;  %v43_v5 = vld [vmem:[%s100_s0 + $0x10] sm:$0xff] }
   0x2   :  { %v4_v1 = vld [vmem:[%s101_s1] sm:$0xff]  ;;  %v41_v4 = vld [vmem:[%s101_s1 + $0x8] sm:$0xff]  ;;  %v44_v6 = vld [vmem:[%s101_s1 + $0x10] sm:$0xff] }
   0x3   :  { %v7_v3 = vmul.f32 %v4_v1, %v3_v0  ;;  %v16_v7 = vmul.f32 %v41_v4, %v40_v2  ;;  %v26_v8 = vmul.f32 %v44_v6, %v43_v5  ;;  %v46_v9 = vld [vmem:[%s100_s0 + $0x18] sm:$0xff] }
   0x4   :  { %v47_v10 = vld [vmem:[%s101_s1 + $0x18] sm:$0xff] }
   0x5   :  { %9 = vst [vmem:[%s102_s2] sm:$0xff] %v7_v3  ;;  %v36_v11 = vmul.f32 %v47_v10, %v46_v9 }
   0x6   :  { %42 = vst [vmem:[%s102_s2 + $0x8] sm:$0xff] %v16_v7 }
   0x7   :  { %45 = vst [vmem:[%s102_s2 + $0x10] sm:$0xff] %v26_v8 }
   0x8   :  { %48 = vst [vmem:[%s102_s2 + $0x18] sm:$0xff] %v36_v11 }

// kernel: na_mixed_op.1
= control target key start
LH: loop header
LB: loop body
LE: loop exit
PB: predicated region body
PF: predicated region fallthrough
CT: control target
= control target key end

     0   :  { %s5402_s12 = smov [#allocation3]   ;;  %s8146_s0 = inlined_call_operand.vmem [shape: f32[5], index: 0, kind: input, shape index: {}]   ;;  %s8147_s1 = inlined_call_operand.vmem [shape: bf16[512,128], index: 1, kind: input, shape index: {}]   ;;  %s8148_s2 = inlined_call_operand.vmem [shape: bf16[512,128], index: 2, kind: input, shape index: {}]   ;;  %s8149_s3 = inlined_call_operand.vmem [shape: bf16[512,128], index: 3, kind: input, shape index: {}]   ;;  %s8150_s4 = inlined_call_operand.vmem [shape: bf16[512,128], index: 4, kind: input, shape index: {}]   ;;  %s8151_s5 = inlined_call_operand.vmem [shape: f32[512,1], index: 5, kind: input, shape index: {}]   ;;  %s8152_s6 = inlined_call_operand.vmem [shape: bf16[5,128,128], index: 6, kind: input, shape index: {}]   ;;  %s8153_s7 = inlined_call_operand.vmem [shape: f32[5,1,128], index: 7, kind: input, shape index: {}]   ;;  %s8154_s8 = inlined_call_operand.vmem [shape: bf16[128,128], index: 8, kind: input, shape index: {}]   ;;  %s8155_s9 = inlined_call_operand.hbm [shape: f32[512,128], index: 9, kind: output, shape index: {}]  }
   0x1   :  { %s15_s11 = sshll.u32 %s8146_s0, 4  ;;  %s16_s11 = int_to_ptr.vmem [resolvable:$true] %s15_s11 }
   0x2   :  { %18 = dma.vmem_to_smem %s16_s11, 16, %s5402_s12, [#allocation2] }
   0x3   :  { %5380 = dma.done.wait [#allocation2], 16 }
   0x4   :  { %5381 = vsyncadd [#allocation2], 4294967280 }
   0x5   :  { %21 = sfence }
   0x6   :  { %22 = vsyncpa [#allocation5], 0 }
   0x7   :  { %24 = vsyncpa [#allocation5 + $0x1], 0  ;;  %s5460_s13 = smov 0   ;;  %s5462_s14 = smov 0  }
   0x8   :  { %s5464_s15 = smov 0   ;;  %s5466_s16 = smov 0  }
   0x9 LB: > { %s5481_s0 = sadd.s32 4294967295, %s5400_s16   ;;  %s4110_s17 = sadd.s32 4294967294, %s5400_s16   ;;  %s5400_s16 = sphi %s5466_s16, %s8482_s16   ;;  %s5396_s15 = sphi %s5464_s15, %s8481_s15   ;;  %s5392_s14 = sphi %s5462_s14, %s8480_s14   ;;  %s5388_s13 = sphi %s5460_s13, %s8479_s13  }
   0xa   : > { %s5485_s18 = sadd.s32 1, %s5400_s16   ;;  %s230_s19 = sadd.s32 1, %s5396_s15 }
   0xb   : > { %s227_s20 = ssub.s32 %s5400_s16, %s5485_s18  ;;  %p240_p0 = scmp.ne.s32.totalorder %s5396_s15, %s5392_s14 }
   0xc   : > { %p228_p1 = scmp.eq.s32.totalorder %s227_s20, 0  ;;  %p241_p2 = scmp.eq.s32.totalorder %s5481_s0, 1 }
   0xd   : > { %p246_p3 = scmp.ne.s32.totalorder %s5392_s14, %s5388_s13  ;;  %p247_p4 = scmp.eq.s32.totalorder %s4110_s17, 1 }
   0xe   : > { %s5496_s21 = scalar_select %p228_p1, %s5396_s15, %s230_s19  }
   0xf   : > { %p5498_p5 = por %p241_p2, %p240_p0  ;;  %p5502_p6 = por %p247_p4, %p246_p3 }
  0x10   : > { %p4113_p7 = scmp.ge.s32.totalorder %s5400_s16, 1  ;;  %p319_p8 = scmp.lt.s32.totalorder %s5400_s16, 3 }
  0x12   : > { %p320_p9 = pnand %p4113_p7, %p319_p8 }
  0x14   : > { %323 = sbr.rel (%p320_p9) target bundleno = 680 (0x2a8), region = 52 }
  0x19   : > { %v4849_v0 = vld [vmem:[%s8154_s8 + $0x38] sm:$0xff]  ;;  %s4115_s28 = sshll.u32 %s5481_s0, 5  ;;  %v5403_v2 = vmov 0   ;;  %v4848_v3 = vld [vmem:[%s8154_s8 + $0x30] sm:$0xff]  ;;  %v4847_v5 = vld [vmem:[%s8154_s8 + $0x28] sm:$0xff]  ;;  %s5891_s26 = sld [smem:[#allocation3]] }
  0x1a   : > { %v4889_v1 = vld [vmem:[%s8152_s6 + $0x38] sm:$0xff]  ;;  %4984 = vset.pattern.permute.xlu1 %v5403_v2  ;;  %4983 = vset.pattern.permute.xlu0 %v5403_v2  ;;  %p374_p10 = scmp.lt.s32.totalorder %s4115_s28, 63  ;;  %v4888_v4 = vld [vmem:[%s8152_s6 + $0x30] sm:$0xff]  ;;  %v4887_v11 = vld [vmem:[%s8152_s6 + $0x28] sm:$0xff]  ;;  %s6559_s30 = sld [smem:[#allocation3 + $0x3]] }
  0x1b   : > { %1268 = vmatpush.bf16.msra.mxu0 %v4849_v0  ;;  %4923 = vmatpush.bf16.msra.mxu2 %v4849_v0  ;;  %v4846_v13 = vld [vmem:[%s8154_s8 + $0x20] sm:$0xff]  ;;  %v4845_v20 = vld [vmem:[%s8154_s8 + $0x18] sm:$0xff]  ;;  %v4844_v23 = vld [vmem:[%s8154_s8 + $0x10] sm:$0xff]  ;;  %s6583_s10 = sld [smem:[#allocation3 + $0x1]]  ;;  %s5356_s24 = scalar_lea.hbm %s8155_s9, 512 }
  0x1c   : > { %1581 = vmatpush.bf16.msra.mxu1 %v4889_v1  ;;  %4931 = vmatpush.bf16.msra.mxu3 %v4889_v1  ;;  %s8484_s28 = smov (!%p374_p10, %s4115_s28), 63  ;;  %v4886_v16 = vld [vmem:[%s8152_s6 + $0x20] sm:$0xff]  ;;  %v4885_v21 = vld [vmem:[%s8152_s6 + $0x18] sm:$0xff]  ;;  %v4884_v26 = vld [vmem:[%s8152_s6 + $0x10] sm:$0xff] }
  0x1d   : > { %4985 = vset.pattern.permute.xlu2 %v5403_v2  ;;  %s4124_s12 = sshll.u32 %s8484_s28, 3  ;;  %v4843_v30 = vld [vmem:[%s8154_s8 + $0x8] sm:$0xff]  ;;  %s5569_s17 = sshll.u32 %s8484_s28, 2  ;;  %v4842_v33 = vld [vmem:[%s8154_s8] sm:$0xff]  ;;  %v4897_v37 = vld [vmem:[%s8152_s6 + $0x78] sm:$0xff] }
  0x1e   : > { %s5530_s25 = scalar_lea.vmem %s8151_s5, %s4124_s12  ;;  %v4883_v31 = vld [vmem:[%s8152_s6 + $0x8] sm:$0xff]  ;;  %s5580_s27 = scalar_lea.vmem %s8150_s4, %s5569_s17  ;;  %v4882_v36 = vld [vmem:[%s8152_s6] sm:$0xff]  ;;  %v4905_v38 = vld [vmem:[%s8152_s6 + $0xb8] sm:$0xff] }
  0x1f   : > { %1269 = vmatpush.bf16.msra.mxu0 %v4848_v3  ;;  %4924 = vmatpush.bf16.msra.mxu2 %v4848_v3  ;;  %v470_v6 = vld [vmem:[%s5530_s25 + $0x10] sm:$0xff]  ;;  %v468_v7 = vld [vmem:[%s5530_s25] sm:$0xff]  ;;  %v471_v14 = vld [vmem:[%s5530_s25 + $0x18] sm:$0xff]  ;;  %s5592_s19 = scalar_lea.vmem %s8147_s1, %s5569_s17  ;;  %s5757_s11 = scalar_lea.vmem %s8148_s2, %s5569_s17 }
  0x20   : > { %1582 = vmatpush.bf16.msra.mxu1 %v4888_v4  ;;  %4932 = vmatpush.bf16.msra.mxu3 %v4888_v4  ;;  %v472_v8 = vld [vmem:[%s5530_s25 + $0x20] sm:$0xff]  ;;  %v502_v9 = vpack.c.bf16 %v470_v6, %v470_v6  ;;  %v500_v10 = vpack.c.bf16 %v468_v7, %v468_v7  ;;  %v469_v15 = vld [vmem:[%s5530_s25 + $0x8] sm:$0xff]  ;;  %v503_v17 = vpack.c.bf16 %v471_v14, %v471_v14  ;;  %v475_v24 = vld [vmem:[%s5530_s25 + $0x38] sm:$0xff]  ;;  %s5773_s20 = scalar_lea.vmem %s8149_s3, %s5569_s17 }
  0x21   : > { %v504_v12 = vpack.c.bf16 %v472_v8, %v472_v8  ;;  %v501_v18 = vpack.c.bf16 %v469_v15, %v469_v15  ;;  %v473_v19 = vld [vmem:[%s5530_s25 + $0x28] sm:$0xff]  ;;  %v474_v25 = vld [vmem:[%s5530_s25 + $0x30] sm:$0xff]  ;;  %v507_v27 = vpack.c.bf16 %v475_v24, %v475_v24  ;;  %v476_v29 = vld [vmem:[%s5530_s25 + $0x40] sm:$0xff] }
  0x22   : > { %552 = vperm.xlu1 %4984, %v502_v9   ;;  %534 = vperm.xlu0 %4983, %v500_v10   ;;  %v505_v22 = vpack.c.bf16 %v473_v19, %v473_v19  ;;  %v506_v28 = vpack.c.bf16 %v474_v25, %v474_v25  ;;  %v508_v32 = vpack.c.bf16 %v476_v29, %v476_v29  ;;  %v478_v34 = vld [vmem:[%s5530_s25 + $0x50] sm:$0xff]  ;;  %v477_v35 = vld [vmem:[%s5530_s25 + $0x48] sm:$0xff]  ;;  %v479_v41 = vld [vmem:[%s5530_s25 + $0x58] sm:$0xff] }
  0x23   : > { %1270 = vmatpush.bf16.msra.mxu0 %v4847_v5  ;;  %4925 = vmatpush.bf16.msra.mxu2 %v4847_v5  ;;  %v510_v39 = vpack.c.bf16 %v478_v34, %v478_v34  ;;  %v509_v40 = vpack.c.bf16 %v477_v35, %v477_v35  ;;  %v4826_v42 = vld [vmem:[%s5580_s27] sm:$0xff]  ;;  %v511_v46 = vpack.c.bf16 %v479_v41, %v479_v41  ;;  %v4913_v47 = vld [vmem:[%s8152_s6 + $0xf8] sm:$0xff]  ;;  %v4896_v49 = vld [vmem:[%s8152_s6 + $0x70] sm:$0xff] }
  0x24   : > { %1583 = vmatpush.bf16.msra.mxu1 %v4887_v11  ;;  %4933 = vmatpush.bf16.msra.mxu3 %v4887_v11  ;;  %v4834_v43 = vld [vmem:[%s5580_s27 + $0x40] sm:$0xff]  ;;  %v4921_v48 = vld [vmem:[%s8152_s6 + $0x138] sm:$0xff]  ;;  %v481_v50 = vld [vmem:[%s5530_s25 + $0x68] sm:$0xff] }
  0x25   : > { %570 = vperm.xlu2 %4985, %v504_v12   ;;  %v4850_v44 = vld [vmem:[%s5592_s19] sm:$0xff]  ;;  %v4904_v52 = vld [vmem:[%s8152_s6 + $0xb0] sm:$0xff]  ;;  %v513_v54 = vpack.c.bf16 %v481_v50, %v481_v50  ;;  %v4895_v58 = vld [vmem:[%s8152_s6 + $0x68] sm:$0xff] }
  0x26   : > { %v4858_v45 = vld [vmem:[%s5592_s19 + $0x40] sm:$0xff]  ;;  %v4912_v53 = vld [vmem:[%s8152_s6 + $0xf0] sm:$0xff]  ;;  %v4903_v59 = vld [vmem:[%s8152_s6 + $0xa8] sm:$0xff] }
  0x27   : > { %1271 = vmatpush.bf16.msra.mxu0 %v4846_v13  ;;  %4926 = vmatpush.bf16.msra.mxu2 %v4846_v13  ;;  %v480_v51 = vld [vmem:[%s5530_s25 + $0x60] sm:$0xff]  ;;  %v482_v56 = vld [vmem:[%s5530_s25 + $0x70] sm:$0xff]  ;;  %v4911_v61 = vld [vmem:[%s8152_s6 + $0xe8] sm:$0xff] }
  0x28   : > { %1584 = vmatpush.bf16.msra.mxu1 %v4886_v16  ;;  %4934 = vmatpush.bf16.msra.mxu3 %v4886_v16  ;;  %v512_v55 = vpack.c.bf16 %v480_v51, %v480_v51  ;;  %v4920_v57 = vld [vmem:[%s8152_s6 + $0x130] sm:$0xff]  ;;  %v514_v60 = vpack.c.bf16 %v482_v56, %v482_v56  ;;  %v484_v62 = vld [vmem:[%s5530_s25 + $0x80] sm:$0xff]  ;;  %v483_v63 = vld [vmem:[%s5530_s25 + $0x78] sm:$0xff] }
  0x29   : > { %v4919_v0 = vld [vmem:[%s8152_s6 + $0x128] sm:$0xff]  ;;  %v4894_v1 = vld [vmem:[%s8152_s6 + $0x60] sm:$0xff]  ;;  %v516_v2 = vpack.c.bf16 %v484_v62, %v484_v62  ;;  %v515_v3 = vpack.c.bf16 %v483_v63, %v483_v63  ;;  %v487_v10 = vld [vmem:[%s5530_s25 + $0x98] sm:$0xff] }
  0x2a   : > { %561 = vperm.xlu1 %4984, %v503_v17   ;;  %543 = vperm.xlu0 %4983, %v501_v18   ;;  %v485_v4 = vld [vmem:[%s5530_s25 + $0x88] sm:$0xff]  ;;  %v486_v11 = vld [vmem:[%s5530_s25 + $0x90] sm:$0xff]  ;;  %v4902_v12 = vld [vmem:[%s8152_s6 + $0xa0] sm:$0xff]  ;;  %v519_v13 = vpack.c.bf16 %v487_v10, %v487_v10 }
  0x2b   : > { %1272 = vmatpush.bf16.msra.mxu0 %v4845_v20  ;;  %4927 = vmatpush.bf16.msra.mxu2 %v4845_v20  ;;  %v4827_v5 = vld [vmem:[%s5580_s27 + $0x8] sm:$0xff]  ;;  %v517_v9 = vpack.c.bf16 %v485_v4, %v485_v4  ;;  %v518_v14 = vpack.c.bf16 %v486_v11, %v486_v11  ;;  %v488_v15 = vld [vmem:[%s5530_s25 + $0xa0] sm:$0xff]  ;;  %v490_v19 = vld [vmem:[%s5530_s25 + $0xb0] sm:$0xff] }
  0x2c   : > { %1585 = vmatpush.bf16.msra.mxu1 %v4885_v21  ;;  %4935 = vmatpush.bf16.msra.mxu3 %v4885_v21  ;;  %v4835_v6 = vld [vmem:[%s5580_s27 + $0x48] sm:$0xff]  ;;  %v520_v16 = vpack.c.bf16 %v488_v15, %v488_v15  ;;  %v4910_v17 = vld [vmem:[%s8152_s6 + $0xe0] sm:$0xff]  ;;  %v522_v21 = vpack.c.bf16 %v490_v19, %v490_v19  ;;  %v4828_v24 = vld [vmem:[%s5580_s27 + $0x10] sm:$0xff] }
  0x2d   : > { %579 = vperm.xlu2 %4985, %v505_v22   ;;  %v4851_v7 = vld [vmem:[%s5592_s19 + $0x8] sm:$0xff]  ;;  %v4918_v18 = vld [vmem:[%s8152_s6 + $0x120] sm:$0xff]  ;;  %v4836_v25 = vld [vmem:[%s5580_s27 + $0x50] sm:$0xff] }
  0x2e   : > { %v4859_v8 = vld [vmem:[%s5592_s19 + $0x48] sm:$0xff]  ;;  %v494_v35 = vld [vmem:[%s5530_s25 + $0xd0] sm:$0xff]  ;;  %v4830_v56 = vld [vmem:[%s5580_s27 + $0x20] sm:$0xff] }
  0x2f   : > { %1273 = vmatpush.bf16.msra.mxu0 %v4844_v23  ;;  %4928 = vmatpush.bf16.msra.mxu2 %v4844_v23  ;;  %v489_v20 = vld [vmem:[%s5530_s25 + $0xa8] sm:$0xff]  ;;  %v491_v23 = vld [vmem:[%s5530_s25 + $0xb8] sm:$0xff]  ;;  %v498_v50 = vld [vmem:[%s5530_s25 + $0xf0] sm:$0xff] }
  0x30   : > { %1586 = vmatpush.bf16.msra.mxu1 %v4884_v26  ;;  %4936 = vmatpush.bf16.msra.mxu3 %v4884_v26  ;;  %v521_v22 = vpack.c.bf16 %v489_v20, %v489_v20  ;;  %v4852_v26 = vld [vmem:[%s5592_s19 + $0x10] sm:$0xff]  ;;  %v493_v29 = vld [vmem:[%s5530_s25 + $0xc8] sm:$0xff] }
  0x31   : > { %v4892_v51 = vld [vmem:[%s8152_s6 + $0x50] sm:$0xff]  ;;  %v4899_v62 = vld [vmem:[%s8152_s6 + $0x88] sm:$0xff] }
  0x32   : > { %597 = vperm.xlu1 %4984, %v507_v27   ;;  %588 = vperm.xlu0 %4983, %v506_v28   ;;  %v4860_v27 = vld [vmem:[%s5592_s19 + $0x50] sm:$0xff]  ;;  %v523_v28 = vpack.c.bf16 %v491_v23, %v491_v23  ;;  %v4907_v63 = vld [vmem:[%s8152_s6 + $0xc8] sm:$0xff]  ;;  %v4833_v23 = vld [vmem:[%s5580_s27 + $0x38] sm:$0xff] }
  0x33   : > { %1274 = vmatpush.bf16.msra.mxu0 %v4843_v30  ;;  %4929 = vmatpush.bf16.msra.mxu2 %v4843_v30  ;;  %v492_v30 = vld [vmem:[%s5530_s25 + $0xc0] sm:$0xff]  ;;  %v4915_v4 = vld [vmem:[%s8152_s6 + $0x108] sm:$0xff]  ;;  %v4832_v10 = vld [vmem:[%s5580_s27 + $0x30] sm:$0xff] }
  0x34   : > { %1587 = vmatpush.bf16.msra.mxu1 %v4883_v31  ;;  %4937 = vmatpush.bf16.msra.mxu3 %v4883_v31  ;;  %v4893_v31 = vld [vmem:[%s8152_s6 + $0x58] sm:$0xff]  ;;  %v524_v34 = vpack.c.bf16 %v492_v30, %v492_v30  ;;  %v4840_v11 = vld [vmem:[%s5580_s27 + $0x70] sm:$0xff] }
  0x35   : > { %606 = vperm.xlu2 %4985, %v508_v32   ;;  %v4901_v32 = vld [vmem:[%s8152_s6 + $0x98] sm:$0xff] }
  0x37   : > { %1275 = vmatpush.bf16.msra.mxu0 %v4842_v33  ;;  %4930 = vmatpush.bf16.msra.mxu2 %v4842_v33  ;;  %v525_v33 = vpack.c.bf16 %v493_v29, %v493_v29 }
  0x38   : > { %1588 = vmatpush.bf16.msra.mxu1 %v4882_v36  ;;  %4938 = vmatpush.bf16.msra.mxu3 %v4882_v36  ;;  %v526_v36 = vpack.c.bf16 %v494_v35, %v494_v35 }
  0x3a   : > { %624 = vperm.xlu1 %4984, %v510_v39   ;;  %615 = vperm.xlu0 %4983, %v509_v40   ;;  %v4909_v39 = vld [vmem:[%s8152_s6 + $0xd8] sm:$0xff] }
  0x3b   : > { %2029 = vmatpush.bf16.msrb.mxu2 %v4897_v37  ;;  %1276 = vmatmul.bf16.vlgmr.msra.gmra.mxu0 %v4826_v42  ;;  %v496_v37 = vld [vmem:[%s5530_s25 + $0xe0] sm:$0xff]  ;;  %v4917_v40 = vld [vmem:[%s8152_s6 + $0x118] sm:$0xff] }
  0x3c   : > { %2574 = vmatpush.bf16.msrb.mxu3 %v4905_v38  ;;  %1316 = vmatmul.bf16.vlgmr.msra.gmra.mxu2 %v4834_v43  ;;  %v495_v38 = vld [vmem:[%s5530_s25 + $0xd8] sm:$0xff]  ;;  %v528_v41 = vpack.c.bf16 %v496_v37, %v496_v37  ;;  %v497_v43 = vld [vmem:[%s5530_s25 + $0xe8] sm:$0xff]  ;;  %v404_v37 = vld [vmem:[%s5757_s11] sm:$0xff]  }
  0x3d   : > { %1589 = vmatmul.bf16.vlgmr.msra.gmra.mxu1 %v4850_v44  ;;  %1629 = vmatmul.bf16.vlgmr.msra.gmra.mxu3 %v4858_v45  ;;  %v527_v42 = vpack.c.bf16 %v495_v38, %v495_v38  ;;  %v4829_v44 = vld [vmem:[%s5580_s27 + $0x18] sm:$0xff] }
  0x3e   : > { %633 = vperm.xlu2 %4985, %v511_v46   ;;  %3119 = vmatpush.bf16.msrb.mxu0 %v4913_v47  ;;  %v4837_v45 = vld [vmem:[%s5580_s27 + $0x58] sm:$0xff] }
  0x3f   : > { %3568 = vmatpush.bf16.msrb.mxu1 %v4921_v48  ;;  %2030 = vmatpush.bf16.msrb.mxu2 %v4896_v49  ;;  %v4853_v46 = vld [vmem:[%s5592_s19 + $0x18] sm:$0xff]  ;;  %v529_v48 = vpack.c.bf16 %v497_v43, %v497_v43  ;;  %v853_v43 = vunpack.c.h.bf16 %v404_v37 }
  0x40   : > { %2575 = vmatpush.bf16.msrb.mxu3 %v4904_v52  ;;  %v4861_v47 = vld [vmem:[%s5592_s19 + $0x58] sm:$0xff]  ;;  %v4900_v52 = vld [vmem:[%s8152_s6 + $0x90] sm:$0xff] }
  0x41   : > { %v499_v49 = vld [vmem:[%s5530_s25 + $0xf8] sm:$0xff]  ;;  %s6561_s25 = sld [smem:[#allocation3 + $0x4]] }
  0x42   : > { %3120 = vmatpush.bf16.msrb.mxu0 %v4912_v53  ;;  %651 = vperm.xlu1 %4984, %v513_v54   ;;  %v531_v53 = vpack.c.bf16 %v499_v49, %v499_v49  ;;  %v530_v54 = vpack.c.bf16 %v498_v50, %v498_v50 }
  0x43   : > { %642 = vperm.xlu0 %4983, %v512_v55   ;;  %3569 = vmatpush.bf16.msrb.mxu1 %v4920_v57  ;;  %v4908_v55 = vld [vmem:[%s8152_s6 + $0xd0] sm:$0xff]  ;;  %v4838_v57 = vld [vmem:[%s5580_s27 + $0x60] sm:$0xff] }
  0x44   : > { %2031 = vmatpush.bf16.msrb.mxu2 %v4895_v58  ;;  %2576 = vmatpush.bf16.msrb.mxu3 %v4903_v59  ;;  %v4854_v58 = vld [vmem:[%s5592_s19 + $0x20] sm:$0xff] }
  0x45   : > { %v4862_v59 = vld [vmem:[%s5592_s19 + $0x60] sm:$0xff] }
  0x46   : > { %660 = vperm.xlu2 %4985, %v514_v60   ;;  %3121 = vmatpush.bf16.msrb.mxu0 %v4911_v61  ;;  %v4916_v60 = vld [vmem:[%s8152_s6 + $0x110] sm:$0xff]  ;;  %v4891_v61 = vld [vmem:[%s8152_s6 + $0x48] sm:$0xff] }
  0x47   : > { %3570 = vmatpush.bf16.msrb.mxu1 %v4919_v0  ;;  %v4831_v0 = vld [vmem:[%s5580_s27 + $0x28] sm:$0xff] }
  0x48   : > { %2032 = vmatpush.bf16.msrb.mxu2 %v4894_v1  ;;  %2577 = vmatpush.bf16.msrb.mxu3 %v4902_v12  ;;  %v4839_v1 = vld [vmem:[%s5580_s27 + $0x68] sm:$0xff]  ;;  %v4914_v12 = vld [vmem:[%s8152_s6 + $0x100] sm:$0xff] }
  0x4a   : > { %678 = vperm.xlu1 %4984, %v516_v2   ;;  %3122 = vmatpush.bf16.msrb.mxu0 %v4910_v17  ;;  %v4855_v2 = vld [vmem:[%s5592_s19 + $0x28] sm:$0xff] }
  0x4b   : > { %669 = vperm.xlu0 %4983, %v515_v3   ;;  %1281 = vmatmul.bf16.gmra.mxu0 %v4827_v5  ;;  %v4863_v3 = vld [vmem:[%s5592_s19 + $0x68] sm:$0xff] }
  0x4c   : > { %1321 = vmatmul.bf16.gmra.mxu2 %v4835_v6  ;;  %3571 = vmatpush.bf16.msrb.mxu1 %v4918_v18  ;;  %v4890_v6 = vld [vmem:[%s8152_s6 + $0x40] sm:$0xff] }
  0x4d   : > { %1594 = vmatmul.bf16.gmra.mxu1 %v4851_v7  ;;  %1634 = vmatmul.bf16.gmra.mxu3 %v4859_v8  ;;  %v4898_v7 = vld [vmem:[%s8152_s6 + $0x80] sm:$0xff] }
  0x4e   : > { %687 = vperm.xlu2 %4985, %v517_v9   ;;  %2033 = vmatpush.bf16.msrb.mxu2 %v4893_v31  ;;  %v4906_v9 = vld [vmem:[%s8152_s6 + $0xc0] sm:$0xff] }
  0x4f   : > { %2578 = vmatpush.bf16.msrb.mxu3 %v4901_v32  ;;  %3123 = vmatpush.bf16.msrb.mxu0 %v4909_v39  ;;  %v436_v18 = vld [vmem:[%s5580_s27] sm:$0xff]  }
  0x50   : > { %3572 = vmatpush.bf16.msrb.mxu1 %v4917_v40  ;;  %v932_v19 = vunpack.c.l.bf16 %v436_v18  ;;  %v933_v20 = vunpack.c.h.bf16 %v436_v18 }
  0x52   : > { %705 = vperm.xlu1 %4984, %v519_v13   ;;  %2034 = vmatpush.bf16.msrb.mxu2 %v4892_v51  ;;  %v4856_v13 = vld [vmem:[%s5592_s19 + $0x30] sm:$0xff]  ;;  %v965_v29 = vmul.f32 1.1015625, %v933_v20 }
  0x53   : > { %696 = vperm.xlu0 %4983, %v518_v14   ;;  %2579 = vmatpush.bf16.msrb.mxu3 %v4900_v52  ;;  %v4864_v14 = vld [vmem:[%s5592_s19 + $0x70] sm:$0xff] }
  0x54   : > { %3124 = vmatpush.bf16.msrb.mxu0 %v4908_v55  ;;  %3573 = vmatpush.bf16.msrb.mxu1 %v4916_v60 }
  0x56   : > { %714 = vperm.xlu2 %4985, %v520_v16   ;;  %2035 = vmatpush.bf16.msrb.mxu2 %v4891_v61 }
  0x57   : > { %2580 = vmatpush.bf16.msrb.mxu3 %v4899_v62 }
  0x58   : > { %3125 = vmatpush.bf16.msrb.mxu0 %v4907_v63  ;;  %3574 = vmatpush.bf16.msrb.mxu1 %v4915_v4  ;;  %v406_v4 = vld [vmem:[%s5757_s11 + $0x8] sm:$0xff]  }
  0x59   : > { %v855_v18 = vunpack.c.h.bf16 %v406_v4 }
  0x5a   : > { %732 = vperm.xlu1 %4984, %v522_v21   ;;  %2036 = vmatpush.bf16.msrb.mxu2 %v4890_v6  ;;  %v5404_v21 = vmov 839922192  }
  0x5b   : > { %723 = vperm.xlu0 %4983, %v521_v22   ;;  %1286 = vmatmul.bf16.gmra.mxu0 %v4828_v24  ;;  %v538_v22 = vunpack.c.l.s4 %v5404_v21  ;;  %v4841_v24 = vld [vmem:[%s5580_s27 + $0x78] sm:$0xff] }
  0x5c   : > { %1326 = vmatmul.bf16.gmra.mxu2 %v4836_v25  ;;  %2581 = vmatpush.bf16.msrb.mxu3 %v4898_v7 }
  0x5d   : > { %1599 = vmatmul.bf16.gmra.mxu1 %v4852_v26  ;;  %1639 = vmatmul.bf16.gmra.mxu3 %v4860_v27  ;;  %v4857_v26 = vld [vmem:[%s5592_s19 + $0x38] sm:$0xff]  ;;  %v5751_v30 = vunpack.c.0.s8 %v538_v22 }
  0x5e   : > { %741 = vperm.xlu2 %4985, %v523_v28   ;;  %3126 = vmatpush.bf16.msrb.mxu0 %v4906_v9  ;;  %v4865_v27 = vld [vmem:[%s5592_s19 + $0x78] sm:$0xff]  ;;  %v964_v28 = vmul.f32 1.1015625, %v932_v19 }
  0x5f   : > { %3575 = vmatpush.bf16.msrb.mxu1 %v4914_v12 }
  0x62   : > { %759 = vperm.xlu1 %4984, %v525_v33   ;;  %v996_v33 = vpack.c.bf16 %v964_v28, %v964_v28 }
  0x63   : > { %750 = vperm.xlu0 %4983, %v524_v34   ;;  %v997_v34 = vpack.c.bf16 %v965_v29, %v965_v29 }
  0x64   : > { %v1028_v38 = vunpack.c.l.bf16 %v996_v33 }
  0x65   : > { %v1029_v39 = vunpack.c.l.bf16 %v997_v34 }
  0x66   : > { %768 = vperm.xlu2 %4985, %v526_v36  }
  0x67   : > { %v1061_v49 = vadd.f32 %v1029_v39, %v853_v43 }
  0x6a   : > { %786 = vperm.xlu1 %4984, %v528_v41   ;;  %v852_v41 = vunpack.c.l.bf16 %v404_v37 }
  0x6b   : > { %777 = vperm.xlu0 %4983, %v527_v42   ;;  %1291 = vmatmul.bf16.gmra.mxu0 %v4829_v44  ;;  %v438_v44 = vld [vmem:[%s5580_s27 + $0x8] sm:$0xff]  }
  0x6c   : > { %1331 = vmatmul.bf16.gmra.mxu2 %v4837_v45  ;;  %v934_v50 = vunpack.c.l.bf16 %v438_v44  ;;  %v935_v51 = vunpack.c.h.bf16 %v438_v44 }
  0x6d   : > { %1604 = vmatmul.bf16.gmra.mxu1 %v4853_v46  ;;  %1644 = vmatmul.bf16.gmra.mxu3 %v4861_v47 }
  0x6e   : > { %795 = vperm.xlu2 %4985, %v529_v48   ;;  %v1060_v48 = vadd.f32 %v1028_v38, %v852_v41  ;;  %v4811_v38 = vld [vmem:[%s5757_s11 + $0x8] sm:$0xff] }
  0x72   : > { %813 = vperm.xlu1 %4984, %v531_v53  }
  0x73   : > { %804 = vperm.xlu0 %4983, %v530_v54   ;;  %v4866_v54 = vld [vmem:[%s5773_s20] sm:$0xff] }
  0x7b   : > { %1296 = vmatmul.bf16.gmra.mxu0 %v4830_v56  ;;  %v4810_v56 = vld [vmem:[%s5757_s11] sm:$0xff] }
  0x7c   : > { %1336 = vmatmul.bf16.gmra.mxu2 %v4838_v57  ;;  %v1092_v57 = vpack.c.bf16 %v1061_v49, %v1060_v48  ;;  %v5830_v49 = vld [vmem:[%s5757_s11 + $0x38] sm:$0xff]  }
  0x7d   : > { %1609 = vmatmul.bf16.gmra.mxu1 %v4854_v58  ;;  %1649 = vmatmul.bf16.gmra.mxu3 %v4862_v59  ;;  %v966_v58 = vmul.f32 1.1015625, %v934_v50  ;;  %v967_v59 = vmul.f32 1.1015625, %v935_v51  ;;  %8262 = vst [vmem:[#allocation13_spill] sm:$0xff] %v5830_v49 }
  0x7f   : > { %v5720_v5 = vpop.permute.xlu2 %570  ;;  %v998_v63 = vpack.c.bf16 %v966_v58, %v966_v58  ;;  %v5844_v58 = vld [vmem:[%s5757_s11 + $0x44] sm:$0xff]  }
  0x80   : > { %8264 = vst [vmem:[#allocation15_spill] sm:$0xff] %v5844_v58 }
  0x87   : > { %v5728_v8 = vpop.permute.xlu2 %579 }
  0x8b   : > { %1301 = vmatmul.bf16.gmra.mxu0 %v4831_v0  ;;  %v999_v0 = vpack.c.bf16 %v967_v59, %v967_v59 }
  0x8c   : > { %1341 = vmatmul.bf16.gmra.mxu2 %v4839_v1 }
  0x8d   : > { %1614 = vmatmul.bf16.gmra.mxu1 %v4855_v2  ;;  %1654 = vmatmul.bf16.gmra.mxu3 %v4863_v3  ;;  %v1031_v12 = vunpack.c.l.bf16 %v999_v0 }
  0x8f   : > { %v5740_v15 = vpop.permute.xlu2 %606  ;;  %v1063_v22 = vadd.f32 %v1031_v12, %v855_v18 }
  0x94   : > { %v5742_v16 = vpop.permute.xlu1 %552  ;;  %v535_v17 = vpop.permute.xlu0 %534 }
  0x95   : > { %v540_v35 = vperm.slane %v535_v17, %v5751_v30  ;;  %v558_v1 = vperm.slane %v5742_v16, %v5751_v30  ;;  %v854_v17 = vunpack.c.l.bf16 %v406_v4 }
  0x97   : > { %v820_v40 = vunpack.c.l.bf16 %v540_v35  ;;  %v4867_v35 = vld [vmem:[%s5773_s20 + $0x8] sm:$0xff] }
  0x98   : > { %v5747_v25 = vpop.permute.xlu2 %633 }
  0x99   : > { %v884_v52 = vmul.f32 %v852_v41, %v820_v40  ;;  %v5822_v41 = vld [vmem:[%s5757_s11 + $0x20] sm:$0xff]  }
  0x9b   : > { %1306 = vmatmul.bf16.gmra.mxu0 %v4832_v10 }
  0x9c   : > { %1346 = vmatmul.bf16.gmra.mxu2 %v4840_v11  ;;  %v562_v31 = vpop.permute.xlu1 %561  ;;  %v544_v32 = vpop.permute.xlu0 %543  ;;  %v1030_v11 = vunpack.c.l.bf16 %v998_v63  ;;  %v8157_v63 = vunpack.c.l.bf16 %v5830_v49 }
  0x9d   : > { %1619 = vmatmul.bf16.gmra.mxu1 %v4856_v13  ;;  %1659 = vmatmul.bf16.gmra.mxu3 %v4864_v14  ;;  %v549_v36 = vperm.slane %v544_v32, %v5751_v30  ;;  %v567_v2 = vperm.slane %v562_v31, %v5751_v30  ;;  %v440_v13 = vld [vmem:[%s5580_s27 + $0x10] sm:$0xff]   ;;  %v822_v14 = vunpack.c.l.bf16 %v558_v1  ;;  %v585_v32 = vperm.slane %v5728_v8, %v5751_v30  ;;  %v5852_v1 = vld [vmem:[%s5757_s11 + $0x28] sm:$0xf] }
  0x9e   : > { %v936_v20 = vunpack.c.l.bf16 %v440_v13  ;;  %v1062_v21 = vadd.f32 %v1030_v11, %v854_v17  ;;  %v5807_v31 = vld [vmem:[%s5757_s11 + $0x10] sm:$0xff]   ;;  %v612_v8 = vperm.slane %v5740_v15, %v5751_v30  ;;  %8265 = vst [vmem:[#allocation16_spill] sm:$0xff] %v5852_v1 }
  0x9f   : > { %v821_v42 = vunpack.c.l.bf16 %v549_v36  ;;  %v823_v16 = vunpack.c.l.bf16 %v567_v2  ;;  %v856_v48 = vunpack.c.l.bf16 %v5807_v31  ;;  %v825_v50 = vunpack.c.l.bf16 %v585_v32 }
  0xa0   : > { %v5763_v45 = vpop.permute.xlu2 %660  ;;  %v968_v36 = vmul.f32 1.1015625, %v936_v20  ;;  %v1093_v39 = vpack.c.bf16 %v1063_v22, %v1062_v21  ;;  %v857_v51 = vunpack.c.h.bf16 %v5807_v31 }
  0xa1   : > { %v885_v53 = vmul.f32 %v853_v43, %v821_v42 }
  0xa2   : > { %v1000_v15 = vpack.c.bf16 %v968_v36, %v968_v36 }
  0xa3   : > { %v916_v61 = vpack.c.bf16 %v885_v53, %v884_v52  ;;  %v5834_v52 = vld [vmem:[%s5757_s11 + $0x2c] sm:$0xff]   ;;  %v639_v53 = vperm.slane %v5747_v25, %v5751_v30  ;;  %v666_v25 = vperm.slane %v5763_v45, %v5751_v30  ;;  %v5865_v45 = vmul.f32 %v857_v51, %v825_v50  ;;  %v5904_v50 = vld [vmem:[%s5757_s11 + $0x40] sm:$0xf] }
  0xa4   : > { %v5765_v46 = vpop.permute.xlu1 %597  ;;  %v5767_v47 = vpop.permute.xlu0 %588  ;;  %8263 = vst [vmem:[#allocation14_spill] sm:$0xff] %v5834_v52  ;;  %v1032_v20 = vunpack.c.l.bf16 %v1000_v15 }
  0xa5   : > { %v603_v0 = vperm.slane %v5765_v46, %v5751_v30  ;;  %v594_v11 = vperm.slane %v5767_v47, %v5751_v30  ;;  %v8163_v46 = vunpack.c.l.bf16 %v5844_v58  ;;  %v834_v32 = vunpack.c.l.bf16 %v666_v25  ;;  %8271 = vst [vmem:[#allocation22_spill] sm:$0xff] %v5904_v50  ;;  %v5916_v25 = vld [vmem:[%s5757_s11 + $0x4c] sm:$0xf] }
  0xa6   : > { %8273 = vst [vmem:[#allocation24_spill] sm:$0xff] %v5916_v25 }
  0xa8   : > { %v5781_v62 = vpop.permute.xlu2 %687 }
  0xab   : > { %1311 = vmatmul.bf16.gmra.mxu0 %v4833_v23  ;;  %v937_v23 = vunpack.c.h.bf16 %v440_v13  ;;  %v5861_v13 = vld [vmem:[%s5757_s11 + $0x50] sm:$0xff]  }
  0xac   : > { %1351 = vmatmul.bf16.gmra.mxu2 %v4841_v24  ;;  %v5786_v3 = vpop.permute.xlu1 %624  ;;  %v5789_v6 = vpop.permute.xlu0 %615  ;;  %v886_v24 = vmul.f32 %v854_v17, %v822_v14  ;;  %8266 = vst [vmem:[#allocation17_spill] sm:$0xff] %v5861_v13  ;;  %v831_v17 = vunpack.c.l.bf16 %v639_v53 }
  0xad   : > { %1624 = vmatmul.bf16.gmra.mxu1 %v4857_v26  ;;  %1664 = vmatmul.bf16.gmra.mxu3 %v4865_v27  ;;  %v887_v26 = vmul.f32 %v855_v18, %v823_v16  ;;  %v576_v27 = vperm.slane %v5720_v5, %v5751_v30  ;;  %v969_v40 = vmul.f32 1.1015625, %v937_v23  ;;  %v5869_v16 = vld [vmem:[%s5757_s11 + $0x34] sm:$0xf]  ;;  %v5880_v23 = vld [vmem:[%s8153_s7] ss:$0 sm:$0xff] }
  0xae   : > { %8268 = vst [vmem:[#allocation19_spill] sm:$0xff] %v5869_v16 }
  0xaf   : > { %v917_v43 = vpack.c.bf16 %v887_v26, %v886_v24  ;;  %v824_v44 = vunpack.c.l.bf16 %v576_v27  ;;  %v1001_v59 = vpack.c.bf16 %v969_v40, %v969_v40  ;;  %v826_v40 = vunpack.c.l.bf16 %v594_v11 }
  0xb0   : > { %v5802_v28 = vpop.permute.xlu2 %714 }
  0xb1   : > { %v5854_v2 = vmul.f32 %v856_v48, %v824_v44  ;;  %v1033_v27 = vunpack.c.l.bf16 %v1001_v59  ;;  %v630_v59 = vperm.slane %v5786_v3, %v5751_v30 }
  0xb3   : > { %v918_v21 = vpack.c.bf16 %v5865_v45, %v5854_v2 }
  0xb4   : > { %v5811_v33 = vpop.permute.xlu1 %651 }
  0xb5   : > { %v5816_v37 = vpop.permute.xlu0 %642 }
  0xb8   : > { %v5776_v55 = vpop.f32.mrf.mxu0  ;;  %v5882_v24 = vpop.permute.xlu2 %741 }
  0xb9   : > { %8257 = vst [vmem:[#allocation8_spill] sm:$0xff] %v5776_v55 }
  0xba   : > { %v5779_v60 = vpop.f32.mrf.mxu1 }
  0xbb   : > { %3127 = vmatmul.bf16.vlgmr.msrb.gmra.mxu0 %v4866_v54  ;;  %v5839_v54 = vld [vmem:[%s5757_s11 + $0x18] sm:$0xff]   ;;  %v1591_v22 = vadd.f32 %v5779_v60, %v5776_v55  ;;  %v5923_v60 = vmul.f32 %v8157_v63, %v834_v32  ;;  %v648_v63 = vperm.slane %v5816_v37, %v5751_v30  ;;  %v720_v37 = vperm.slane %v5802_v28, %v5751_v30 }
  0xbc   : > { %2037 = vmatmul.bf16.vlgmr.msrb.gmra.mxu2 %v916_v61  ;;  %v828_v61 = vunpack.c.l.bf16 %v612_v8  ;;  %v8159_v4 = vunpack.c.h.bf16 %v5839_v54  ;;  %v8160_v12 = vunpack.c.l.bf16 %v5839_v54  ;;  %v5893_v36 = vpop.permute.xlu1 %678  ;;  %v693_v8 = vperm.slane %v5781_v62, %v5751_v30 }
  0xbd   : > { %2582 = vmatmul.bf16.vlgmr.msrb.gmra.mxu3 %v4810_v56  ;;  %3576 = vmatmul.bf16.vlgmr.msrb.gmra.mxu1 %v1092_v57  ;;  %v8156_v56 = vunpack.c.l.bf16 %v5822_v41  ;;  %v8158_v57 = vunpack.c.l.bf16 %v5834_v52  ;;  %v5906_v53 = vpop.permute.xlu0 %669  ;;  %v1064_v62 = vadd.f32 %v1032_v20, %v856_v48  ;;  %v840_v2 = vunpack.c.l.bf16 %v720_v37 }
  0xbe   : > { %v837_v20 = vunpack.c.l.bf16 %v693_v8  ;;  %v684_v37 = vperm.slane %v5893_v36, %v5751_v30 }
  0xbf   : > { %v5791_v7 = vpop.f32.mrf.mxu2  ;;  %v5888_v31 = vmul.f32 %v8156_v56, %v828_v61  ;;  %v5910_v15 = vmul.f32 %v8158_v57, %v831_v17  ;;  %v5959_v57 = vstv %s5891_s26  ;;  %s6629_s26 = sld [smem:[#allocation3 + $0x2]] }
  0xc0   : > { %8258 = vst [vmem:[#allocation9_spill] sm:$0xff] %v5791_v7  ;;  %v5793_v9 = vpop.f32.mrf.mxu3  ;;  %v5795_v10 = vpop.f32.mrf.mxu0  ;;  %v5969_v47 = vmul.f32 %v8163_v46, %v837_v20  ;;  %v747_v20 = vperm.slane %v5882_v24, %v5751_v30 }
  0xc1   : > { %8259 = vst [vmem:[#allocation10_spill] sm:$0xff] %v5795_v10  ;;  %v1631_v61 = vadd.f32 %v5793_v9, %v5791_v7  ;;  %v832_v7 = vunpack.c.l.bf16 %v648_v63  ;;  %v5983_v45 = vpop.permute.xlu2 %768 }
  0xc2   : > { %v5798_v19 = vpop.f32.mrf.mxu1  ;;  %8270 = vst [vmem:[#allocation21_spill] sm:$0xff] %v5888_v31  ;;  %v843_v36 = vunpack.c.l.bf16 %v747_v20  ;;  %v774_v20 = vperm.slane %v5983_v45, %v5751_v30 }
  0xc3   : > { %8272 = vst [vmem:[#allocation23_spill] sm:$0xff] %v5910_v15  ;;  %v1593_v28 = vadd.f32 %v5798_v19, %v5795_v10  ;;  %v8282_v19 = vunpack.c.l.bf16 %v5852_v1  ;;  %v6000_v55 = vadd.f32 %v5880_v23, %v1631_v61  ;;  %v8287_v61 = vunpack.c.h.bf16 %v5834_v52 }
  0xc4   : > { %8278 = vst [vmem:[#allocation29_spill] sm:$0xff] %v5959_v57  ;;  %v5986_v46 = vpop.permute.xlu1 %705  ;;  %v8293_v15 = vunpack.c.h.bf16 %v5839_v54 }
  0xc5   : > { %v5995_v9 = vpop.permute.xlu0 %696  ;;  %vm1722_vm1 = vcmp.gt.f32.partialorder %v6000_v55, 0.0 }
  0xc7   : > { %v5804_v29 = vpop.f32.mrf.mxu2 }
  0xc8   : > { %8260 = vst [vmem:[#allocation11_spill] sm:$0xff] %v5804_v29  ;;  %v5813_v34 = vpop.f32.mrf.mxu3  ;;  %v5818_v5 = vpop.f32.mrf.mxu0 }
  0xc9   : > { %8261 = vst [vmem:[#allocation12_spill] sm:$0xff] %v5818_v5 }
  0xca   : > { %v5826_v42 = vpop.f32.mrf.mxu1 }
  0xcb   : > { %3132 = vmatmul.bf16.gmra.mxu0 %v4867_v35  ;;  %v827_v35 = vunpack.c.l.bf16 %v603_v0  ;;  %v1065_v0 = vadd.f32 %v1033_v27, %v857_v51  ;;  %v5933_v51 = vmul.f32 %v8160_v12, %v826_v40  ;;  %v4868_v40 = vld [vmem:[%s5773_s20 + $0x10] sm:$0xff]  ;;  %v5951_v27 = vld [vmem:[%s5757_s11 + $0x68] sm:$0xff]  }
  0xcc   : > { %2042 = vmatmul.bf16.gmra.mxu2 %v917_v43  ;;  %v621_v43 = vperm.slane %v5789_v6, %v5751_v30  ;;  %v5919_v6 = vadd.f32 %v5880_v23, %v1591_v22  ;;  %8276 = vst [vmem:[#allocation27_spill] sm:$0xff] %v5951_v27 }
  0xcd   : > { %2587 = vmatmul.bf16.gmra.mxu3 %v4811_v38  ;;  %3581 = vmatmul.bf16.gmra.mxu1 %v1093_v39  ;;  %v442_v39 = vld [vmem:[%s5580_s27 + $0x18] sm:$0xff]   ;;  %v5927_v3 = vmul.f32 %v8159_v4, %v827_v35  ;;  %v657_v35 = vperm.slane %v5811_v33, %v5751_v30  ;;  %v1094_v4 = vpack.c.bf16 %v1065_v0, %v1064_v62 }
  0xce   : > { %v938_v11 = vunpack.c.l.bf16 %v442_v39  ;;  %v939_v56 = vunpack.c.h.bf16 %v442_v39  ;;  %v829_v22 = vunpack.c.l.bf16 %v621_v43  ;;  %v830_v39 = vunpack.c.l.bf16 %v630_v59  ;;  %v5948_v43 = vld [vmem:[%s5757_s11 + $0x5c] sm:$0xff]   ;;  %v4812_v59 = vld [vmem:[%s5757_s11 + $0x10] sm:$0xff] }
  0xcf   : > { %v5863_v14 = vpop.f32.mrf.mxu2  ;;  %v1738_v8 = vmin.f32 %v5919_v6, 0.0  ;;  %8275 = vst [vmem:[#allocation26_spill] sm:$0xff] %v5948_v43  ;;  %v5978_v0 = vld [vmem:[%s5757_s11 + $0x74] sm:$0xff]   ;;  %vm1706_vm0 = vcmp.gt.f32.partialorder %v5919_v6, 0.0 }
  0xd0   : > { %8267 = vst [vmem:[#allocation18_spill] sm:$0xff] %v5863_v14  ;;  %v5871_v18 = vpop.f32.mrf.mxu3  ;;  %v5884_v26 = vpop.f32.mrf.mxu0  ;;  %v970_v33 = vmul.f32 1.1015625, %v938_v11  ;;  %v971_v12 = vmul.f32 1.1015625, %v939_v56  ;;  %v8279_v56 = vunpack.c.h.bf16 %v5822_v41  ;;  %v833_v11 = vunpack.c.l.bf16 %v657_v35 }
  0xd1   : > { %8269 = vst [vmem:[#allocation20_spill] sm:$0xff] %v5884_v26  ;;  %v1770_v10 = vmul.f32 1.442695, %v1738_v8  ;;  %v8294_v8 = vunpack.c.l.bf16 %v5948_v43 }
  0xd2   : > { %v5895_v38 = vpop.f32.mrf.mxu1  ;;  %v5973_v62 = vmul.f32 %v8279_v56, %v829_v22  ;;  %8280 = vst [vmem:[#allocation30_spill] sm:$0xff] %v5978_v0  ;;  %v5989_v22 = vld [vmem:[%s5757_s11 + $0x58] sm:$0xf]  ;;  %v5993_v56 = vmul.f32 %v8282_v19, %v830_v39  ;;  %v1002_v63 = vpack.c.bf16 %v970_v33, %v970_v33  ;;  %v1003_v35 = vpack.c.bf16 %v971_v12, %v971_v12  ;;  %v6025_v19 = vld [vmem:[%s5757_s11 + $0x64] sm:$0xf] }
  0xd3   : > { %8281 = vst [vmem:[#allocation31_spill] sm:$0xff] %v5989_v22  ;;  %v6004_v39 = vadd.f32 %v5880_v23, %v1593_v28  ;;  %v6018_v33 = vmul.f32 %v8287_v61, %v832_v7  ;;  %v675_v28 = vperm.slane %v5906_v53, %v5751_v30  ;;  %4991 = vpow2.f32 %v1770_v10  ;;  %v444_v10 = vld [vmem:[%s5580_s27 + $0x20] sm:$0xff]  }
  0xd4   : > { %8283 = vst [vmem:[#allocation32_spill] sm:$0xff] %v5993_v56  ;;  %v8291_v7 = vunpack.c.l.bf16 %v5861_v13  ;;  %v1633_v53 = vadd.f32 %v5813_v34, %v5804_v29  ;;  %v8292_v29 = vunpack.c.l.bf16 %v5839_v54  ;;  %v940_v31 = vunpack.c.l.bf16 %v444_v10  ;;  %v796_v34 = vpop.permute.xlu2 %795 }
  0xd5   : > { %8288 = vst [vmem:[#allocation35_spill] sm:$0xff] %v6018_v33  ;;  %v1739_v52 = vmin.f32 %v6004_v39, 0.0  ;;  %v801_v33 = vperm.slane %v796_v34, %v5751_v30  ;;  %vm1707_vm2 = vcmp.gt.f32.partialorder %v6004_v39, 0.0 }
  0xd6   : > { %8289 = vst [vmem:[#allocation36_spill] sm:$0xff] %v6025_v19  ;;  %v6035_v61 = vmul.f32 %v8291_v7, %v840_v2  ;;  %v836_v2 = vunpack.c.l.bf16 %v684_v37  ;;  %v835_v7 = vunpack.c.l.bf16 %v675_v28  ;;  %v6059_v37 = vmul.f32 %v8294_v8, %v843_v36 }
  0xd7   : > { %v5936_v32 = vpop.f32.mrf.mxu2  ;;  %v6062_v45 = vadd.f32 %v5880_v23, %v1633_v53  ;;  %v1772_v54 = vmul.f32 1.442695, %v1739_v52  ;;  %v8297_v36 = vunpack.c.l.bf16 %v5904_v50  ;;  %v4813_v50 = vld [vmem:[%s5757_s11 + $0x18] sm:$0xff]  ;;  %v8301_v19 = vunpack.c.l.bf16 %v5951_v27 }
  0xd8   : > { %8274 = vst [vmem:[#allocation25_spill] sm:$0xff] %v5936_v32  ;;  %v5943_v48 = vpop.f32.mrf.mxu3  ;;  %v5953_v17 = vpop.f32.mrf.mxu0 }
  0xd9   : > { %8277 = vst [vmem:[#allocation28_spill] sm:$0xff] %v5953_v17  ;;  %v6079_v53 = vmul.f32 %v8297_v36, %v836_v2  ;;  %v972_v36 = vmul.f32 1.1015625, %v940_v31  ;;  %vm1723_vm3 = vcmp.gt.f32.partialorder %v6062_v45, 0.0 }
  0xda   : > { %v5963_v44 = vpop.f32.mrf.mxu1  ;;  %8295 = vst [vmem:[#allocation38_spill] sm:$0xff] %v6059_v37 }
  0xdb   : > { %3137 = vmatmul.bf16.gmra.mxu0 %v4868_v40 }
  0xdc   : > { %2047 = vmatmul.bf16.gmra.mxu2 %v918_v21  ;;  %v1754_v21 = vmin.f32 %v6000_v55, 0.0 }
  0xdd   : > { %2592 = vmatmul.bf16.gmra.mxu3 %v4812_v59  ;;  %3586 = vmatmul.bf16.gmra.mxu1 %v1094_v4  ;;  %v8285_v59 = vunpack.c.l.bf16 %v5869_v16 }
  0xde   : > { %v1802_v28 = vmul.f32 1.442695, %v1754_v21  ;;  %v6073_v21 = vpop.permute.xlu0 %723 }
  0xdf   : > { %v6008_v4 = vpop.f32.mrf.mxu2  ;;  %v6014_v24 = vmul.f32 %v8285_v59, %v833_v11  ;;  %v1034_v11 = vunpack.c.l.bf16 %v1002_v63  ;;  %v1035_v59 = vunpack.c.l.bf16 %v1003_v35  ;;  %v1596_v63 = vadd.f32 %v5826_v42, %v5818_v5  ;;  %v6064_v35 = vpop.permute.xlu1 %732 }
  0xe0   : > { %8284 = vst [vmem:[#allocation33_spill] sm:$0xff] %v6008_v4  ;;  %v6027_v40 = vpop.f32.mrf.mxu3  ;;  %v6029_v12 = vpop.f32.mrf.mxu0  ;;  %v941_v42 = vunpack.c.h.bf16 %v444_v10  ;;  %v8298_v10 = vunpack.c.h.bf16 %v5830_v49  ;;  %v846_v5 = vunpack.c.l.bf16 %v774_v20  ;;  %4993 = vpow2.f32 %v1802_v28 }
  0xe1   : > { %8286 = vst [vmem:[#allocation34_spill] sm:$0xff] %v6014_v24  ;;  %v1066_v56 = vadd.f32 %v1034_v11, %v8292_v29  ;;  %v1067_v1 = vadd.f32 %v1035_v59, %v8293_v15  ;;  %v4992_v29 = vpop.eup %4991  ;;  %v711_v15 = vperm.slane %v5986_v46, %v5751_v30  ;;  %v702_v11 = vperm.slane %v5995_v9, %v5751_v30  ;;  %v6092_v24 = vld [vmem:[%s5757_s11 + $0x70] sm:$0xf] }
  0xe2   : > { %8290 = vst [vmem:[#allocation37_spill] sm:$0xff] %v6029_v12  ;;  %v6040_v16 = vpop.f32.mrf.mxu1  ;;  %v6071_v8 = vadd.f32 %v5880_v23, %v1596_v63  ;;  %v6083_v52 = vmul.f32 %v8298_v10, %v835_v7  ;;  %v1636_v46 = vadd.f32 %v5871_v18, %v5863_v14  ;;  %v4869_v63 = vld [vmem:[%s5773_s20 + $0x18] sm:$0xff]  ;;  %v973_v43 = vmul.f32 1.1015625, %v941_v42 }
  0xe3   : > { %8299 = vst [vmem:[#allocation40_spill] sm:$0xff] %v6092_v24  ;;  %v1095_v2 = vpack.c.bf16 %v1067_v1, %v1066_v56  ;;  %v4317_v49 = vadd.f32 -1.0, %v4992_v29  ;;  %v1755_v7 = vmin.f32 %v6062_v45, 0.0  ;;  %v1598_v18 = vadd.f32 %v5895_v38, %v5884_v26  ;;  %v6116_v29 = vld [vmem:[%s5757_s11 + $0x7c] sm:$0xf] }
  0xe4   : > { %4995 = vpow2.f32 %v1772_v54  ;;  %v839_v34 = vunpack.c.l.bf16 %v711_v15  ;;  %v838_v10 = vunpack.c.l.bf16 %v702_v11  ;;  %v1740_v14 = vmin.f32 %v6071_v8, 0.0  ;;  %8303 = vst [vmem:[#allocation42_spill] sm:$0xff] %v6116_v29 }
  0xe5   : > { %v6105_v1 = vmul.f32 %v8301_v19, %v846_v5  ;;  %v6108_v31 = vadd.f32 %v5880_v23, %v1636_v46  ;;  %v8302_v38 = vpack.c.bf16 %v5927_v3, %v5933_v51  ;;  %v849_v28 = vunpack.c.l.bf16 %v801_v33 }
  0xe6   : > { %v1004_v54 = vpack.c.bf16 %v972_v36, %v972_v36  ;;  %v1005_v5 = vpack.c.bf16 %v973_v43, %v973_v43  ;;  %v1866_v15 = vsel %vm1706_vm0, %v5919_v6, %v4317_v49  ;;  %v1804_v11 = vmul.f32 1.442695, %v1755_v7 }
  0xe7   : > { %v6075_v59 = vpop.f32.mrf.mxu2  ;;  %v729_v3 = vperm.slane %v6073_v21, %v5751_v30  ;;  %v6127_v51 = vadd.f32 %v5880_v23, %v1598_v18  ;;  %v8305_v33 = vunpack.c.h.bf16 %v5844_v58  ;;  %v1774_v49 = vmul.f32 1.442695, %v1740_v14  ;;  %v4994_v21 = vpop.eup %4993 }
  0xe8   : > { %8296 = vst [vmem:[#allocation39_spill] sm:$0xff] %v6075_v59  ;;  %v6087_v9 = vpop.f32.mrf.mxu3  ;;  %v6094_v37 = vpop.f32.mrf.mxu0  ;;  %v1638_v6 = vadd.f32 %v5943_v48, %v5936_v32  ;;  %v1756_v36 = vmin.f32 %v6108_v31, 0.0  ;;  %v1601_v18 = vadd.f32 %v5963_v44, %v5953_v17  ;;  %v6151_v48 = vmul.f32 %v5959_v57, %v1866_v15  ;;  %v446_v17 = vld [vmem:[%s5580_s27 + $0x28] sm:$0xff]  }
  0xe9   : > { %8300 = vst [vmem:[#allocation41_spill] sm:$0xff] %v6094_v37  ;;  %v6136_v46 = vmul.f32 %v8305_v33, %v838_v10  ;;  %v760_v7 = vpop.permute.xlu1 %759  ;;  %v1037_v19 = vunpack.c.l.bf16 %v1005_v5  ;;  %4997 = vpow2.f32 %v1804_v11  ;;  %v8308_v42 = vunpack.c.l.bf16 %v5978_v0 }
  0xea   : > { %v6100_v20 = vpop.f32.mrf.mxu1  ;;  %v4996_v14 = vpop.eup %4995  ;;  %8307 = vst [vmem:[#allocation44_spill] sm:$0xff] %v6151_v48  ;;  %v841_v44 = vunpack.c.l.bf16 %v729_v3  ;;  %v4333_v15 = vadd.f32 -1.0, %v4994_v21  ;;  %4999 = vpow2.f32 %v1774_v49  ;;  %v6165_v26 = vadd.f32 %v5880_v23, %v1638_v6 }
  0xeb   : > { %3142 = vmatmul.bf16.gmra.mxu0 %v4869_v63  ;;  %v6158_v56 = vmul.f32 %v8308_v42, %v849_v28  ;;  %v4318_v5 = vadd.f32 -1.0, %v4996_v14  ;;  %v6170_v42 = vadd.f32 %v5880_v23, %v1601_v18  ;;  %v8309_v28 = vunpack.c.l.bf16 %v5822_v41 }
  0xec   : > { %2052 = vmatmul.bf16.gmra.mxu2 %v8302_v38  ;;  %v751_v38 = vpop.permute.xlu0 %750  ;;  %v8310_v48 = vunpack.c.h.bf16 %v5822_v41  ;;  %v942_v21 = vunpack.c.l.bf16 %v446_v17  ;;  %v943_v49 = vunpack.c.h.bf16 %v446_v17  ;;  %v8311_v6 = vunpack.c.h.bf16 %v5861_v13 }
  0xed   : > { %2597 = vmatmul.bf16.gmra.mxu3 %v4813_v50  ;;  %3591 = vmatmul.bf16.gmra.mxu1 %v1095_v2  ;;  %v8304_v50 = vunpack.c.l.bf16 %v5916_v25  ;;  %v738_v2 = vperm.slane %v6064_v35, %v5751_v30  ;;  %v1036_v35 = vunpack.c.l.bf16 %v1004_v54  ;;  %v1882_v18 = vsel %vm1722_vm1, %v6000_v55, %v4333_v15 }
  0xee   : > { %v1069_v25 = vadd.f32 %v1037_v19, %v8310_v48  ;;  %v6178_v58 = vmul.f32 %v8311_v6, %v841_v44  ;;  %v765_v41 = vperm.slane %v760_v7, %v5751_v30  ;;  %v756_v17 = vperm.slane %v751_v38, %v5751_v30  ;;  %v4870_v38 = vld [vmem:[%s5773_s20 + $0x20] sm:$0xff] }
  0xef   : > { %v6132_v43 = vmul.f32 %v8304_v50, %v839_v34  ;;  %v6140_v63 = vpop.f32.mrf.mxu2  ;;  %v1741_v34 = vmin.f32 %v6127_v51, 0.0  ;;  %v842_v11 = vunpack.c.l.bf16 %v738_v2  ;;  %v1806_v50 = vmul.f32 1.442695, %v1756_v36  ;;  %v4998_v14 = vpop.eup %4997  ;;  %v4814_v6 = vld [vmem:[%s5757_s11 + $0x20] sm:$0xff] }
  0xf0   : > { %8306 = vst [vmem:[#allocation43_spill] sm:$0xff] %v6140_v63  ;;  %v6148_v10 = vpop.f32.mrf.mxu3  ;;  %v6154_v33 = vpop.f32.mrf.mxu0  ;;  %v1068_v3 = vadd.f32 %v1036_v35, %v8309_v28  ;;  %v1641_v2 = vadd.f32 %v6027_v40, %v6008_v4  ;;  %v1757_v19 = vmin.f32 %v6165_v26, 0.0  ;;  %v1867_v40 = vsel %vm1707_vm2, %v6004_v39, %v4318_v5 }
  0xf1   : > { %v1776_v54 = vmul.f32 1.442695, %v1741_v34  ;;  %v8313_v48 = vunpack.c.l.bf16 %v5989_v22  ;;  %v1742_v55 = vmin.f32 %v6170_v42, 0.0  ;;  %v1603_v7 = vadd.f32 %v6040_v16, %v6029_v12  ;;  %v5000_v15 = vpop.eup %4999  ;;  %v448_v22 = vld [vmem:[%s5580_s27 + $0x30] sm:$0xff]  }
  0xf2   : > { %v6161_v32 = vpop.f32.mrf.mxu1  ;;  %5001 = vpow2.f32 %v1806_v50  ;;  %v1096_v36 = vpack.c.bf16 %v1069_v25, %v1068_v3  ;;  %v974_v4 = vmul.f32 1.1015625, %v942_v21  ;;  %v975_v39 = vmul.f32 1.1015625, %v943_v49 }
  0xf3   : > { %v6198_v35 = vmul.f32 %v8313_v48, %v842_v11  ;;  %v6210_v5 = vmul.f32 %v5959_v57, %v1882_v18  ;;  %5003 = vpow2.f32 %v1776_v54  ;;  %v787_v11 = vpop.permute.xlu1 %786  ;;  %v6213_v48 = vadd.f32 %v5880_v23, %v1641_v2  ;;  %v8316_v2 = vld [vmem:[#allocation21_spill] sm:$0xff] }
  0xf4   : > { %v6220_v50 = vmul.f32 %v5959_v57, %v1867_v40  ;;  %v845_v12 = vunpack.c.l.bf16 %v765_v41  ;;  %v844_v25 = vunpack.c.l.bf16 %v756_v17  ;;  %v1808_v3 = vmul.f32 1.442695, %v1757_v19  ;;  %v778_v21 = vpop.permute.xlu0 %777 }
  0xf5   : > { %8314 = vst [vmem:[#allocation46_spill] sm:$0xff] %v6198_v35  ;;  %v4334_v49 = vadd.f32 -1.0, %v4998_v14  ;;  %v4319_v18 = vadd.f32 -1.0, %v5000_v15  ;;  %v6223_v54 = vadd.f32 %v5880_v23, %v1603_v7  ;;  %v8317_v13 = vpack.c.bf16 %v5973_v62, %v8316_v2 }
  0xf6   : > { %8315 = vst [vmem:[#allocation47_spill] sm:$0xff] %v6210_v5  ;;  %v1778_v5 = vmul.f32 1.442695, %v1742_v55  ;;  %vm1708_vm4 = vcmp.gt.f32.partialorder %v6071_v8, 0.0  ;;  %v1643_v40 = vadd.f32 %v6087_v9, %v6075_v59  ;;  %v1006_v41 = vpack.c.bf16 %v974_v4, %v974_v4  ;;  %v8318_v55 = vld [vmem:[#allocation36_spill] sm:$0xff] }
  0xf7   : > { %v6191_v34 = vpop.f32.mrf.mxu2  ;;  %v1007_v17 = vpack.c.bf16 %v975_v39, %v975_v39  ;;  %vm1724_vm5 = vcmp.gt.f32.partialorder %v6108_v31, 0.0  ;;  %v792_v19 = vperm.slane %v787_v11, %v5751_v30  ;;  %v1758_v14 = vmin.f32 %v6213_v48, 0.0 }
  0xf8   : > { %8312 = vst [vmem:[#allocation45_spill] sm:$0xff] %v6191_v34  ;;  %v6203_v44 = vpop.f32.mrf.mxu3  ;;  %v6206_v28 = vpop.f32.mrf.mxu0  ;;  %v1606_v62 = vadd.f32 %v6100_v20, %v6094_v37  ;;  %vm1709_vm6 = vcmp.gt.f32.partialorder %v6127_v51, 0.0  ;;  %v8319_v7 = vunpack.c.l.bf16 %v8318_v55  ;;  %5005 = vpow2.f32 %v1808_v3  ;;  %v8327_v55 = vld [vmem:[#allocation16_spill] sm:$0xff] }
  0xf9   : > { %v1883_v20 = vsel %vm1723_vm3, %v6062_v45, %v4334_v49  ;;  %v1868_v39 = vsel %vm1708_vm4, %v6071_v8, %v4319_v18  ;;  %5007 = vpow2.f32 %v1778_v5  ;;  %v6258_v3 = vadd.f32 %v5880_v23, %v1643_v40 }
  0xfa   : > { %v6215_v16 = vpop.f32.mrf.mxu1  ;;  %v6239_v9 = vmul.f32 %v8319_v7, %v845_v12  ;;  %v783_v12 = vperm.slane %v778_v21, %v5751_v30  ;;  %v1038_v7 = vunpack.c.l.bf16 %v1006_v41  ;;  %v848_v49 = vunpack.c.l.bf16 %v792_v19 }
  0xfb   : > { %3147 = vmatmul.bf16.gmra.mxu0 %v4870_v38  ;;  %v1810_v59 = vmul.f32 1.442695, %v1758_v14  ;;  %v6264_v8 = vadd.f32 %v5880_v23, %v1606_v62  ;;  %v6269_v21 = vmul.f32 %v5959_v57, %v1883_v20  ;;  %v814_v14 = vpop.permute.xlu1 %813  ;;  %v945_v62 = vunpack.c.h.bf16 %v448_v22 }
  0xfc   : > { %2057 = vmatmul.bf16.gmra.mxu2 %v8317_v13  ;;  %v5002_v13 = vpop.eup %5001  ;;  %8320 = vst [vmem:[#allocation21_spill] sm:$0xff] %v6239_v9  ;;  %v847_v19 = vunpack.c.l.bf16 %v783_v12  ;;  %vm1725_vm7 = vcmp.gt.f32.partialorder %v6165_v26, 0.0  ;;  %vm1710_vm8 = vcmp.gt.f32.partialorder %v6170_v42, 0.0  ;;  %v8328_v37 = vunpack.c.l.bf16 %v8327_v55 }
  0xfd   : > { %2602 = vmatmul.bf16.gmra.mxu3 %v4814_v6  ;;  %3596 = vmatmul.bf16.gmra.mxu1 %v1096_v36  ;;  %v8321_v36 = vld [vmem:[#allocation26_spill] sm:$0xff]  ;;  %v5004_v6 = vpop.eup %5003  ;;  %v4335_v45 = vadd.f32 -1.0, %v5002_v13  ;;  %8325 = vst [vmem:[#allocation50_spill] sm:$0xff] %v6269_v21  ;;  %v944_v13 = vunpack.c.l.bf16 %v448_v22  ;;  %v1759_v21 = vmin.f32 %v6258_v3, 0.0  ;;  %v8331_v35 = vunpack.c.l.bf16 %v6092_v24 }
  0xfe   : > { %v8322_v4 = vunpack.c.h.bf16 %v8321_v36  ;;  %v4320_v18 = vadd.f32 -1.0, %v5004_v6  ;;  %v5006_v36 = vpop.eup %5005  ;;  %v805_v6 = vpop.permute.xlu0 %804  ;;  %v1070_v41 = vadd.f32 %v1038_v7, %v8328_v37  ;;  %5009 = vpow2.f32 %v1810_v59 }
  0xff   : > { %v6245_v15 = vpop.f32.mrf.mxu2  ;;  %v5008_v12 = vpop.eup %5007  ;;  %v1884_v22 = vsel %vm1724_vm5, %v6108_v31, %v4335_v45  ;;  %v6290_v40 = vmul.f32 %v8331_v35, %v848_v49  ;;  %v819_v55 = vperm.slane %v814_v14, %v5751_v30  ;;  %v1646_v7 = vadd.f32 %v6148_v10, %v6140_v63 }
 0x100   : > { %v6243_v38 = vmul.f32 %v8322_v4, %v844_v25  ;;  %8324 = vst [vmem:[#allocation49_spill] sm:$0xff] %v6245_v15  ;;  %v6254_v11 = vpop.f32.mrf.mxu3  ;;  %v1743_v25 = vmin.f32 %v6223_v54, 0.0  ;;  %v6260_v2 = vpop.f32.mrf.mxu0  ;;  %v1039_v4 = vunpack.c.l.bf16 %v1007_v17  ;;  %v6276_v17 = vmul.f32 %v5959_v57, %v1868_v39 }
 0x101   : > { %v1869_v37 = vsel %vm1709_vm6, %v6127_v51, %v4320_v18  ;;  %v1608_v31 = vadd.f32 %v6161_v32, %v6154_v33  ;;  %v8333_v35 = vunpack.c.h.bf16 %v5951_v27  ;;  %v810_v45 = vperm.slane %v805_v6, %v5751_v30  ;;  %v4815_v32 = vld [vmem:[%s5757_s11 + $0x28] sm:$0xff] }
 0x102   : > { %8323 = vst [vmem:[#allocation48_spill] sm:$0xff] %v6243_v38  ;;  %v6266_v5 = vpop.f32.mrf.mxu1  ;;  %v1780_v20 = vmul.f32 1.442695, %v1743_v25  ;;  %v8329_v38 = vld [vmem:[#allocation14_spill] sm:$0xff]  ;;  %v1744_v25 = vmin.f32 %v6264_v8, 0.0  ;;  %v976_v51 = vmul.f32 1.1015625, %v944_v13  ;;  %v6312_v14 = vmul.f32 %v5959_v57, %v1884_v22 }
 0x103   : > { %v8330_v39 = vunpack.c.l.bf16 %v8329_v38  ;;  %v6305_v59 = vmul.f32 %v8333_v35, %v847_v19  ;;  %v977_v18 = vmul.f32 1.1015625, %v945_v62  ;;  %v1812_v10 = vmul.f32 1.442695, %v1759_v21 }
 0x104   : > { %8334 = vst [vmem:[#allocation14_spill] sm:$0xff] %v6312_v14  ;;  %5011 = vpow2.f32 %v1780_v20  ;;  %v6318_v27 = vmul.f32 %v5959_v57, %v1869_v37  ;;  %v4336_v19 = vadd.f32 -1.0, %v5006_v36  ;;  %v4321_v35 = vadd.f32 -1.0, %v5008_v12  ;;  %v5010_v21 = vpop.eup %5009  ;;  %v8336_v37 = vld [vmem:[#allocation32_spill] sm:$0xff] }
 0x105   : > { %v1071_v9 = vadd.f32 %v1039_v4, %v8330_v39  ;;  %v4871_v39 = vld [vmem:[%s5773_s20 + $0x28] sm:$0xff]  ;;  %v1782_v30 = vmul.f32 1.442695, %v1744_v25  ;;  %vm1726_vm9 = vcmp.gt.f32.partialorder %v6213_v48, 0.0  ;;  %v851_v13 = vunpack.c.l.bf16 %v819_v55 }
 0x106   : > { %v6322_v62 = vadd.f32 %v5880_v23, %v1646_v7  ;;  %v6325_v20 = vadd.f32 %v5880_v23, %v1608_v31  ;;  %v850_v22 = vunpack.c.l.bf16 %v810_v45  ;;  %v1008_v12 = vpack.c.bf16 %v976_v51, %v976_v51 }
 0x107   : > { %v6301_v4 = vpop.f32.mrf.mxu2  ;;  %v1097_v24 = vpack.c.bf16 %v1071_v9, %v1070_v41  ;;  %v1648_v9 = vadd.f32 %v6203_v44, %v6191_v34  ;;  %v8335_v41 = vld [vmem:[#allocation23_spill] sm:$0xff]  ;;  %v1009_v25 = vpack.c.bf16 %v977_v18, %v977_v18  ;;  %vm1711_vm10 = vcmp.gt.f32.partialorder %v6223_v54, 0.0 }
 0x108   : > { %8332 = vst [vmem:[#allocation16_spill] sm:$0xff] %v6301_v4  ;;  %v6308_v49 = vpop.f32.mrf.mxu3  ;;  %v6314_v63 = vpop.f32.mrf.mxu0  ;;  %v8337_v36 = vpack.c.bf16 %v8335_v41, %v8336_v37  ;;  %5013 = vpow2.f32 %v1812_v10  ;;  %v1611_v55 = vadd.f32 %v6215_v16, %v6206_v28  ;;  %v1885_v44 = vsel %vm1725_vm7, %v6165_v26, %v4336_v19  ;;  %v8346_v34 = vld [vmem:[#allocation19_spill] sm:$0xff] }
 0x109   : > { %v1870_v31 = vsel %vm1710_vm8, %v6170_v42, %v4321_v35  ;;  %5015 = vpow2.f32 %v1782_v30  ;;  %v1651_v45 = vadd.f32 %v6254_v11, %v6245_v15  ;;  %v4337_v16 = vadd.f32 -1.0, %v5010_v21 }
 0x10a   : > { %v1615_v6 = vpop.f32.mrf.mxu1  ;;  %v1760_v18 = vmin.f32 %v6322_v62, 0.0  ;;  %v1745_v10 = vmin.f32 %v6325_v20, 0.0  ;;  %v6358_v19 = vadd.f32 %v5880_v23, %v1648_v9  ;;  %v1040_v35 = vunpack.c.l.bf16 %v1008_v12 }
 0x10b   : > { %3152 = vmatmul.bf16.gmra.mxu0 %v4871_v39  ;;  %v5012_v39 = vpop.eup %5011  ;;  %v1041_v30 = vunpack.c.l.bf16 %v1009_v25  ;;  %v6361_v21 = vmul.f32 %v5959_v57, %v1885_v44  ;;  %v6367_v41 = vadd.f32 %v5880_v23, %v1611_v55  ;;  %v1613_v37 = vadd.f32 %v6266_v5, %v6260_v2 }
 0x10c   : > { %2062 = vmatmul.bf16.gmra.mxu2 %v8337_v36  ;;  %v450_v36 = vld [vmem:[%s5580_s27 + $0x38] sm:$0xff]   ;;  %v4322_v9 = vadd.f32 -1.0, %v5012_v39  ;;  %vm1727_vm11 = vcmp.gt.f32.partialorder %v6258_v3, 0.0  ;;  %v6376_v12 = vadd.f32 %v5880_v23, %v1651_v45  ;;  %v1886_v55 = vsel %vm1726_vm9, %v6213_v48, %v4337_v16 }
 0x10d   : > { %2607 = vmatmul.bf16.gmra.mxu3 %v4815_v32  ;;  %3601 = vmatmul.bf16.gmra.mxu1 %v1097_v24  ;;  %v8338_v24 = vunpack.c.l.bf16 %v6116_v29  ;;  %v8341_v32 = vunpack.c.h.bf16 %v5978_v0  ;;  %8343 = vst [vmem:[#allocation52_spill] sm:$0xff] %v6361_v21  ;;  %vm1712_vm12 = vcmp.gt.f32.partialorder %v6264_v8, 0.0  ;;  %v1814_v5 = vmul.f32 1.442695, %v1760_v18  ;;  %v8357_v0 = vld [vmem:[#allocation13_spill] sm:$0xff] }
 0x10e   : > { %v1653_v39 = vadd.f32 %v6308_v49, %v6301_v4  ;;  %v1761_v45 = vmin.f32 %v6358_v19, 0.0  ;;  %v8345_v7 = vunpack.c.h.bf16 %v8329_v38  ;;  %v8347_v44 = vunpack.c.l.bf16 %v8346_v34 }
 0x10f   : > { %v6347_v51 = vmul.f32 %v8338_v24, %v851_v13  ;;  %v6351_v26 = vpop.f32.mrf.mxu2  ;;  %v6355_v42 = vmul.f32 %v8341_v32, %v850_v22  ;;  %v6364_v13 = vmul.f32 %v5959_v57, %v1870_v31  ;;  %v5014_v31 = vpop.eup %5013  ;;  %v1784_v24 = vmul.f32 1.442695, %v1745_v10 }
 0x110   : > { %8340 = vst [vmem:[#allocation32_spill] sm:$0xff] %v6351_v26  ;;  %v1655_v11 = vpop.f32.mrf.mxu3  ;;  %v6371_v22 = vpop.f32.mrf.mxu0  ;;  %v1072_v15 = vadd.f32 %v1040_v35, %v8345_v7  ;;  %v1073_v21 = vadd.f32 %v1041_v30, %v8347_v44  ;;  %v946_v14 = vunpack.c.l.bf16 %v450_v36  ;;  %v1746_v29 = vmin.f32 %v6367_v41, 0.0  ;;  %v4872_v44 = vld [vmem:[%s5773_s20 + $0x30] sm:$0xff] }
 0x111   : > { %8339 = vst [vmem:[#allocation23_spill] sm:$0xff] %v6347_v51  ;;  %v5016_v32 = vpop.eup %5015  ;;  %v6393_v48 = vadd.f32 %v5880_v23, %v1613_v37  ;;  %v1616_v16 = vadd.f32 %v1615_v6, %v6314_v63  ;;  %v947_v18 = vunpack.c.h.bf16 %v450_v36  ;;  %v1871_v49 = vsel %vm1711_vm10, %v6223_v54, %v4322_v9 }
 0x112   : > { %8342 = vst [vmem:[#allocation51_spill] sm:$0xff] %v6355_v42  ;;  %v1617_v25 = vpop.f32.mrf.mxu1  ;;  %v4338_v10 = vadd.f32 -1.0, %v5014_v31  ;;  %v1762_v38 = vmin.f32 %v6376_v12, 0.0  ;;  %v1656_v34 = vadd.f32 %v1655_v11, %v6351_v26  ;;  %v4323_v7 = vadd.f32 -1.0, %v5016_v32 }
 0x113   : > { %8344 = vst [vmem:[#allocation53_spill] sm:$0xff] %v6371_v22  ;;  %5017 = vpow2.f32 %v1814_v5  ;;  %v6402_v35 = vadd.f32 %v5880_v23, %v1653_v39  ;;  %v1618_v30 = vadd.f32 %v1617_v25, %v6371_v22  ;;  %v1816_v6 = vmul.f32 1.442695, %v1761_v45  ;;  %v4816_v39 = vld [vmem:[%s5757_s11 + $0x30] sm:$0xff] }
 0x114   : > { %5019 = vpow2.f32 %v1784_v24  ;;  %v1098_v54 = vpack.c.bf16 %v1073_v21, %v1072_v15  ;;  %v978_v9 = vmul.f32 1.1015625, %v946_v14  ;;  %v1786_v31 = vmul.f32 1.442695, %v1746_v29 }
 0x115   : > { %v1747_v4 = vmin.f32 %v6393_v48, 0.0  ;;  %v6410_v11 = vadd.f32 %v5880_v23, %v1616_v16  ;;  %v979_v32 = vmul.f32 1.1015625, %v947_v18  ;;  %v6416_v25 = vmul.f32 %v5959_v57, %v1886_v55 }
 0x116   : > { %v6419_v24 = vmul.f32 %v5959_v57, %v1871_v49  ;;  %v1818_v45 = vmul.f32 1.442695, %v1762_v38  ;;  %v6422_v15 = vadd.f32 %v5880_v23, %v1656_v34  ;;  %v1887_v14 = vsel %vm1727_vm11, %v6258_v3, %v4338_v10  ;;  %v8351_v38 = vld [vmem:[#allocation34_spill] sm:$0xff]  ;;  %v8352_v34 = vld [vmem:[#allocation35_spill] sm:$0xff] }
 0x117   : > { %v6405_v37 = vpop.f32.mrf.mxu2  ;;  %8350 = vst [vmem:[#allocation55_spill] sm:$0xff] %v6416_v25  ;;  %v1763_v21 = vmin.f32 %v6402_v35, 0.0  ;;  %v6429_v16 = vadd.f32 %v5880_v23, %v1618_v30  ;;  %v1872_v18 = vsel %vm1712_vm12, %v6264_v8, %v4323_v7  ;;  %vm1728_vm13 = vcmp.gt.f32.partialorder %v6322_v62, 0.0 }
 0x118   : > { %8348 = vst [vmem:[#allocation19_spill] sm:$0xff] %v6405_v37  ;;  %v1657_v36 = vpop.f32.mrf.mxu3  ;;  %v6412_v5 = vpop.f32.mrf.mxu0  ;;  %5021 = vpow2.f32 %v1816_v6  ;;  %v8353_v26 = vpack.c.bf16 %v8351_v38, %v8352_v34  ;;  %v1010_v3 = vpack.c.bf16 %v978_v9, %v978_v9  ;;  %v1788_v30 = vmul.f32 1.442695, %v1747_v4 }
 0x119   : > { %8349 = vst [vmem:[#allocation54_spill] sm:$0xff] %v6412_v5  ;;  %v1658_v55 = vadd.f32 %v1657_v36, %v6405_v37  ;;  %v5018_v10 = vpop.eup %5017  ;;  %5023 = vpow2.f32 %v1786_v31  ;;  %v1748_v36 = vmin.f32 %v6410_v11, 0.0  ;;  %v1011_v37 = vpack.c.bf16 %v979_v32, %v979_v32 }
 0x11a   : > { %v1620_v29 = vpop.f32.mrf.mxu1  ;;  %v5020_v8 = vpop.eup %5019  ;;  %v6442_v7 = vmul.f32 %v5959_v57, %v1887_v14  ;;  %vm1713_vm14 = vcmp.gt.f32.partialorder %v6325_v20, 0.0  ;;  %5025 = vpow2.f32 %v1818_v45  ;;  %v1820_v6 = vmul.f32 1.442695, %v1763_v21  ;;  %v452_v14 = vld [vmem:[%s5580_s27 + $0x40] sm:$0xff]  }
 0x11b   : > { %v1621_v49 = vadd.f32 %v1620_v29, %v6412_v5  ;;  %3157 = vmatmul.bf16.gmra.mxu0 %v4872_v44  ;;  %v1749_v44 = vmin.f32 %v6429_v16, 0.0  ;;  %v6448_v4 = vadd.f32 %v5880_v23, %v1658_v55  ;;  %v6455_v31 = vmul.f32 %v5959_v57, %v1872_v18 }
 0x11c   : > { %2067 = vmatmul.bf16.gmra.mxu2 %v8353_v26  ;;  %8354 = vst [vmem:[#allocation34_spill] sm:$0xff] %v6442_v7  ;;  %v1764_v26 = vmin.f32 %v6422_v15, 0.0  ;;  %v1042_v29 = vunpack.c.l.bf16 %v1010_v3  ;;  %5027 = vpow2.f32 %v1788_v30  ;;  %v1790_v21 = vmul.f32 1.442695, %v1748_v36 }
 0x11d   : > { %2612 = vmatmul.bf16.gmra.mxu3 %v4816_v39  ;;  %3606 = vmatmul.bf16.gmra.mxu1 %v1098_v54  ;;  %v4339_v39 = vadd.f32 -1.0, %v5018_v10  ;;  %v6458_v32 = vadd.f32 %v5880_v23, %v1621_v49  ;;  %v1043_v34 = vunpack.c.l.bf16 %v1011_v37  ;;  %v4324_v25 = vadd.f32 -1.0, %v5020_v8 }
 0x11e   : > { %v5022_v7 = vpop.eup %5021  ;;  %vm1729_vm15 = vcmp.gt.f32.partialorder %v6358_v19, 0.0  ;;  %vm1714_vm0 = vcmp.gt.f32.partialorder %v6367_v41, 0.0  ;;  %v1822_v18 = vmul.f32 1.442695, %v1764_v26  ;;  %5029 = vpow2.f32 %v1820_v6 }
 0x11f   : > { %v6450_v9 = vpop.f32.mrf.mxu2  ;;  %v5024_v49 = vpop.eup %5023  ;;  %v1792_v54 = vmul.f32 1.442695, %v1749_v44  ;;  %v1765_v3 = vmin.f32 %v6448_v4, 0.0  ;;  %v948_v30 = vunpack.c.l.bf16 %v452_v14  ;;  %v949_v8 = vunpack.c.h.bf16 %v452_v14 }
 0x120   : > { %8355 = vst [vmem:[#allocation35_spill] sm:$0xff] %v6450_v9  ;;  %v1660_v45 = vpop.f32.mrf.mxu3  ;;  %v6462_v38 = vpop.f32.mrf.mxu0  ;;  %v1888_v26 = vsel %vm1728_vm13, %v6322_v62, %v4339_v39  ;;  %5031 = vpow2.f32 %v1790_v21  ;;  %v8358_v6 = vunpack.c.l.bf16 %v8357_v0  ;;  %v8359_v5 = vunpack.c.h.bf16 %v8357_v0 }
 0x121   : > { %v1661_v55 = vadd.f32 %v1660_v45, %v6450_v9  ;;  %8356 = vst [vmem:[#allocation56_spill] sm:$0xff] %v6462_v38  ;;  %v5026_v36 = vpop.eup %5025  ;;  %v1750_v45 = vmin.f32 %v6458_v32, 0.0  ;;  %v4340_v42 = vadd.f32 -1.0, %v5022_v7  ;;  %v4325_v51 = vadd.f32 -1.0, %v5024_v49  ;;  %v4817_v49 = vld [vmem:[%s5757_s11 + $0x38] sm:$0xff] }
 0x122   : > { %v1622_v10 = vpop.f32.mrf.mxu1  ;;  %v1074_v44 = vadd.f32 %v1042_v29, %v8358_v6  ;;  %v1075_v22 = vadd.f32 %v1043_v34, %v8359_v5  ;;  %5033 = vpow2.f32 %v1822_v18  ;;  %v5028_v14 = vpop.eup %5027  ;;  %v1824_v62 = vmul.f32 1.442695, %v1765_v3  ;;  %v4873_v6 = vld [vmem:[%s5773_s20 + $0x38] sm:$0xff] }
 0x123   : > { %v6469_v9 = vadd.f32 %v5880_v23, %v1661_v55  ;;  %v1623_v37 = vadd.f32 %v1622_v10, %v6462_v38  ;;  %v1873_v55 = vsel %vm1713_vm14, %v6325_v20, %v4324_v25  ;;  %v4341_v10 = vadd.f32 -1.0, %v5026_v36 }
 0x124   : > { %5035 = vpow2.f32 %v1792_v54  ;;  %v980_v21 = vmul.f32 1.1015625, %v948_v30  ;;  %v1794_v29 = vmul.f32 1.442695, %v1750_v45  ;;  %v981_v20 = vmul.f32 1.1015625, %v949_v8  ;;  %v5030_v25 = vpop.eup %5029 }
 0x125   : > { %v1766_v0 = vmin.f32 %v6469_v9, 0.0  ;;  %v6486_v5 = vadd.f32 %v5880_v23, %v1623_v37  ;;  %v6490_v7 = vmul.f32 %v5959_v57, %v1888_v26  ;;  %v6493_v18 = vmul.f32 %v5959_v57, %v1873_v55 }
 0x126   : > { %vm1730_vm1 = vcmp.gt.f32.partialorder %v6376_v12, 0.0  ;;  %v1099_v3 = vpack.c.bf16 %v1075_v22, %v1074_v44  ;;  %v1889_v30 = vsel %vm1729_vm15, %v6358_v19, %v4340_v42  ;;  %v1874_v36 = vsel %vm1714_vm0, %v6367_v41, %v4325_v51  ;;  %v5032_v8 = vpop.eup %5031  ;;  %v454_v41 = vld [vmem:[%s5580_s27 + $0x48] sm:$0xff]  }
 0x127   : > { %v6482_v39 = vpop.f32.mrf.mxu2  ;;  %8361 = vst [vmem:[#allocation57_spill] sm:$0xff] %v6490_v7  ;;  %vm1715_vm2 = vcmp.gt.f32.partialorder %v6393_v48, 0.0  ;;  %v4326_v45 = vadd.f32 -1.0, %v5028_v14  ;;  %v1890_v26 = vsel %vm1730_vm1, %v6376_v12, %v4341_v10  ;;  %5037 = vpow2.f32 %v1824_v62 }
 0x128   : > { %8360 = vst [vmem:[#allocation13_spill] sm:$0xff] %v6482_v39  ;;  %v1662_v34 = vpop.f32.mrf.mxu3  ;;  %v6496_v54 = vpop.f32.mrf.mxu0  ;;  %v1012_v22 = vpack.c.bf16 %v980_v21, %v980_v21  ;;  %5039 = vpow2.f32 %v1794_v29  ;;  %v1826_v7 = vmul.f32 1.442695, %v1766_v0  ;;  %v1751_v42 = vmin.f32 %v6486_v5, 0.0 }
 0x129   : > { %8362 = vst [vmem:[#allocation58_spill] sm:$0xff] %v6496_v54  ;;  %v5034_v44 = vpop.eup %5033  ;;  %v8363_v51 = vpack.c.bf16 %v6083_v52, %v5923_v60  ;;  %v1013_v19 = vpack.c.bf16 %v981_v20, %v981_v20  ;;  %v6514_v38 = vmul.f32 %v5959_v57, %v1889_v30  ;;  %v6517_v12 = vmul.f32 %v5959_v57, %v1874_v36 }
 0x12a   : > { %v1625_v37 = vpop.f32.mrf.mxu1  ;;  %v5036_v14 = vpop.eup %5035  ;;  %vm1731_vm3 = vcmp.gt.f32.partialorder %v6402_v35, 0.0  ;;  %v1875_v60 = vsel %vm1715_vm2, %v6393_v48, %v4326_v45  ;;  %v4342_v52 = vadd.f32 -1.0, %v5030_v25  ;;  %vm1716_vm4 = vcmp.gt.f32.partialorder %v6410_v11, 0.0 }
 0x12b   : > { %v1626_v55 = vadd.f32 %v1625_v37, %v6496_v54  ;;  %3162 = vmatmul.bf16.gmra.mxu0 %v4873_v6  ;;  %8364 = vst [vmem:[#allocation59_spill] sm:$0xff] %v6514_v38  ;;  %v1663_v62 = vadd.f32 %v1662_v34, %v6482_v39  ;;  %v6529_v21 = vmul.f32 %v5959_v57, %v1890_v26  ;;  %v4327_v29 = vadd.f32 -1.0, %v5032_v8  ;;  %v6549_v8 = vld [vmem:[%s8153_s7] ss:$0 sm:$0xff]  ;;  %v4819_v54 = vld [vmem:[%s5757_s11 + $0x48] sm:$0xff] }
 0x12c   : > { %2072 = vmatmul.bf16.gmra.mxu2 %v8363_v51  ;;  %v4343_v0 = vadd.f32 -1.0, %v5034_v44  ;;  %5041 = vpow2.f32 %v1826_v7  ;;  %v1796_v20 = vmul.f32 1.442695, %v1751_v42  ;;  %v1045_v30 = vunpack.c.l.bf16 %v1013_v19 }
 0x12d   : > { %v6521_v10 = vadd.f32 %v5880_v23, %v1626_v55  ;;  %2617 = vmatmul.bf16.gmra.mxu3 %v4817_v49  ;;  %3611 = vmatmul.bf16.gmra.mxu1 %v1099_v3  ;;  %8365 = vst [vmem:[#allocation60_spill] sm:$0xff] %v6529_v21  ;;  %v950_v23 = vunpack.c.l.bf16 %v454_v41  ;;  %v1044_v3 = vunpack.c.l.bf16 %v1012_v22  ;;  %v5038_v48 = vpop.eup %5037  ;;  %v6536_v25 = vmul.f32 %v5959_v57, %v1875_v60 }
 0x12e   : > { %vm1732_vm5 = vcmp.gt.f32.partialorder %v6422_v15, 0.0  ;;  %v4328_v34 = vadd.f32 -1.0, %v5036_v14  ;;  %v5040_v37 = vpop.eup %5039  ;;  %v1891_v7 = vsel %vm1731_vm3, %v6402_v35, %v4342_v52  ;;  %vm1717_vm6 = vcmp.gt.f32.partialorder %v6429_v16, 0.0  ;;  %v8370_v14 = vld [vmem:[#allocation22_spill] sm:$0xff] }
 0x12f   : > { %v6531_v6 = vpop.f32.mrf.mxu2  ;;  %8367 = vst [vmem:[#allocation62_spill] sm:$0xff] %v6536_v25  ;;  %v1752_v36 = vmin.f32 %v6521_v10, 0.0  ;;  %v6552_v26 = vadd.f32 %v6549_v8, %v1663_v62  ;;  %v951_v22 = vunpack.c.h.bf16 %v454_v41  ;;  %v1876_v44 = vsel %vm1716_vm4, %v6410_v11, %v4327_v29  ;;  %v8372_v62 = vld [vmem:[#allocation15_spill] sm:$0xff] }
 0x130   : > { %8366 = vst [vmem:[#allocation61_spill] sm:$0xff] %v6531_v6  ;;  %v6533_v49 = vpop.f32.mrf.mxu3  ;;  %v6540_v45 = vpop.f32.mrf.mxu0  ;;  %v1892_v42 = vsel %vm1732_vm5, %v6422_v15, %v4343_v0  ;;  %v982_v51 = vmul.f32 1.1015625, %v950_v23  ;;  %v4344_v19 = vadd.f32 -1.0, %v5038_v48  ;;  %5043 = vpow2.f32 %v1796_v20 }
 0x131   : > { %8368 = vst [vmem:[#allocation63_spill] sm:$0xff] %v6540_v45  ;;  %v8371_v60 = vunpack.c.l.bf16 %v8370_v14  ;;  %v8373_v41 = vunpack.c.l.bf16 %v8372_v62  ;;  %v1877_v21 = vsel %vm1717_vm6, %v6429_v16, %v4328_v34  ;;  %v4329_v11 = vadd.f32 -1.0, %v5040_v37 }
 0x132   : > { %8369 = vst [vmem:[#allocation64_spill] sm:$0xff] %v6552_v26  ;;  %v1627_v55 = vpop.f32.mrf.mxu1  ;;  %v1798_v29 = vmul.f32 1.442695, %v1752_v36  ;;  %v5042_v0 = vpop.eup %5041  ;;  %v6572_v23 = vmul.f32 %v5959_v57, %v1891_v7  ;;  %v6575_v20 = vmul.f32 %v5959_v57, %v1876_v44  ;;  %v983_v48 = vmul.f32 1.1015625, %v951_v22  ;;  %v6597_v22 = vld [vmem:[%s8153_s7 + $0x3] ss:$0 sm:$0xff] }
 0x133   : > { %v1628_v35 = vadd.f32 %v1627_v55, %v6540_v45  ;;  %v1076_v52 = vadd.f32 %v1044_v3, %v8371_v60  ;;  %v1077_v39 = vadd.f32 %v1045_v30, %v8373_v41  ;;  %v1767_v3 = vmin.f32 %v6552_v26, 0.0  ;;  %v4874_v44 = vld [vmem:[%s5773_s20 + $0x40] sm:$0xff] }
 0x134   : > { %8374 = vst [vmem:[#allocation22_spill] sm:$0xff] %v6572_v23  ;;  %vm1733_vm7 = vcmp.gt.f32.partialorder %v6448_v4, 0.0  ;;  %vm1718_vm8 = vcmp.gt.f32.partialorder %v6458_v32, 0.0  ;;  %v1014_v34 = vpack.c.bf16 %v982_v51, %v982_v51  ;;  %v6586_v36 = vmul.f32 %v5959_v57, %v1892_v42  ;;  %v4818_v51 = vld [vmem:[%s5757_s11 + $0x40] sm:$0xff] }
 0x135   : > { %v6569_v15 = vadd.f32 %v6549_v8, %v1628_v35  ;;  %8375 = vst [vmem:[#allocation15_spill] sm:$0xff] %v6575_v20  ;;  %v6589_v37 = vmul.f32 %v5959_v57, %v1877_v21  ;;  %v1893_v7 = vsel %vm1733_vm7, %v6448_v4, %v4344_v19  ;;  %v1100_v35 = vpack.c.bf16 %v1077_v39, %v1076_v52  ;;  %v6605_v4 = vld [vmem:[%s8153_s7 + $0x4] ss:$0 sm:$0xff]  ;;  %v4820_v20 = vld [vmem:[%s5757_s11 + $0x50] sm:$0xff] }
 0x136   : > { %8377 = vst [vmem:[#allocation66_spill] sm:$0xff] %v6586_v36  ;;  %v1878_v14 = vsel %vm1718_vm8, %v6458_v32, %v4329_v11  ;;  %vm1734_vm9 = vcmp.gt.f32.partialorder %v6469_v9, 0.0  ;;  %v4345_v42 = vadd.f32 -1.0, %v5042_v0  ;;  %5045 = vpow2.f32 %v1798_v29  ;;  %v5044_v19 = vpop.eup %5043  ;;  %v8380_v39 = vld [vmem:[#allocation8_spill] sm:$0xff] }
 0x137   : > { %v1753_v16 = vmin.f32 %v6569_v15, 0.0  ;;  %v6581_v30 = vpop.f32.mrf.mxu2  ;;  %8378 = vst [vmem:[#allocation67_spill] sm:$0xff] %v6589_v37  ;;  %vm1719_vm10 = vcmp.gt.f32.partialorder %v6486_v5, 0.0  ;;  %v1828_v60 = vmul.f32 1.442695, %v1767_v3  ;;  %v1015_v41 = vpack.c.bf16 %v983_v48, %v983_v48 }
 0x138   : > { %8376 = vst [vmem:[#allocation65_spill] sm:$0xff] %v6581_v30  ;;  %v6592_v55 = vpop.f32.mrf.mxu3  ;;  %v3128_v21 = vpop.f32.mrf.mxu0  ;;  %v6611_v11 = vmul.f32 %v5959_v57, %v1893_v7  ;;  %v1046_v36 = vunpack.c.l.bf16 %v1014_v34  ;;  %v6615_v23 = vmul.f32 %v5959_v57, %v1878_v14  ;;  %v6624_v3 = vstv %s6561_s25 }
 0x139   : > { %8379 = vst [vmem:[#allocation68_spill] sm:$0xff] %v6592_v55  ;;  %v3129_v52 = vadd.f32 %v3128_v21, %v8380_v39  ;;  %v1800_v29 = vmul.f32 1.442695, %v1753_v16  ;;  %v6621_v55 = vstv %s6559_s30  ;;  %v8383_v48 = vpack.c.bf16 %v5969_v47, %v6079_v53  ;;  %v456_v21 = vld [vmem:[%s5580_s27 + $0x50] sm:$0xff]   ;;  %v6645_v53 = vld [vmem:[%s8153_s7 + $0x1] ss:$0 sm:$0xff] }
 0x13a   : > { %v3577_v32 = vpop.f32.mrf.mxu1  ;;  %8381 = vst [vmem:[#allocation8_spill] sm:$0xff] %v6611_v11  ;;  %v1894_v16 = vsel %vm1734_vm9, %v6469_v9, %v4345_v42  ;;  %v4330_v34 = vadd.f32 -1.0, %v5044_v19  ;;  %v1666_v7 = vadd.f32 %v6533_v49, %v6531_v6  ;;  %5047 = vpow2.f32 %v1828_v60 }
 0x13b   : > { %v3578_v0 = vadd.f32 %v3577_v32, %v8380_v39  ;;  %8382 = vst [vmem:[#allocation69_spill] sm:$0xff] %v6615_v23  ;;  %v6618_v38 = vadd.f32 %v6597_v22, %v3129_v52  ;;  %3167 = vmatmul.bf16.gmra.mxu0 %v4874_v44  ;;  %vm1720_vm11 = vcmp.gt.f32.partialorder %v6521_v10, 0.0  ;;  %v1047_v9 = vunpack.c.l.bf16 %v1015_v41 }
 0x13c   : > { %2077 = vmatmul.bf16.gmra.mxu2 %v8383_v48  ;;  %v5046_v44 = vpop.eup %5045  ;;  %5049 = vpow2.f32 %v1800_v29  ;;  %v6649_v19 = vstv %s6583_s10  ;;  %v6661_v52 = vmul.f32 %v5959_v57, %v1894_v16  ;;  %v1879_v48 = vsel %vm1719_vm10, %v6486_v5, %v4330_v34  ;;  %v8388_v34 = vld [vmem:[#allocation10_spill] sm:$0xff]  ;;  %s370_s10 = sand.u32 1, %s5392_s14  }
 0x13d   : > { %v6637_v14 = vadd.f32 %v6605_v4, %v3578_v0  ;;  %2622 = vmatmul.bf16.gmra.mxu3 %v4818_v51  ;;  %3616 = vmatmul.bf16.gmra.mxu1 %v1100_v35  ;;  %v3277_v47 = vmin.f32 %v6618_v38, 0.0  ;;  %v6654_v35 = vld [vmem:[%s8153_s7 + $0x2] ss:$0 sm:$0xff]  ;;  %v8384_v51 = vunpack.c.h.bf16 %v8372_v62  ;;  %v952_v0 = vunpack.c.l.bf16 %v456_v21  ;;  %s6783_s19 = sshll.u32 %s370_s10, 8 }
 0x13e   : > { %8385 = vst [vmem:[#allocation70_spill] sm:$0xff] %v6661_v52  ;;  %v6668_v6 = vadd.f32 %v6549_v8, %v1666_v7  ;;  %v953_v7 = vunpack.c.h.bf16 %v456_v21  ;;  %vm1721_vm12 = vcmp.gt.f32.partialorder %v6569_v15, 0.0  ;;  %vm3245_vm13 = vcmp.gt.f32.partialorder %v6618_v38, 0.0  ;;  %s6809_s12 = scalar_lea.vmem [#allocation4], %s6783_s19  ;;  %s3985_s19 = scalar_lea.sflag [#allocation5], %s370_s10 }
 0x13f   : > { %v3726_v49 = vmin.f32 %v6637_v14, 0.0  ;;  %v2038_v42 = vpop.f32.mrf.mxu2  ;;  %v6658_v60 = vadd.f32 %v1046_v36, %v8384_v51  ;;  %v3309_v32 = vmul.f32 1.442695, %v3277_v47  ;;  %v4331_v51 = vadd.f32 -1.0, %v5046_v44 }
 0x140   : > { %v2039_v41 = vadd.f32 %v2038_v42, %v8380_v39  ;;  %v2583_v29 = vpop.f32.mrf.mxu3  ;;  %v3130_v36 = vpop.f32.mrf.mxu0  ;;  %v8386_v42 = vld [vmem:[#allocation24_spill] sm:$0xff]  ;;  %v6684_v44 = vstv %s6629_s26  ;;  %v985_v26 = vmul.f32 1.1015625, %v953_v7  ;;  %vm3694_vm14 = vcmp.gt.f32.partialorder %v6637_v14, 0.0  ;;  %s4922_s26 = sshll.u32 %s5481_s0, 8  ;;  %s3997_s0 = sshll.u32 %s6809_s12, 4  ;;  %s3998_s0 = int_to_ptr.vmem [resolvable:$true] %s3997_s0 }
 0x141   : > { %v3758_v11 = vmul.f32 1.442695, %v3726_v49  ;;  %v2584_v62 = vadd.f32 %v2583_v29, %v8380_v39  ;;  %5051 = vpow2.f32 %v3309_v32  ;;  %v8387_v52 = vunpack.c.l.bf16 %v8386_v42  ;;  %v6680_v49 = vpop.eup %5047  ;;  %s3996_s30 = scalar_lea.hbm %s8155_s9, %s4922_s26 }
 0x142   : > { %v6672_v16 = vadd.f32 %v6645_v53, %v2039_v41  ;;  %v3579_v47 = vpop.f32.mrf.mxu1  ;;  %v3131_v8 = vadd.f32 %v3130_v36, %v8388_v34  ;;  %8389 = vst [vmem:[#allocation24_spill] sm:$0xff] %v6680_v49  ;;  %v984_v41 = vmul.f32 1.1015625, %v952_v0  ;;  %v5050_v29 = vpop.eup %5049  ;;  %v6688_v42 = vmul.f32 %v5959_v57, %v1879_v48  ;;  %s3999_s25 = sshll.u32 %s3996_s30, 4  ;;  %s4000_s25 = int_to_ptr.hbm [resolvable:$true] %s3999_s25 }
 0x143   : > { %v1079_v30 = vadd.f32 %v1047_v9, %v8387_v52  ;;  %5053 = vpow2.f32 %v3758_v11  ;;  %v6677_v5 = vadd.f32 %v6654_v35, %v2584_v62  ;;  %v3580_v32 = vadd.f32 %v3579_v47, %v8388_v34 }
 0x144   : > { %v2187_v39 = vmin.f32 %v6672_v16, 0.0  ;;  %8390 = vst [vmem:[#allocation10_spill] sm:$0xff] %v6688_v42  ;;  %v6693_v21 = vadd.f32 %v6597_v22, %v3131_v8  ;;  %v1880_v52 = vsel %vm1720_vm11, %v6521_v10, %v4331_v51  ;;  %v4332_v42 = vadd.f32 -1.0, %v5050_v29  ;;  %v4875_v51 = vld [vmem:[%s5773_s20 + $0x48] sm:$0xff] }
 0x145   : > { %v2732_v9 = vmin.f32 %v6677_v5, 0.0  ;;  %v6699_v36 = vadd.f32 %v6605_v4, %v3580_v32  ;;  %v1101_v0 = vpack.c.bf16 %v1079_v30, %v6658_v60  ;;  %v6707_v23 = vmul.f32 %v5959_v57, %v1880_v52 }
 0x146   : > { %v2219_v62 = vmul.f32 1.442695, %v2187_v39  ;;  %v3278_v47 = vmin.f32 %v6693_v21, 0.0  ;;  %v1016_v39 = vpack.c.bf16 %v984_v41, %v984_v41  ;;  %v1017_v52 = vpack.c.bf16 %v985_v26, %v985_v26 }
 0x147   : > { %v2764_v48 = vmul.f32 1.442695, %v2732_v9  ;;  %v2040_v11 = vpop.f32.mrf.mxu2  ;;  %v5052_v8 = vpop.eup %5051  ;;  %v3727_v45 = vmin.f32 %v6699_v36, 0.0  ;;  %8391 = vst [vmem:[#allocation71_spill] sm:$0xff] %v6707_v23  ;;  %vm2155_vm15 = vcmp.gt.f32.partialorder %v6672_v16, 0.0  ;;  %vm2700_vm0 = vcmp.gt.f32.partialorder %v6677_v5, 0.0 }
 0x148   : > { %5055 = vpow2.f32 %v2219_v62  ;;  %v2585_v10 = vpop.f32.mrf.mxu3  ;;  %v3311_v30 = vmul.f32 1.442695, %v3278_v47  ;;  %v2041_v60 = vadd.f32 %v2040_v11, %v8388_v34  ;;  %v3133_v9 = vpop.f32.mrf.mxu0  ;;  %v4690_v7 = vadd.f32 -1.0, %v5052_v8  ;;  %v8394_v47 = vld [vmem:[#allocation12_spill] sm:$0xff] }
 0x149   : > { %v5054_v32 = vpop.eup %5053  ;;  %5057 = vpow2.f32 %v2764_v48  ;;  %v2586_v62 = vadd.f32 %v2585_v10, %v8388_v34  ;;  %v3760_v41 = vmul.f32 1.442695, %v3727_v45  ;;  %v6720_v11 = vsel %vm1721_vm12, %v6569_v15, %v4332_v42 }
 0x14a   : > { %v4772_v29 = vadd.f32 -1.0, %v5054_v32  ;;  %v3582_v37 = vpop.f32.mrf.mxu1  ;;  %v6715_v49 = vadd.f32 %v6645_v53, %v2041_v60  ;;  %8392 = vst [vmem:[#allocation72_spill] sm:$0xff] %v6720_v11  ;;  %v8393_v34 = vpack.c.bf16 %v6132_v43, %v6136_v46  ;;  %v1048_v45 = vunpack.c.l.bf16 %v1016_v39 }
 0x14b   : > { %v6724_v48 = vadd.f32 %v6654_v35, %v2586_v62  ;;  %3172 = vmatmul.bf16.gmra.mxu0 %v4875_v51  ;;  %5059 = vpow2.f32 %v3311_v30  ;;  %v3134_v8 = vadd.f32 %v3133_v9, %v8394_v47  ;;  %v3405_v42 = vsel %vm3245_vm13, %v6618_v38, %v4690_v7 }
 0x14c   : > { %2082 = vmatmul.bf16.gmra.mxu2 %v8393_v34  ;;  %v2188_v26 = vmin.f32 %v6715_v49, 0.0  ;;  %v3854_v43 = vsel %vm3694_vm14, %v6637_v14, %v4772_v29  ;;  %v3583_v10 = vadd.f32 %v3582_v37, %v8394_v47  ;;  %5061 = vpow2.f32 %v3760_v41 }
 0x14d   : > { %2627 = vmatmul.bf16.gmra.mxu3 %v4819_v54  ;;  %3621 = vmatmul.bf16.gmra.mxu1 %v1101_v0  ;;  %v2733_v46 = vmin.f32 %v6724_v48, 0.0  ;;  %v6741_v54 = vadd.f32 %v6597_v22, %v3134_v8  ;;  %v1049_v62 = vunpack.c.l.bf16 %v1017_v52  ;;  %vm3246_vm1 = vcmp.gt.f32.partialorder %v6693_v21, 0.0  ;;  %v8397_v52 = vld [vmem:[#allocation44_spill] sm:$0xff] }
 0x14e   : > { %v5056_v15 = vpop.eup %5055  ;;  %v2221_v32 = vmul.f32 1.442695, %v2188_v26  ;;  %v6744_v38 = vadd.f32 %v6605_v4, %v3583_v10  ;;  %v8395_v26 = vld [vmem:[#allocation17_spill] sm:$0xff]  ;;  %vm3695_vm2 = vcmp.gt.f32.partialorder %v6699_v36, 0.0  ;;  %vm2156_vm3 = vcmp.gt.f32.partialorder %v6715_v49, 0.0 }
 0x14f   : > { %v5058_v51 = vpop.eup %5057  ;;  %v4398_v39 = vadd.f32 -1.0, %v5056_v15  ;;  %v2043_v0 = vpop.f32.mrf.mxu2  ;;  %v2766_v60 = vmul.f32 1.442695, %v2733_v46  ;;  %v3279_v7 = vmin.f32 %v6741_v54, 0.0  ;;  %v8396_v8 = vunpack.c.l.bf16 %v8395_v26  ;;  %v6760_v46 = vld [vmem:[%s5580_s27 + $0x58] sm:$0xff]  }
 0x150   : > { %v4544_v30 = vadd.f32 -1.0, %v5058_v51  ;;  %v2044_v14 = vadd.f32 %v2043_v0, %v8394_v47  ;;  %v2588_v9 = vpop.f32.mrf.mxu3  ;;  %5063 = vpow2.f32 %v2221_v32  ;;  %v3135_v29 = vpop.f32.mrf.mxu0  ;;  %v3888_v51 = vmul.f32 %v6624_v3, %v3854_v43 }
 0x151   : > { %v2315_v37 = vsel %vm2155_vm15, %v6672_v16, %v4398_v39  ;;  %5065 = vpow2.f32 %v2766_v60  ;;  %v6757_v15 = vadd.f32 %v1048_v45, %v8396_v8  ;;  %v5060_v10 = vpop.eup %5059  ;;  %v3439_v16 = vmul.f32 %v6621_v55, %v3405_v42 }
 0x152   : > { %v2349_v41 = vmul.f32 %v6649_v19, %v2315_v37  ;;  %v2860_v34 = vsel %vm2700_vm0, %v6677_v5, %v4544_v30  ;;  %v3313_v5 = vmul.f32 1.442695, %v3279_v7  ;;  %v3728_v32 = vmin.f32 %v6744_v38, 0.0  ;;  %v3584_v42 = vpop.f32.mrf.mxu1  ;;  %v5062_v43 = vpop.eup %5061 }
 0x153   : > { %v2894_v45 = vmul.f32 %v6684_v44, %v2860_v34  ;;  %v6772_v0 = vadd.f32 %v6645_v53, %v2044_v14  ;;  %vm2701_vm4 = vcmp.gt.f32.partialorder %v6724_v48, 0.0  ;;  %v2589_v30 = vadd.f32 %v2588_v9, %v8394_v47  ;;  %v8399_v9 = vld [vmem:[#allocation20_spill] sm:$0xff] }
 0x154   : > { %v2381_v39 = vadd.f32 %v2349_v41, %v8397_v52  ;;  %v8398_v60 = vunpack.c.h.bf16 %v8395_v26  ;;  %v4691_v34 = vadd.f32 -1.0, %v5060_v10  ;;  %5067 = vpow2.f32 %v3313_v5  ;;  %v4876_v5 = vld [vmem:[%s5773_s20 + $0x50] sm:$0xff] }
 0x155   : > { %v3762_v14 = vmul.f32 1.442695, %v3728_v32  ;;  %v2189_v52 = vmin.f32 %v6772_v0, 0.0  ;;  %v6787_v47 = vadd.f32 %v6654_v35, %v2589_v30  ;;  %v3585_v26 = vadd.f32 %v3584_v42, %v8399_v9 }
 0x156   : > { %v6778_v37 = vadd.f32 %v1049_v62, %v8398_v60  ;;  %v2926_v41 = vadd.f32 %v2894_v45, %v2381_v39  ;;  %v5064_v8 = vpop.eup %5063  ;;  %v3136_v62 = vadd.f32 %v3135_v29, %v8399_v9  ;;  %v4773_v11 = vadd.f32 -1.0, %v5062_v43 }
 0x157   : > { %v2045_v60 = vpop.f32.mrf.mxu2  ;;  %v5066_v7 = vpop.eup %5065  ;;  %v4399_v39 = vadd.f32 -1.0, %v5064_v8  ;;  %5069 = vpow2.f32 %v3762_v14  ;;  %v2223_v32 = vmul.f32 1.442695, %v2189_v52  ;;  %v2734_v23 = vmin.f32 %v6787_v47, 0.0 }
 0x158   : > { %v3471_v57 = vadd.f32 %v3439_v16, %v2926_v41  ;;  %v2590_v10 = vpop.f32.mrf.mxu3  ;;  %v4545_v45 = vadd.f32 -1.0, %v5066_v7  ;;  %v2046_v30 = vadd.f32 %v2045_v60, %v8399_v9  ;;  %v6799_v16 = vadd.f32 %v6597_v22, %v3136_v62  ;;  %v3138_v43 = vpop.f32.mrf.mxu0 }
 0x159   : > { %v2316_v29 = vsel %vm2156_vm3, %v6715_v49, %v4399_v39  ;;  %v6802_v42 = vadd.f32 %v6605_v4, %v3585_v26  ;;  %5071 = vpow2.f32 %v2223_v32  ;;  %v2768_v14 = vmul.f32 1.442695, %v2734_v23 }
 0x15a   : > { %v3920_v25 = vadd.f32 %v3888_v51, %v3471_v57  ;;  %v2350_v7 = vmul.f32 %v6649_v19, %v2316_v29  ;;  %v2861_v41 = vsel %vm2701_vm4, %v6724_v48, %v4545_v45  ;;  %v5068_v57 = vpop.eup %5067  ;;  %v3406_v49 = vsel %vm3246_vm1, %v6693_v21, %v4691_v34  ;;  %v3587_v60 = vpop.f32.mrf.mxu1 }
 0x15b   : > { %v3855_v51 = vsel %vm3695_vm2, %v6699_v36, %v4773_v11  ;;  %vm3247_vm5 = vcmp.gt.f32.partialorder %v6741_v54, 0.0  ;;  %v3280_v8 = vmin.f32 %v6799_v16, 0.0  ;;  %v8400_v23 = vpack.c.bf16 %v6178_v58, %v6035_v61  ;;  %3177 = vmatmul.bf16.gmra.mxu0 %v4876_v5 }
 0x15c   : > { %3952 = vst [vmem:[%s6809_s12] sm:$0xff] %v3920_v25  ;;  %v2382_v48 = vadd.f32 %v2350_v7, %v6220_v50  ;;  %v2895_v25 = vmul.f32 %v6684_v44, %v2861_v41  ;;  %5073 = vpow2.f32 %v2768_v14  ;;  %v3729_v21 = vmin.f32 %v6802_v42, 0.0 }
 0x15d   : > { %2087 = vmatmul.bf16.gmra.mxu2 %v8400_v23  ;;  %2632 = vmatmul.bf16.gmra.mxu3 %v4820_v20  ;;  %v5070_v34 = vpop.eup %5069  ;;  %vm3696_vm6 = vcmp.gt.f32.partialorder %v6744_v38, 0.0  ;;  %v3315_v36 = vmul.f32 1.442695, %v3280_v8  ;;  %v6828_v11 = vadd.f32 %v6645_v53, %v2046_v30  ;;  %v2591_v52 = vadd.f32 %v2590_v10, %v8399_v9  ;;  %v8401_v9 = vld [vmem:[#allocation28_spill] sm:$0xff] }
 0x15e   : > { %v3440_v58 = vmul.f32 %v6621_v55, %v3406_v49  ;;  %v3889_v61 = vmul.f32 %v6624_v3, %v3855_v51  ;;  %v2927_v50 = vadd.f32 %v2895_v25, %v2382_v48  ;;  %v3764_v62 = vmul.f32 1.442695, %v3729_v21 }
 0x15f   : > { %vm2157_vm7 = vcmp.gt.f32.partialorder %v6772_v0, 0.0  ;;  %vm2702_vm8 = vcmp.gt.f32.partialorder %v6787_v47, 0.0  ;;  %v2190_v20 = vmin.f32 %v6828_v11, 0.0  ;;  %v6837_v26 = vadd.f32 %v6654_v35, %v2591_v52  ;;  %v5072_v39 = vpop.eup %5071  ;;  %v2048_v7 = vpop.f32.mrf.mxu2 }
 0x160   : > { %v3472_v5 = vadd.f32 %v3440_v58, %v2927_v50  ;;  %v4692_v45 = vadd.f32 -1.0, %v5068_v57  ;;  %5075 = vpow2.f32 %v3315_v36  ;;  %v3139_v10 = vadd.f32 %v3138_v43, %v8401_v9  ;;  %v2593_v41 = vpop.f32.mrf.mxu3  ;;  %v3140_v25 = vpop.f32.mrf.mxu0 }
 0x161   : > { %v4774_v32 = vadd.f32 -1.0, %v5070_v34  ;;  %v4400_v30 = vadd.f32 -1.0, %v5072_v39  ;;  %5077 = vpow2.f32 %v3764_v62  ;;  %v2225_v29 = vmul.f32 1.442695, %v2190_v20  ;;  %v4877_v39 = vld [vmem:[%s5773_s20 + $0x58] sm:$0xff] }
 0x162   : > { %v5074_v14 = vpop.eup %5073  ;;  %v3921_v49 = vadd.f32 %v3889_v61, %v3472_v5  ;;  %v2735_v51 = vmin.f32 %v6837_v26, 0.0  ;;  %v6842_v8 = vadd.f32 %v6597_v22, %v3139_v10  ;;  %v3588_v23 = vadd.f32 %v3587_v60, %v8401_v9 }
 0x163   : > { %v2317_v43 = vsel %vm2157_vm7, %v6772_v0, %v4400_v30  ;;  %v4546_v57 = vadd.f32 -1.0, %v5074_v14  ;;  %5079 = vpow2.f32 %v2225_v29  ;;  %v1102_v48 = vpack.c.bf16 %v6778_v37, %v6757_v15  ;;  %v3589_v29 = vpop.f32.mrf.mxu1 }
 0x164   : > { %3953 = vst [vmem:[%s6809_s12 + $0x8] sm:$0xff] %v3921_v49  ;;  %v3407_v21 = vsel %vm3247_vm5, %v6741_v54, %v4692_v45  ;;  %v2351_v34 = vmul.f32 %v6649_v19, %v2317_v43  ;;  %v2770_v36 = vmul.f32 1.442695, %v2735_v51  ;;  %v3281_v52 = vmin.f32 %v6842_v8, 0.0 }
 0x165   : > { %v2862_v0 = vsel %vm2702_vm8, %v6787_v47, %v4546_v57  ;;  %v6860_v58 = vadd.f32 %v6605_v4, %v3588_v23  ;;  %3626 = vmatmul.bf16.gmra.mxu1 %v1102_v48  ;;  %v2049_v15 = vadd.f32 %v2048_v7, %v8401_v9  ;;  %v2594_v37 = vadd.f32 %v2593_v41, %v8401_v9  ;;  %v8402_v48 = vld [vmem:[#allocation38_spill] sm:$0xff] }
 0x166   : > { %v5076_v54 = vpop.eup %5075  ;;  %v3856_v61 = vsel %vm3696_vm6, %v6744_v38, %v4774_v32  ;;  %v2383_v50 = vadd.f32 %v2351_v34, %v6276_v17  ;;  %v2896_v62 = vmul.f32 %v6684_v44, %v2862_v0  ;;  %5081 = vpow2.f32 %v2770_v36  ;;  %v4821_v38 = vld [vmem:[%s5757_s11 + $0x58] sm:$0xff] }
 0x167   : > { %v5078_v47 = vpop.eup %5077  ;;  %vm3248_vm9 = vcmp.gt.f32.partialorder %v6799_v16, 0.0  ;;  %vm3697_vm10 = vcmp.gt.f32.partialorder %v6802_v42, 0.0  ;;  %v3317_v20 = vmul.f32 1.442695, %v3281_v52  ;;  %v3730_v60 = vmin.f32 %v6860_v58, 0.0  ;;  %v2050_v43 = vpop.f32.mrf.mxu2 }
 0x168   : > { %v3441_v5 = vmul.f32 %v6621_v55, %v3407_v21  ;;  %v2928_v45 = vadd.f32 %v2896_v62, %v2383_v50  ;;  %v6875_v9 = vadd.f32 %v6645_v53, %v2049_v15  ;;  %v6878_v17 = vadd.f32 %v6654_v35, %v2594_v37  ;;  %v2595_v57 = vpop.f32.mrf.mxu3  ;;  %v8403_v21 = vld [vmem:[#allocation46_spill] sm:$0xff]  ;;  %v8405_v15 = vld [vmem:[#allocation37_spill] sm:$0xff] }
 0x169   : > { %v5080_v10 = vpop.eup %5079  ;;  %v3890_v32 = vmul.f32 %v6624_v3, %v3856_v61  ;;  %vm2158_vm11 = vcmp.gt.f32.partialorder %v6828_v11, 0.0  ;;  %5083 = vpow2.f32 %v3317_v20  ;;  %v3766_v30 = vmul.f32 1.442695, %v3730_v60  ;;  %v3143_v20 = vpop.f32.mrf.mxu0 }
 0x16a   : > { %v3473_v7 = vadd.f32 %v3441_v5, %v2928_v45  ;;  %v4693_v41 = vadd.f32 -1.0, %v5076_v54  ;;  %v4401_v14 = vadd.f32 -1.0, %v5080_v10  ;;  %vm2703_vm12 = vcmp.gt.f32.partialorder %v6837_v26, 0.0 }
 0x16b   : > { %v4775_v49 = vadd.f32 -1.0, %v5078_v47  ;;  %5085 = vpow2.f32 %v3766_v30  ;;  %v2191_v51 = vmin.f32 %v6875_v9, 0.0  ;;  %v2736_v23 = vmin.f32 %v6878_v17, 0.0  ;;  %3182 = vmatmul.bf16.gmra.mxu0 %v4877_v39 }
 0x16c   : > { %v8404_v34 = vpack.c.bf16 %v8402_v48, %v8403_v21  ;;  %v5082_v36 = vpop.eup %5081  ;;  %v3922_v52 = vadd.f32 %v3890_v32, %v3473_v7  ;;  %v2318_v0 = vsel %vm2158_vm11, %v6828_v11, %v4401_v14  ;;  %vm3249_vm13 = vcmp.gt.f32.partialorder %v6842_v8, 0.0 }
 0x16d   : > { %v3141_v37 = vadd.f32 %v3140_v25, %v8405_v15  ;;  %v3590_v54 = vadd.f32 %v3589_v29, %v8405_v15  ;;  %2637 = vmatmul.bf16.gmra.mxu3 %v4821_v38  ;;  %v2352_v61 = vmul.f32 %v6649_v19, %v2318_v0  ;;  %v4547_v50 = vadd.f32 -1.0, %v5082_v36  ;;  %v8406_v29 = vld [vmem:[#allocation41_spill] sm:$0xff] }
 0x16e   : > { %2092 = vmatmul.bf16.gmra.mxu2 %v8404_v34  ;;  %v2227_v62 = vmul.f32 1.442695, %v2191_v51  ;;  %v2772_v47 = vmul.f32 1.442695, %v2736_v23  ;;  %3954 = vst [vmem:[%s6809_s12 + $0x10] sm:$0xff] %v3922_v52  ;;  %v2051_v11 = vadd.f32 %v2050_v43, %v8405_v15  ;;  %v2596_v25 = vadd.f32 %v2595_v57, %v8405_v15 }
 0x16f   : > { %v6898_v60 = vadd.f32 %v6597_v22, %v3141_v37  ;;  %v6901_v39 = vadd.f32 %v6605_v4, %v3590_v54  ;;  %v5084_v5 = vpop.eup %5083  ;;  %v3408_v45 = vsel %vm3248_vm9, %v6799_v16, %v4693_v41  ;;  %v2384_v38 = vadd.f32 %v2352_v61, %v6318_v27  ;;  %v3592_v37 = vpop.f32.mrf.mxu1 }
 0x170   : > { %v2863_v10 = vsel %vm2703_vm12, %v6837_v26, %v4547_v50  ;;  %5087 = vpow2.f32 %v2227_v62  ;;  %v3857_v32 = vsel %vm3697_vm10, %v6802_v42, %v4775_v49  ;;  %v3144_v7 = vadd.f32 %v3143_v20, %v8406_v29 }
 0x171   : > { %v2897_v30 = vmul.f32 %v6684_v44, %v2863_v10  ;;  %5089 = vpow2.f32 %v2772_v47  ;;  %v5086_v14 = vpop.eup %5085  ;;  %v4694_v51 = vadd.f32 -1.0, %v5084_v5  ;;  %v3282_v16 = vmin.f32 %v6898_v60, 0.0  ;;  %v2053_v10 = vpop.f32.mrf.mxu2 }
 0x172   : > { %v3731_v27 = vmin.f32 %v6901_v39, 0.0  ;;  %v6920_v41 = vadd.f32 %v6645_v53, %v2051_v11  ;;  %v3442_v26 = vmul.f32 %v6621_v55, %v3408_v45  ;;  %vm3698_vm14 = vcmp.gt.f32.partialorder %v6860_v58, 0.0 }
 0x173   : > { %v2929_v23 = vadd.f32 %v2897_v30, %v2384_v38  ;;  %v6925_v42 = vadd.f32 %v6654_v35, %v2596_v25  ;;  %v3891_v49 = vmul.f32 %v6624_v3, %v3857_v32  ;;  %v4776_v43 = vadd.f32 -1.0, %v5086_v14  ;;  %v4878_v25 = vld [vmem:[%s5773_s20 + $0x60] sm:$0xff]  ;;  %v2598_v32 = vpop.f32.mrf.mxu3 }
 0x174   : > { %v3319_v57 = vmul.f32 1.442695, %v3282_v16  ;;  %v3768_v48 = vmul.f32 1.442695, %v3731_v27  ;;  %vm2159_vm15 = vcmp.gt.f32.partialorder %v6875_v9, 0.0  ;;  %vm2704_vm0 = vcmp.gt.f32.partialorder %v6878_v17, 0.0 }
 0x175   : > { %v3474_v21 = vadd.f32 %v3442_v26, %v2929_v23  ;;  %v2192_v34 = vmin.f32 %v6920_v41, 0.0  ;;  %v3409_v52 = vsel %vm3249_vm13, %v6842_v8, %v4694_v51  ;;  %v2737_v0 = vmin.f32 %v6925_v42, 0.0  ;;  %v4822_v30 = vld [vmem:[%s5757_s11 + $0x60] sm:$0xff]  ;;  %v3145_v23 = vpop.f32.mrf.mxu0 }
 0x176   : > { %v5088_v36 = vpop.eup %5087  ;;  %5091 = vpow2.f32 %v3319_v57  ;;  %v6936_v15 = vadd.f32 %v6597_v22, %v3144_v7  ;;  %v3858_v47 = vsel %vm3698_vm14, %v6860_v58, %v4776_v43  ;;  %v3593_v45 = vadd.f32 %v3592_v37, %v8406_v29 }
 0x177   : > { %v5090_v54 = vpop.eup %5089  ;;  %v3923_v61 = vadd.f32 %v3891_v49, %v3474_v21  ;;  %v4402_v50 = vadd.f32 -1.0, %v5088_v36  ;;  %5093 = vpow2.f32 %v3768_v48  ;;  %v2229_v62 = vmul.f32 1.442695, %v2192_v34  ;;  %v8409_v34 = vld [vmem:[#allocation21_spill] sm:$0xff]  ;;  %v8410_v36 = vld [vmem:[#allocation48_spill] sm:$0xff] }
 0x178   : > { %v4548_v20 = vadd.f32 -1.0, %v5090_v54  ;;  %v2774_v11 = vmul.f32 1.442695, %v2737_v0  ;;  %v3283_v8 = vmin.f32 %v6936_v15, 0.0  ;;  %v955_v38 = vunpack.c.h.bf16 %v6760_v46 }
 0x179   : > { %3955 = vst [vmem:[%s6809_s12 + $0x18] sm:$0xff] %v3923_v61  ;;  %v2319_v5 = vsel %vm2159_vm15, %v6875_v9, %v4402_v50  ;;  %5095 = vpow2.f32 %v2229_v62  ;;  %v6956_v9 = vadd.f32 %v6605_v4, %v3593_v45  ;;  %v8407_v16 = vunpack.c.l.bf16 %v6760_v46 }
 0x17a   : > { %v2353_v58 = vmul.f32 %v6649_v19, %v2319_v5  ;;  %v2864_v7 = vsel %vm2704_vm0, %v6878_v17, %v4548_v20  ;;  %5097 = vpow2.f32 %v2774_v11  ;;  %v3321_v14 = vmul.f32 1.442695, %v3283_v8 }
 0x17b   : > { %v2898_v51 = vmul.f32 %v6684_v44, %v2864_v7  ;;  %v986_v27 = vmul.f32 1.1015625, %v8407_v16  ;;  %v987_v26 = vmul.f32 1.1015625, %v955_v38  ;;  %v8408_v43 = vmin.f32 %v6668_v6, 0.0  ;;  %3187 = vmatmul.bf16.gmra.mxu0 %v4878_v25 }
 0x17c   : > { %v5092_v49 = vpop.eup %5091  ;;  %v2385_v48 = vadd.f32 %v2353_v58, %v6364_v13  ;;  %v2054_v17 = vadd.f32 %v2053_v10, %v8406_v29  ;;  %v2599_v21 = vadd.f32 %v2598_v32, %v8406_v29  ;;  %v8411_v0 = vpack.c.bf16 %v8409_v34, %v8410_v36  ;;  %v3594_v32 = vpop.f32.mrf.mxu1 }
 0x17d   : > { %v6962_v57 = vmul.f32 1.442695, %v8408_v43  ;;  %v5094_v46 = vpop.eup %5093  ;;  %v3443_v37 = vmul.f32 %v6621_v55, %v3409_v52  ;;  %vm3250_vm1 = vcmp.gt.f32.partialorder %v6898_v60, 0.0  ;;  %v3732_v54 = vmin.f32 %v6956_v9, 0.0  ;;  %2642 = vmatmul.bf16.gmra.mxu3 %v4822_v30  ;;  %v8414_v43 = vld [vmem:[#allocation26_spill] sm:$0xff] }
 0x17e   : > { %2097 = vmatmul.bf16.gmra.mxu2 %v8411_v0  ;;  %v1018_v61 = vpack.c.bf16 %v986_v27, %v986_v27  ;;  %v3892_v13 = vmul.f32 %v6624_v3, %v3858_v47  ;;  %v2930_v50 = vadd.f32 %v2898_v51, %v2385_v48  ;;  %5099 = vpow2.f32 %v3321_v14  ;;  %v8412_v14 = vld [vmem:[#allocation31_spill] sm:$0xff]  ;;  %v2055_v0 = vpop.f32.mrf.mxu2 }
 0x17f   : > { %v1019_v62 = vpack.c.bf16 %v987_v26, %v987_v26  ;;  %v5096_v29 = vpop.eup %5095  ;;  %v4695_v20 = vadd.f32 -1.0, %v5092_v49  ;;  %v4777_v11 = vadd.f32 -1.0, %v5094_v46  ;;  %v6975_v25 = vadd.f32 %v6645_v53, %v2054_v17  ;;  %v2600_v46 = vpop.f32.mrf.mxu3 }
 0x180   : > { %v1050_v8 = vunpack.c.l.bf16 %v1018_v61  ;;  %v5098_v5 = vpop.eup %5097  ;;  %v3475_v52 = vadd.f32 %v3443_v37, %v2930_v50  ;;  %v4403_v45 = vadd.f32 -1.0, %v5096_v29  ;;  %v3770_v38 = vmul.f32 1.442695, %v3732_v54  ;;  %v3148_v61 = vpop.f32.mrf.mxu0 }
 0x181   : > { %v6978_v10 = vadd.f32 %v6654_v35, %v2599_v21  ;;  %vm3699_vm2 = vcmp.gt.f32.partialorder %v6901_v39, 0.0  ;;  %vm2160_vm3 = vcmp.gt.f32.partialorder %v6920_v41, 0.0  ;;  %v4549_v47 = vadd.f32 -1.0, %v5098_v5 }
 0x182   : > { %v1051_v30 = vunpack.c.l.bf16 %v1019_v62  ;;  %v3924_v58 = vadd.f32 %v3892_v13, %v3475_v52  ;;  %v2320_v7 = vsel %vm2160_vm3, %v6920_v41, %v4403_v45  ;;  %vm2705_vm4 = vcmp.gt.f32.partialorder %v6925_v42, 0.0 }
 0x183   : > { %v8413_v51 = vunpack.c.l.bf16 %v8412_v14  ;;  %v3410_v27 = vsel %vm3250_vm1, %v6898_v60, %v4695_v20  ;;  %v2354_v26 = vmul.f32 %v6649_v19, %v2320_v7  ;;  %v2865_v49 = vsel %vm2705_vm4, %v6925_v42, %v4549_v47 }
 0x184   : > { %v8415_v48 = vunpack.c.l.bf16 %v8414_v43  ;;  %v5100_v21 = vpop.eup %5099  ;;  %3956 = vst [vmem:[%s6809_s12 + $0x20] sm:$0xff] %v3924_v58  ;;  %v3859_v41 = vsel %vm3699_vm2, %v6901_v39, %v4777_v11  ;;  %5101 = vpow2.f32 %v3770_v38  ;;  %v2193_v34 = vmin.f32 %v6975_v25, 0.0 }
 0x185   : > { %v1082_v16 = vadd.f32 %v1050_v8, %v8413_v51  ;;  %v2738_v36 = vmin.f32 %v6978_v10, 0.0  ;;  %v2386_v60 = vadd.f32 %v2354_v26, %v6419_v24  ;;  %v2899_v37 = vmul.f32 %v6684_v44, %v2865_v49  ;;  %v4823_v51 = vld [vmem:[%s5757_s11 + $0x68] sm:$0xff] }
 0x186   : > { %v1083_v17 = vadd.f32 %v1051_v30, %v8415_v48  ;;  %v3146_v42 = vadd.f32 %v3145_v23, %v6154_v33  ;;  %v3444_v13 = vmul.f32 %v6621_v55, %v3410_v27  ;;  %v2231_v50 = vmul.f32 1.442695, %v2193_v34  ;;  %v3597_v30 = vpop.f32.mrf.mxu1  ;;  %v460_v48 = vld [vmem:[%s5580_s27 + $0x60] sm:$0xff]  }
 0x187   : > { %v2776_v62 = vmul.f32 1.442695, %v2738_v36  ;;  %v3595_v39 = vadd.f32 %v3594_v32, %v6154_v33  ;;  %v2931_v29 = vadd.f32 %v2899_v37, %v2386_v60  ;;  %v2056_v11 = vadd.f32 %v2055_v0, %v6154_v33 }
 0x188   : > { %v1103_v54 = vpack.c.bf16 %v1083_v17, %v1082_v16  ;;  %v7003_v20 = vadd.f32 %v6597_v22, %v3146_v42  ;;  %v2601_v24 = vadd.f32 %v2600_v46, %v6154_v33  ;;  %v3893_v8 = vmul.f32 %v6624_v3, %v3859_v41  ;;  %v4879_v16 = vld [vmem:[%s5773_s20 + $0x68] sm:$0xff] }
 0x189   : > { %5103 = vpow2.f32 %v2231_v50  ;;  %v7009_v23 = vadd.f32 %v6605_v4, %v3595_v39  ;;  %v3149_v5 = vadd.f32 %v3148_v61, %v6206_v28  ;;  %v3476_v52 = vadd.f32 %v3444_v13, %v2931_v29  ;;  %v2058_v13 = vpop.f32.mrf.mxu2  ;;  %v2603_v39 = vpop.f32.mrf.mxu3 }
 0x18a   : > { %3631 = vmatmul.bf16.gmra.mxu1 %v1103_v54  ;;  %v4696_v45 = vadd.f32 -1.0, %v5100_v21  ;;  %5105 = vpow2.f32 %v2776_v62  ;;  %v3284_v38 = vmin.f32 %v7003_v20, 0.0  ;;  %v5102_v32 = vpop.eup %5101  ;;  %vm3251_vm5 = vcmp.gt.f32.partialorder %v6936_v15, 0.0 }
 0x18b   : > { %vm3700_vm6 = vcmp.gt.f32.partialorder %v6956_v9, 0.0  ;;  %v3733_v33 = vmin.f32 %v7009_v23, 0.0  ;;  %v7017_v47 = vadd.f32 %v6645_v53, %v2056_v11  ;;  %v3925_v58 = vadd.f32 %v3893_v8, %v3476_v52  ;;  %3192 = vmatmul.bf16.gmra.mxu0 %v4879_v16 }
 0x18c   : > { %vm2161_vm7 = vcmp.gt.f32.partialorder %v6975_v25, 0.0  ;;  %v3323_v7 = vmul.f32 1.442695, %v3284_v38  ;;  %v7021_v14 = vadd.f32 %v6654_v35, %v2601_v24  ;;  %vm2706_vm8 = vcmp.gt.f32.partialorder %v6978_v10, 0.0 }
 0x18d   : > { %v3772_v27 = vmul.f32 1.442695, %v3733_v33  ;;  %v2194_v26 = vmin.f32 %v7017_v47, 0.0  ;;  %v7028_v49 = vadd.f32 %v6597_v22, %v3149_v5  ;;  %v8416_v17 = vpack.c.bf16 %v6305_v59, %v6105_v1  ;;  %3957 = vst [vmem:[%s6809_s12 + $0x28] sm:$0xff] %v3925_v58  ;;  %2647 = vmatmul.bf16.gmra.mxu3 %v4823_v51 }
 0x18e   : > { %v3411_v21 = vsel %vm3251_vm5, %v6936_v15, %v4696_v45  ;;  %5107 = vpow2.f32 %v3323_v7  ;;  %v2739_v41 = vmin.f32 %v7021_v14, 0.0  ;;  %v3598_v34 = vadd.f32 %v3597_v30, %v6206_v28  ;;  %v3150_v45 = vpop.f32.mrf.mxu0 }
 0x18f   : > { %2102 = vmatmul.bf16.gmra.mxu2 %v8416_v17  ;;  %v5104_v36 = vpop.eup %5103  ;;  %v4778_v22 = vadd.f32 -1.0, %v5102_v32  ;;  %5109 = vpow2.f32 %v3772_v27  ;;  %v2233_v0 = vmul.f32 1.442695, %v2194_v26  ;;  %v3285_v46 = vmin.f32 %v7028_v49, 0.0 }
 0x190   : > { %v5106_v1 = vpop.eup %5105  ;;  %v4404_v59 = vadd.f32 -1.0, %v5104_v36  ;;  %v2778_v60 = vmul.f32 1.442695, %v2739_v41  ;;  %v7042_v37 = vadd.f32 %v6605_v4, %v3598_v34  ;;  %v956_v15 = vunpack.c.l.bf16 %v460_v48  ;;  %v3599_v34 = vpop.f32.mrf.mxu1 }
 0x191   : > { %v3445_v54 = vmul.f32 %v6621_v55, %v3411_v21  ;;  %v4550_v42 = vadd.f32 -1.0, %v5106_v1  ;;  %5111 = vpow2.f32 %v2233_v0  ;;  %v957_v61 = vunpack.c.h.bf16 %v460_v48 }
 0x192   : > { %v2321_v50 = vsel %vm2161_vm7, %v6975_v25, %v4404_v59  ;;  %vm3252_vm9 = vcmp.gt.f32.partialorder %v7003_v20, 0.0  ;;  %5113 = vpow2.f32 %v2778_v60  ;;  %v3325_v62 = vmul.f32 1.442695, %v3285_v46 }
 0x193   : > { %v3860_v4 = vsel %vm3700_vm6, %v6956_v9, %v4778_v22  ;;  %v2355_v29 = vmul.f32 %v6649_v19, %v2321_v50  ;;  %v2866_v11 = vsel %vm2706_vm8, %v6978_v10, %v4550_v42  ;;  %v988_v24 = vmul.f32 1.1015625, %v956_v15 }
 0x194   : > { %v5108_v8 = vpop.eup %5107  ;;  %vm3701_vm10 = vcmp.gt.f32.partialorder %v7009_v23, 0.0  ;;  %v3734_v25 = vmin.f32 %v7042_v37, 0.0  ;;  %v989_v5 = vmul.f32 1.1015625, %v957_v61  ;;  %v2059_v52 = vadd.f32 %v2058_v13, %v6206_v28 }
 0x195   : > { %v5110_v38 = vpop.eup %5109  ;;  %v2387_v32 = vadd.f32 %v2355_v29, %v6455_v31  ;;  %v2900_v9 = vmul.f32 %v6684_v44, %v2866_v11  ;;  %v4697_v33 = vadd.f32 -1.0, %v5108_v8  ;;  %v1020_v30 = vpack.c.bf16 %v988_v24, %v988_v24 }
 0x196   : > { %v3894_v58 = vmul.f32 %v6624_v3, %v3860_v4  ;;  %5115 = vpow2.f32 %v3325_v62  ;;  %v1021_v10 = vpack.c.bf16 %v989_v5, %v989_v5  ;;  %v2604_v7 = vadd.f32 %v2603_v39, %v6206_v28  ;;  %v2605_v62 = vpop.f32.mrf.mxu3 }
 0x197   : > { %v5112_v51 = vpop.eup %5111  ;;  %v2932_v16 = vadd.f32 %v2900_v9, %v2387_v32  ;;  %vm2162_vm11 = vcmp.gt.f32.partialorder %v7017_v47, 0.0  ;;  %v1052_v27 = vunpack.c.l.bf16 %v1020_v30  ;;  %v7065_v26 = vadd.f32 %v6645_v53, %v2059_v52  ;;  %v8418_v53 = vld [vmem:[#allocation36_spill] sm:$0xff]  ;;  %v3153_v52 = vpop.f32.mrf.mxu0 }
 0x198   : > { %v5114_v48 = vpop.eup %5113  ;;  %v4779_v31 = vadd.f32 -1.0, %v5110_v38  ;;  %v4405_v17 = vadd.f32 -1.0, %v5112_v51  ;;  %v3774_v21 = vmul.f32 1.442695, %v3734_v25  ;;  %v1053_v41 = vunpack.c.l.bf16 %v1021_v10  ;;  %v7118_v30 = vld [vmem:[%s8153_s7 + $0x1] ss:$0 sm:$0xff] }
 0x199   : > { %v3477_v36 = vadd.f32 %v3445_v54, %v2932_v16  ;;  %v3412_v22 = vsel %vm3252_vm9, %v7003_v20, %v4697_v33  ;;  %v4551_v28 = vadd.f32 -1.0, %v5114_v48  ;;  %v8417_v0 = vunpack.c.h.bf16 %v8414_v43  ;;  %v2060_v43 = vpop.f32.mrf.mxu2  ;;  %v462_v48 = vld [vmem:[%s5580_s27 + $0x68] sm:$0xff]  }
 0x19a   : > { %v2322_v1 = vsel %vm2162_vm11, %v7017_v47, %v4405_v17  ;;  %vm2707_vm12 = vcmp.gt.f32.partialorder %v7021_v14, 0.0  ;;  %v8419_v59 = vunpack.c.l.bf16 %v8418_v53  ;;  %v7077_v15 = vadd.f32 %v6654_v35, %v2604_v7 }
 0x19b   : > { %v1084_v46 = vadd.f32 %v1052_v27, %v8417_v0  ;;  %v3926_v54 = vadd.f32 %v3894_v58, %v3477_v36  ;;  %v2356_v42 = vmul.f32 %v6649_v19, %v2322_v1  ;;  %v2867_v20 = vsel %vm2707_vm12, %v7021_v14, %v4551_v28  ;;  %v3602_v27 = vpop.f32.mrf.mxu1 }
 0x19c   : > { %v1085_v60 = vadd.f32 %v1053_v41, %v8419_v59  ;;  %v2195_v61 = vmin.f32 %v7065_v26, 0.0  ;;  %v5116_v13 = vpop.eup %5115  ;;  %v3446_v50 = vmul.f32 %v6621_v55, %v3412_v22  ;;  %vm3253_vm13 = vcmp.gt.f32.partialorder %v7028_v49, 0.0  ;;  %v4824_v41 = vld [vmem:[%s5757_s11 + $0x70] sm:$0xff] }
 0x19d   : > { %5117 = vpow2.f32 %v3774_v21  ;;  %3958 = vst [vmem:[%s6809_s12 + $0x30] sm:$0xff] %v3926_v54  ;;  %v3861_v39 = vsel %vm3701_vm10, %v7009_v23, %v4779_v31  ;;  %v2388_v4 = vadd.f32 %v2356_v42, %v6493_v18  ;;  %v2901_v14 = vmul.f32 %v6684_v44, %v2867_v20  ;;  %2652 = vmatmul.bf16.gmra.mxu3 %v4824_v41 }
 0x19e   : > { %v1104_v47 = vpack.c.bf16 %v1085_v60, %v1084_v46  ;;  %v2235_v29 = vmul.f32 1.442695, %v2195_v61  ;;  %v8420_v11 = vpack.c.bf16 %v6158_v56, %v6290_v40  ;;  %v2740_v24 = vmin.f32 %v7077_v15, 0.0  ;;  %v7102_v56 = vld [vmem:[%s8153_s7 + $0x3] ss:$0 sm:$0xff] }
 0x19f   : > { %v3151_v8 = vadd.f32 %v3150_v45, %v6260_v2  ;;  %v3600_v25 = vadd.f32 %v3599_v34, %v6260_v2  ;;  %v2061_v5 = vadd.f32 %v2060_v43, %v6260_v2  ;;  %v2933_v23 = vadd.f32 %v2901_v14, %v2388_v4  ;;  %v7110_v45 = vld [vmem:[%s8153_s7 + $0x4] ss:$0 sm:$0xff]  ;;  %v4880_v34 = vld [vmem:[%s5773_s20 + $0x70] sm:$0xff] }
 0x1a0   : > { %2107 = vmatmul.bf16.gmra.mxu2 %v8420_v11  ;;  %3636 = vmatmul.bf16.gmra.mxu1 %v1104_v47  ;;  %v4698_v38 = vadd.f32 -1.0, %v5116_v13  ;;  %5119 = vpow2.f32 %v2235_v29  ;;  %v2606_v18 = vadd.f32 %v2605_v62, %v6260_v2  ;;  %v3895_v32 = vmul.f32 %v6624_v3, %v3861_v39 }
 0x1a1   : > { %v2780_v9 = vmul.f32 1.442695, %v2740_v24  ;;  %v7105_v40 = vadd.f32 %v7102_v56, %v3151_v8  ;;  %v7113_v33 = vadd.f32 %v7110_v45, %v3600_v25  ;;  %v3478_v2 = vadd.f32 %v3446_v50, %v2933_v23  ;;  %v2063_v59 = vpop.f32.mrf.mxu2  ;;  %3197 = vmatmul.bf16.gmra.mxu0 %v4880_v34  ;;  %v2608_v25 = vpop.f32.mrf.mxu3 }
 0x1a2   : > { %v7121_v58 = vadd.f32 %v7118_v30, %v2061_v5  ;;  %v7124_v10 = vadd.f32 %v6654_v35, %v2606_v18  ;;  %v3154_v7 = vadd.f32 %v3153_v52, %v6314_v63  ;;  %vm3702_vm14 = vcmp.gt.f32.partialorder %v7042_v37, 0.0  ;;  %v3155_v23 = vpop.f32.mrf.mxu0 }
 0x1a3   : > { %v5118_v51 = vpop.eup %5117  ;;  %vm2163_vm15 = vcmp.gt.f32.partialorder %v7065_v26, 0.0  ;;  %5121 = vpow2.f32 %v2780_v9  ;;  %v3286_v16 = vmin.f32 %v7105_v40, 0.0  ;;  %v3927_v31 = vadd.f32 %v3895_v32, %v3478_v2 }
 0x1a4   : > { %v3413_v17 = vsel %vm3253_vm13, %v7028_v49, %v4698_v38  ;;  %v3735_v35 = vmin.f32 %v7113_v33, 0.0  ;;  %v2196_v21 = vmin.f32 %v7121_v58, 0.0  ;;  %vm2708_vm0 = vcmp.gt.f32.partialorder %v7077_v15, 0.0 }
 0x1a5   : > { %v3327_v36 = vmul.f32 1.442695, %v3286_v16  ;;  %v2741_v22 = vmin.f32 %v7124_v10, 0.0  ;;  %v7141_v28 = vadd.f32 %v7102_v56, %v3154_v7  ;;  %3959 = vst [vmem:[%s6809_s12 + $0x38] sm:$0xff] %v3927_v31  ;;  %v3603_v49 = vadd.f32 %v3602_v27, %v6314_v63  ;;  %v8422_v16 = vld [vmem:[#allocation51_spill] sm:$0xff] }
 0x1a6   : > { %v5120_v0 = vpop.eup %5119  ;;  %v3776_v46 = vmul.f32 1.442695, %v3735_v35  ;;  %v2237_v1 = vmul.f32 1.442695, %v2196_v21  ;;  %v958_v53 = vunpack.c.l.bf16 %v462_v48  ;;  %v4780_v60 = vadd.f32 -1.0, %v5118_v51  ;;  %v8421_v51 = vld [vmem:[#allocation23_spill] sm:$0xff] }
 0x1a7   : > { %v4406_v54 = vadd.f32 -1.0, %v5120_v0  ;;  %5123 = vpow2.f32 %v3327_v36  ;;  %v2782_v42 = vmul.f32 1.442695, %v2741_v22  ;;  %v3287_v20 = vmin.f32 %v7141_v28, 0.0  ;;  %v8424_v36 = vld [vmem:[#allocation27_spill] sm:$0xff] }
 0x1a8   : > { %5125 = vpow2.f32 %v3776_v46  ;;  %v7147_v61 = vadd.f32 %v7110_v45, %v3603_v49  ;;  %v959_v43 = vunpack.c.h.bf16 %v462_v48  ;;  %v990_v47 = vmul.f32 1.1015625, %v958_v53 }
 0x1a9   : > { %v5122_v13 = vpop.eup %5121  ;;  %v2323_v50 = vsel %vm2163_vm15, %v7065_v26, %v4406_v54  ;;  %5127 = vpow2.f32 %v2237_v1  ;;  %v2064_v62 = vadd.f32 %v2063_v59, %v6314_v63  ;;  %v3329_v14 = vmul.f32 1.442695, %v3287_v20  ;;  %v3604_v1 = vpop.f32.mrf.mxu1 }
 0x1aa   : > { %v2357_v39 = vmul.f32 %v6649_v19, %v2323_v50  ;;  %v4552_v4 = vadd.f32 -1.0, %v5122_v13  ;;  %5129 = vpow2.f32 %v2782_v42  ;;  %v3862_v29 = vsel %vm3702_vm14, %v7042_v37, %v4780_v60 }
 0x1ab   : > { %v3736_v11 = vmin.f32 %v7147_v61, 0.0  ;;  %v991_v24 = vmul.f32 1.1015625, %v959_v43  ;;  %v1022_v8 = vpack.c.bf16 %v990_v47, %v990_v47  ;;  %5131 = vpow2.f32 %v3329_v14  ;;  %v2065_v43 = vpop.f32.mrf.mxu2 }
 0x1ac   : > { %v2389_v26 = vadd.f32 %v2357_v39, %v6517_v12  ;;  %v2868_v5 = vsel %vm2708_vm0, %v7077_v15, %v4552_v4  ;;  %v7163_v52 = vadd.f32 %v7118_v30, %v2064_v62  ;;  %v3447_v7 = vmul.f32 %v6621_v55, %v3413_v17  ;;  %v8427_v4 = vld [vmem:[#allocation53_spill] sm:$0xff] }
 0x1ad   : > { %v5124_v38 = vpop.eup %5123  ;;  %v2902_v18 = vmul.f32 %v6684_v44, %v2868_v5  ;;  %v3778_v37 = vmul.f32 1.442695, %v3736_v11  ;;  %v1023_v32 = vpack.c.bf16 %v991_v24, %v991_v24  ;;  %v1054_v9 = vunpack.c.l.bf16 %v1022_v8  ;;  %v2610_v8 = vpop.f32.mrf.mxu3 }
 0x1ae   : > { %v5126_v2 = vpop.eup %5125  ;;  %v3896_v12 = vmul.f32 %v6624_v3, %v3862_v29  ;;  %vm3254_vm1 = vcmp.gt.f32.partialorder %v7105_v40, 0.0  ;;  %v2197_v15 = vmin.f32 %v7163_v52, 0.0  ;;  %v8423_v27 = vpack.c.bf16 %v8421_v51, %v8422_v16  ;;  %v8428_v29 = vld [vmem:[#allocation62_spill] sm:$0xff] }
 0x1af   : > { %v5128_v48 = vpop.eup %5127  ;;  %v2934_v31 = vadd.f32 %v2902_v18, %v2389_v26  ;;  %v4699_v35 = vadd.f32 -1.0, %v5124_v38  ;;  %vm2164_vm2 = vcmp.gt.f32.partialorder %v7121_v58, 0.0  ;;  %v1055_v21 = vunpack.c.l.bf16 %v1023_v32  ;;  %v3158_v18 = vpop.f32.mrf.mxu0 }
 0x1b0   : > { %2112 = vmatmul.bf16.gmra.mxu2 %v8423_v27  ;;  %v5130_v41 = vpop.eup %5129  ;;  %v4407_v34 = vadd.f32 -1.0, %v5128_v48  ;;  %v8425_v17 = vunpack.c.l.bf16 %v8424_v36  ;;  %v2239_v0 = vmul.f32 1.442695, %v2197_v15  ;;  %v2609_v46 = vadd.f32 %v2608_v25, %v6314_v63  ;;  %v8429_v27 = vld [vmem:[#allocation54_spill] sm:$0xff] }
 0x1b1   : > { %v3479_v49 = vadd.f32 %v3447_v7, %v2934_v31  ;;  %vm2709_vm3 = vcmp.gt.f32.partialorder %v7124_v10, 0.0  ;;  %v4553_v53 = vadd.f32 -1.0, %v5130_v41  ;;  %5133 = vpow2.f32 %v3778_v37  ;;  %v5132_v59 = vpop.eup %5131  ;;  %v3607_v41 = vpop.f32.mrf.mxu1 }
 0x1b2   : > { %v1086_v22 = vadd.f32 %v1054_v9, %v8425_v17  ;;  %v4781_v60 = vadd.f32 -1.0, %v5126_v2  ;;  %v2324_v54 = vsel %vm2164_vm2, %v7121_v58, %v4407_v34  ;;  %v8426_v42 = vunpack.c.h.bf16 %v8424_v36  ;;  %v7190_v58 = vld [vmem:[%s8153_s7 + $0x2] ss:$0 sm:$0xff]  ;;  %v464_v34 = vld [vmem:[%s5580_s27 + $0x70] sm:$0xff]   ;;  %v4825_v36 = vld [vmem:[%s5757_s11 + $0x78] sm:$0xff] }
 0x1b3   : > { %5135 = vpow2.f32 %v2239_v0  ;;  %v3928_v13 = vadd.f32 %v3896_v12, %v3479_v49  ;;  %v3414_v63 = vsel %vm3254_vm1, %v7105_v40, %v4699_v35  ;;  %v2358_v50 = vmul.f32 %v6649_v19, %v2324_v54  ;;  %v4881_v17 = vld [vmem:[%s5773_s20 + $0x78] sm:$0xff]  ;;  %2657 = vmatmul.bf16.gmra.mxu3 %v4825_v36 }
 0x1b4   : > { %v1087_v20 = vadd.f32 %v1055_v21, %v8426_v42  ;;  %v2869_v47 = vsel %vm2709_vm3, %v7124_v10, %v4553_v53  ;;  %vm3703_vm4 = vcmp.gt.f32.partialorder %v7113_v33, 0.0  ;;  %v7193_v39 = vadd.f32 %v7190_v58, %v2609_v46  ;;  %3202 = vmatmul.bf16.gmra.mxu0 %v4881_v17 }
 0x1b5   : > { %v3156_v14 = vadd.f32 %v3155_v23, %v8427_v4  ;;  %3960 = vst [vmem:[%s6809_s12 + $0x40] sm:$0xff] %v3928_v13  ;;  %v2390_v40 = vadd.f32 %v2358_v50, %v8428_v29  ;;  %v2903_v11 = vmul.f32 %v6684_v44, %v2869_v47  ;;  %v3605_v10 = vadd.f32 %v3604_v1, %v8427_v4  ;;  %v2068_v47 = vpop.f32.mrf.mxu2 }
 0x1b6   : > { %v1105_v62 = vpack.c.bf16 %v1087_v20, %v1086_v22  ;;  %v2066_v24 = vadd.f32 %v2065_v43, %v8427_v4  ;;  %v3448_v25 = vmul.f32 %v6621_v55, %v3414_v63  ;;  %v3863_v26 = vsel %vm3703_vm4, %v7113_v33, %v4781_v60 }
 0x1b7   : > { %v4700_v5 = vadd.f32 -1.0, %v5132_v59  ;;  %v2742_v38 = vmin.f32 %v7193_v39, 0.0  ;;  %v5134_v23 = vpop.eup %5133  ;;  %v2935_v37 = vadd.f32 %v2903_v11, %v2390_v40  ;;  %v7205_v32 = vadd.f32 %v7102_v56, %v3156_v14  ;;  %v8430_v11 = vld [vmem:[#allocation15_spill] sm:$0xff] }
 0x1b8   : > { %3641 = vmatmul.bf16.gmra.mxu1 %v1105_v62  ;;  %v7208_v9 = vadd.f32 %v7110_v45, %v3605_v10  ;;  %v7211_v2 = vadd.f32 %v7118_v30, %v2066_v24  ;;  %vm3255_vm5 = vcmp.gt.f32.partialorder %v7141_v28, 0.0  ;;  %vm2165_vm6 = vcmp.gt.f32.partialorder %v7163_v52, 0.0  ;;  %v2613_v62 = vpop.f32.mrf.mxu3 }
 0x1b9   : > { %v5136_v7 = vpop.eup %5135  ;;  %v2784_v33 = vmul.f32 1.442695, %v2742_v38  ;;  %v2611_v12 = vadd.f32 %v2610_v8, %v8427_v4  ;;  %v3897_v15 = vmul.f32 %v6624_v3, %v3863_v26  ;;  %v3480_v51 = vadd.f32 %v3448_v25, %v2935_v37 }
 0x1ba   : > { %v4408_v16 = vadd.f32 -1.0, %v5136_v7  ;;  %v3159_v48 = vadd.f32 %v3158_v18, %v8429_v27  ;;  %v3415_v31 = vsel %vm3255_vm5, %v7141_v28, %v4700_v5  ;;  %v3288_v35 = vmin.f32 %v7205_v32, 0.0 }
 0x1bb   : > { %5137 = vpow2.f32 %v2784_v33  ;;  %v3737_v21 = vmin.f32 %v7208_v9, 0.0  ;;  %v3929_v22 = vadd.f32 %v3897_v15, %v3480_v51  ;;  %v4782_v0 = vadd.f32 -1.0, %v5134_v23  ;;  %v3160_v51 = vpop.f32.mrf.mxu0 }
 0x1bc   : > { %v2325_v46 = vsel %vm2165_vm6, %v7163_v52, %v4408_v16  ;;  %v2198_v1 = vmin.f32 %v7211_v2, 0.0  ;;  %v3331_v49 = vmul.f32 1.442695, %v3288_v35  ;;  %v7230_v59 = vadd.f32 %v7190_v58, %v2611_v12  ;;  %v3609_v16 = vpop.f32.mrf.mxu1 }
 0x1bd   : > { %v2359_v28 = vmul.f32 %v6649_v19, %v2325_v46  ;;  %v3780_v53 = vmul.f32 1.442695, %v3737_v21  ;;  %3961 = vst [vmem:[%s6809_s12 + $0x48] sm:$0xff] %v3929_v22  ;;  %v7234_v54 = vadd.f32 %v7102_v56, %v3159_v48  ;;  %v3608_v42 = vadd.f32 %v3607_v41, %v8429_v27  ;;  %v8431_v21 = vld [vmem:[#allocation40_spill] sm:$0xff] }
 0x1be   : > { %v2241_v60 = vmul.f32 1.442695, %v2198_v1  ;;  %v960_v20 = vunpack.c.l.bf16 %v464_v34  ;;  %v3449_v52 = vmul.f32 %v6621_v55, %v3415_v31  ;;  %vm3704_vm7 = vcmp.gt.f32.partialorder %v7147_v61, 0.0 }
 0x1bf   : > { %5139 = vpow2.f32 %v3331_v49  ;;  %v2743_v43 = vmin.f32 %v7230_v59, 0.0  ;;  %v3864_v13 = vsel %vm3704_vm7, %v7147_v61, %v4782_v0  ;;  %v3289_v63 = vmin.f32 %v7234_v54, 0.0  ;;  %v8433_v49 = vld [vmem:[#allocation30_spill] sm:$0xff] }
 0x1c0   : > { %5141 = vpow2.f32 %v3780_v53  ;;  %v7243_v50 = vadd.f32 %v7110_v45, %v3608_v42  ;;  %v961_v29 = vunpack.c.h.bf16 %v464_v34  ;;  %v992_v40 = vmul.f32 1.1015625, %v960_v20 }
 0x1c1   : > { %v5138_v4 = vpop.eup %5137  ;;  %5143 = vpow2.f32 %v2241_v60  ;;  %v2786_v14 = vmul.f32 1.442695, %v2743_v43  ;;  %v2391_v10 = vadd.f32 %v2359_v28, %v8430_v11  ;;  %vm2710_vm8 = vcmp.gt.f32.partialorder %v7193_v39, 0.0  ;;  %v8436_v11 = vld [vmem:[#allocation24_spill] sm:$0xff] }
 0x1c2   : > { %v4554_v24 = vadd.f32 -1.0, %v5138_v4  ;;  %v3738_v61 = vmin.f32 %v7243_v50, 0.0  ;;  %v993_v8 = vmul.f32 1.1015625, %v961_v29  ;;  %v1024_v25 = vpack.c.bf16 %v992_v40, %v992_v40 }
 0x1c3   : > { %5145 = vpow2.f32 %v2786_v14  ;;  %v2069_v26 = vadd.f32 %v2068_v47, %v8429_v27  ;;  %v3898_v5 = vmul.f32 %v6624_v3, %v3864_v13  ;;  %v3333_v18 = vmul.f32 1.442695, %v3289_v63  ;;  %v8435_v13 = vld [vmem:[#allocation56_spill] sm:$0xff]  ;;  %v2070_v47 = vpop.f32.mrf.mxu2 }
 0x1c4   : > { %v2870_v38 = vsel %vm2710_vm8, %v7193_v39, %v4554_v24  ;;  %v2614_v23 = vadd.f32 %v2613_v62, %v8429_v27  ;;  %v1025_v33 = vpack.c.bf16 %v993_v8, %v993_v8  ;;  %v1056_v12 = vunpack.c.l.bf16 %v1024_v25  ;;  %v2615_v62 = vpop.f32.mrf.mxu3 }
 0x1c5   : > { %v5140_v37 = vpop.eup %5139  ;;  %v2904_v7 = vmul.f32 %v6684_v44, %v2870_v38  ;;  %v7254_v15 = vadd.f32 %v7118_v30, %v2069_v26  ;;  %vm3256_vm9 = vcmp.gt.f32.partialorder %v7205_v32, 0.0  ;;  %vm3705_vm10 = vcmp.gt.f32.partialorder %v7208_v9, 0.0 }
 0x1c6   : > { %v5142_v48 = vpop.eup %5141  ;;  %vm2166_vm11 = vcmp.gt.f32.partialorder %v7211_v2, 0.0  ;;  %vm2711_vm12 = vcmp.gt.f32.partialorder %v7230_v59, 0.0  ;;  %v3782_v31 = vmul.f32 1.442695, %v3738_v61  ;;  %v1057_v35 = vunpack.c.l.bf16 %v1025_v33  ;;  %v8437_v61 = vld [vmem:[#allocation67_spill] sm:$0xff] }
 0x1c7   : > { %v5144_v39 = vpop.eup %5143  ;;  %v2936_v27 = vadd.f32 %v2904_v7, %v2391_v10  ;;  %v8432_v41 = vunpack.c.l.bf16 %v8431_v21  ;;  %v4701_v36 = vadd.f32 -1.0, %v5140_v37  ;;  %v2199_v22 = vmin.f32 %v7254_v15, 0.0  ;;  %v3163_v37 = vpop.f32.mrf.mxu0 }
 0x1c8   : > { %v4409_v17 = vadd.f32 -1.0, %v5144_v39  ;;  %v7264_v0 = vadd.f32 %v7190_v58, %v2614_v23  ;;  %v4783_v28 = vadd.f32 -1.0, %v5142_v48  ;;  %5147 = vpow2.f32 %v3333_v18  ;;  %v3612_v7 = vpop.f32.mrf.mxu1 }
 0x1c9   : > { %v1088_v34 = vadd.f32 %v1056_v12, %v8432_v41  ;;  %v5146_v46 = vpop.eup %5145  ;;  %v3481_v1 = vadd.f32 %v3449_v52, %v2936_v27  ;;  %v8434_v53 = vunpack.c.l.bf16 %v8433_v49  ;;  %v2243_v43 = vmul.f32 1.442695, %v2199_v22 }
 0x1ca   : > { %v2326_v42 = vsel %vm2166_vm11, %v7211_v2, %v4409_v17  ;;  %v4555_v20 = vadd.f32 -1.0, %v5146_v46  ;;  %v3161_v63 = vadd.f32 %v3160_v51, %v8435_v13  ;;  %5149 = vpow2.f32 %v3782_v31  ;;  %v466_v31 = vld [vmem:[%s5580_s27 + $0x78] sm:$0xff]   ;;  %s5350_s27 = sshra.s32 %s4000_s25, 4  ;;  %s5351_s27 = int_to_ptr.hbm [resolvable:$true] %s5350_s27 }
 0x1cb   : > { %v1089_v60 = vadd.f32 %v1057_v35, %v8434_v53  ;;  %v3930_v4 = vadd.f32 %v3898_v5, %v3481_v1  ;;  %v2360_v14 = vmul.f32 %v6649_v19, %v2326_v42  ;;  %v3416_v29 = vsel %vm3256_vm9, %v7205_v32, %v4701_v36  ;;  %v2073_v42 = vpop.f32.mrf.mxu2  ;;  %s5352_s11 = scalar_lea.hbm %s5351_s27, 256  ;;  %p5357_p0 = scmp.lt.s32.totalorder %s5351_s27, %s8155_s9 }
 0x1cc   : > { %v2871_v40 = vsel %vm2711_vm12, %v7230_v59, %v4555_v20  ;;  %5151 = vpow2.f32 %v2243_v43  ;;  %v2744_v2 = vmin.f32 %v7264_v0, 0.0  ;;  %v7281_v10 = vadd.f32 -1.0, %v8436_v11  ;;  %v2618_v20 = vpop.f32.mrf.mxu3  ;;  %p5353_p11 = scmp.ne.s32.totalorder %s5351_s27, %s5352_s11  ;;  %p5358_p1 = scmp.lt.s32.totalorder %s5356_s24, %s5352_s11 }
 0x1cd   : > { %v1106_v52 = vpack.c.bf16 %v1089_v60, %v1088_v34  ;;  %3962 = vst [vmem:[%s6809_s12 + $0x50] sm:$0xff] %v3930_v4  ;;  %v3865_v24 = vsel %vm3705_vm10, %v7208_v9, %v4783_v28  ;;  %v2392_v8 = vadd.f32 %v2360_v14, %v8437_v61  ;;  %v2905_v25 = vmul.f32 %v6684_v44, %v2871_v40  ;;  %v8438_v34 = vld [vmem:[#allocation58_spill] sm:$0xff] }
 0x1ce   : > { %vm3257_vm13 = vcmp.gt.f32.partialorder %v7234_v54, 0.0  ;;  %v2788_v32 = vmul.f32 1.442695, %v2744_v2  ;;  %v7291_v59 = vadd.f32 %v7102_v56, %v3161_v63  ;;  %v3610_v26 = vadd.f32 %v3609_v16, %v8435_v13  ;;  %v5148_v5 = vpop.eup %5147  ;;  %p5354_p12 = pnand %p5353_p11, %p5498_p5  ;;  %p5359_p2 = por %p5358_p1, %p5357_p0 }
 0x1cf   : > { %3646 = vmatmul.bf16.gmra.mxu1 %v1106_v52  ;;  %v3450_v38 = vmul.f32 %v6621_v55, %v3416_v29  ;;  %v2937_v18 = vadd.f32 %v2905_v25, %v2392_v8  ;;  %vm3706_vm14 = vcmp.gt.f32.partialorder %v7243_v50, 0.0  ;;  %v2071_v9 = vadd.f32 %v2070_v47, %v8435_v13 }
 0x1d0   : > { %v2616_v23 = vadd.f32 %v2615_v62, %v8435_v13  ;;  %v3899_v33 = vmul.f32 %v6624_v3, %v3865_v24  ;;  %vm2167_vm15 = vcmp.gt.f32.partialorder %v7254_v15, 0.0  ;;  %5153 = vpow2.f32 %v2788_v32  ;;  %v5150_v51 = vpop.eup %5149  ;;  %v8439_v24 = vld [vmem:[#allocation69_spill] sm:$0xff]  ;;  %p5355_p13 = pneg %p5354_p12 }
 0x1d1   : > { %v3290_v12 = vmin.f32 %v7291_v59, 0.0  ;;  %v3482_v16 = vadd.f32 %v3450_v38, %v2937_v18  ;;  %v7302_v48 = vadd.f32 %v7110_v45, %v3610_v26  ;;  %v7305_v39 = vadd.f32 %v7118_v30, %v2071_v9  ;;  %v3165_v26 = vpop.f32.mrf.mxu0 }
 0x1d2   : > { %v7308_v27 = vadd.f32 %v7190_v58, %v2616_v23  ;;  %v5152_v35 = vpop.eup %5151  ;;  %v4702_v21 = vadd.f32 -1.0, %v5148_v5  ;;  %v3164_v36 = vadd.f32 %v3163_v37, %v8438_v34  ;;  %v3613_v17 = vadd.f32 %v3612_v7, %v8438_v34  ;;  %p5360_p3 = pnand %p5359_p2, %p5355_p13 }
 0x1d3   : > { %v3335_v41 = vmul.f32 1.442695, %v3290_v12  ;;  %v3931_v22 = vadd.f32 %v3899_v33, %v3482_v16  ;;  %v4410_v46 = vadd.f32 -1.0, %v5152_v35  ;;  %vm2712_vm0 = vcmp.gt.f32.partialorder %v7264_v0, 0.0  ;;  %v3614_v16 = vpop.f32.mrf.mxu1 }
 0x1d4   : > { %v3739_v1 = vmin.f32 %v7302_v48, 0.0  ;;  %v4784_v28 = vadd.f32 -1.0, %v5150_v51  ;;  %v2200_v53 = vmin.f32 %v7305_v39, 0.0  ;;  %v962_v60 = vunpack.c.l.bf16 %v466_v31 }
 0x1d5   : > { %5155 = vpow2.f32 %v3335_v41  ;;  %3963 = vst [vmem:[%s6809_s12 + $0x58] sm:$0xff] %v3931_v22  ;;  %v2327_v43 = vsel %vm2167_vm15, %v7254_v15, %v4410_v46  ;;  %v2745_v63 = vmin.f32 %v7308_v27, 0.0  ;;  %v7322_v47 = vadd.f32 %v7102_v56, %v3164_v36  ;;  %v2075_v46 = vpop.f32.mrf.mxu2 }
 0x1d6   : > { %v3784_v13 = vmul.f32 1.442695, %v3739_v1  ;;  %v5154_v62 = vpop.eup %5153  ;;  %v2361_v4 = vmul.f32 %v6649_v19, %v2327_v43  ;;  %v2245_v14 = vmul.f32 1.442695, %v2200_v53  ;;  %v7326_v52 = vadd.f32 %v7110_v45, %v3613_v17  ;;  %v2620_v1 = vpop.f32.mrf.mxu3 }
 0x1d7   : > { %v963_v29 = vunpack.c.h.bf16 %v466_v31  ;;  %v3417_v40 = vsel %vm3257_vm13, %v7234_v54, %v4702_v21  ;;  %v4556_v2 = vadd.f32 -1.0, %v5154_v62  ;;  %v2790_v15 = vmul.f32 1.442695, %v2745_v63  ;;  %v8441_v62 = vld [vmem:[#allocation42_spill] sm:$0xff] }
 0x1d8   : > { %5157 = vpow2.f32 %v3784_v13  ;;  %v3866_v11 = vsel %vm3706_vm14, %v7243_v50, %v4784_v28  ;;  %v2393_v61 = vadd.f32 %v2361_v4, %v8439_v24  ;;  %v3291_v8 = vmin.f32 %v7322_v47, 0.0 }
 0x1d9   : > { %5159 = vpow2.f32 %v2245_v14  ;;  %v2872_v25 = vsel %vm2712_vm0, %v7264_v0, %v4556_v2  ;;  %v3740_v32 = vmin.f32 %v7326_v52, 0.0  ;;  %v994_v54 = vmul.f32 1.1015625, %v962_v60 }
 0x1da   : > { %5161 = vpow2.f32 %v2790_v15  ;;  %v3451_v38 = vmul.f32 %v6621_v55, %v3417_v40  ;;  %v2906_v18 = vmul.f32 %v6684_v44, %v2872_v25  ;;  %v995_v50 = vmul.f32 1.1015625, %v963_v29  ;;  %v3168_v25 = vpop.f32.mrf.mxu0 }
 0x1db   : > { %v5156_v5 = vpop.eup %5155  ;;  %v2074_v9 = vadd.f32 %v2073_v42, %v8438_v34  ;;  %v3900_v23 = vmul.f32 %v6624_v3, %v3866_v11  ;;  %vm3258_vm1 = vcmp.gt.f32.partialorder %v7291_v59, 0.0  ;;  %v1026_v37 = vpack.c.bf16 %v994_v54, %v994_v54 }
 0x1dc   : > { %v2619_v0 = vadd.f32 %v2618_v20, %v8438_v34  ;;  %v2938_v7 = vadd.f32 %v2906_v18, %v2393_v61  ;;  %v3337_v33 = vmul.f32 1.442695, %v3291_v8  ;;  %v1027_v12 = vpack.c.bf16 %v995_v50, %v995_v50  ;;  %v8443_v61 = vld [vmem:[#allocation63_spill] sm:$0xff] }
 0x1dd   : > { %v7347_v51 = vadd.f32 %v7118_v30, %v2074_v9  ;;  %vm3707_vm2 = vcmp.gt.f32.partialorder %v7302_v48, 0.0  ;;  %vm2168_vm3 = vcmp.gt.f32.partialorder %v7305_v39, 0.0  ;;  %v3786_v35 = vmul.f32 1.442695, %v3740_v32  ;;  %v8444_v32 = vld [vmem:[#allocation10_spill] sm:$0xff] }
 0x1de   : > { %v5158_v31 = vpop.eup %5157  ;;  %v1058_v21 = vunpack.c.l.bf16 %v1026_v37  ;;  %v3483_v36 = vadd.f32 %v3451_v38, %v2938_v7  ;;  %v4703_v17 = vadd.f32 -1.0, %v5156_v5  ;;  %v1059_v22 = vunpack.c.l.bf16 %v1027_v12 }
 0x1df   : > { %v5160_v41 = vpop.eup %5159  ;;  %v7352_v34 = vadd.f32 %v7190_v58, %v2619_v0  ;;  %v4785_v53 = vadd.f32 -1.0, %v5158_v31  ;;  %v8440_v42 = vunpack.c.h.bf16 %v8433_v49  ;;  %v2201_v43 = vmin.f32 %v7347_v51, 0.0 }
 0x1e0   : > { %v5162_v28 = vpop.eup %5161  ;;  %v4411_v60 = vadd.f32 -1.0, %v5160_v41  ;;  %v3932_v13 = vadd.f32 %v3900_v23, %v3483_v36  ;;  %5163 = vpow2.f32 %v3337_v33  ;;  %v8442_v4 = vunpack.c.l.bf16 %v8441_v62  ;;  %v3617_v23 = vpop.f32.mrf.mxu1 }
 0x1e1   : > { %v1090_v20 = vadd.f32 %v1058_v21, %v8440_v42  ;;  %v4557_v63 = vadd.f32 -1.0, %v5162_v28  ;;  %vm2713_vm4 = vcmp.gt.f32.partialorder %v7308_v27, 0.0  ;;  %5165 = vpow2.f32 %v3786_v35  ;;  %v8445_v35 = vld [vmem:[#allocation9_spill] sm:$0xff]  ;;  %v2078_v41 = vpop.f32.mrf.mxu2  ;;  %v2623_v36 = vpop.f32.mrf.mxu3 }
 0x1e2   : > { %v1091_v14 = vadd.f32 %v1059_v22, %v8442_v4  ;;  %v2328_v29 = vsel %vm2168_vm3, %v7305_v39, %v4411_v60  ;;  %v2247_v40 = vmul.f32 1.442695, %v2201_v43  ;;  %3964 = vst [vmem:[%s6809_s12 + $0x60] sm:$0xff] %v3932_v13  ;;  %v2746_v11 = vmin.f32 %v7352_v34, 0.0 }
 0x1e3   : > { %v2362_v49 = vmul.f32 %v6649_v19, %v2328_v29  ;;  %v2873_v2 = vsel %vm2713_vm4, %v7308_v27, %v4557_v63  ;;  %v3418_v24 = vsel %vm3258_vm1, %v7291_v59, %v4703_v17  ;;  %v3867_v39 = vsel %vm3707_vm2, %v7302_v48, %v4785_v53 }
 0x1e4   : > { %v1107_v15 = vpack.c.bf16 %v1091_v14, %v1090_v20  ;;  %5167 = vpow2.f32 %v2247_v40  ;;  %v3166_v8 = vadd.f32 %v3165_v26, %v8443_v61  ;;  %v2907_v5 = vmul.f32 %v6684_v44, %v2873_v2 }
 0x1e5   : > { %v2394_v54 = vadd.f32 %v2362_v49, %v8444_v32  ;;  %v2792_v27 = vmul.f32 1.442695, %v2746_v11  ;;  %v3615_v38 = vadd.f32 %v3614_v16, %v8443_v61  ;;  %vm3259_vm5 = vcmp.gt.f32.partialorder %v7322_v47, 0.0 }
 0x1e6   : > { %3651 = vmatmul.bf16.gmra.mxu1 %v1107_v15  ;;  %v7379_v59 = vadd.f32 %v7102_v56, %v3166_v8  ;;  %v2076_v18 = vadd.f32 %v2075_v46, %v8443_v61  ;;  %v2621_v48 = vadd.f32 %v2620_v1, %v8443_v61  ;;  %v5164_v50 = vpop.eup %5163  ;;  %v3452_v26 = vmul.f32 %v6621_v55, %v3418_v24  ;;  %v3170_v15 = vpop.f32.mrf.mxu0 }
 0x1e7   : > { %v2939_v9 = vadd.f32 %v2907_v5, %v2394_v54  ;;  %vm3708_vm6 = vcmp.gt.f32.partialorder %v7326_v52, 0.0  ;;  %5169 = vpow2.f32 %v2792_v27  ;;  %v5166_v37 = vpop.eup %5165  ;;  %v3901_v0 = vmul.f32 %v6624_v3, %v3867_v39  ;;  %v8446_v39 = vld [vmem:[#allocation71_spill] sm:$0xff] }
 0x1e8   : > { %vm2169_vm7 = vcmp.gt.f32.partialorder %v7347_v51, 0.0  ;;  %v3292_v7 = vmin.f32 %v7379_v59, 0.0  ;;  %v7389_v33 = vadd.f32 %v7110_v45, %v3615_v38  ;;  %v7392_v16 = vadd.f32 %v7118_v30, %v2076_v18  ;;  %v8447_v38 = vld [vmem:[#allocation72_spill] sm:$0xff]  ;;  %v8448_v18 = vld [vmem:[#allocation29_spill] sm:$0xff] }
 0x1e9   : > { %v3484_v12 = vadd.f32 %v3452_v26, %v2939_v9  ;;  %v7395_v31 = vadd.f32 %v7190_v58, %v2621_v48  ;;  %v3169_v21 = vadd.f32 %v3168_v25, %v8445_v35  ;;  %v4704_v22 = vadd.f32 -1.0, %v5164_v50  ;;  %v8449_v9 = vld [vmem:[#allocation11_spill] sm:$0xff] }
 0x1ea   : > { %v5168_v17 = vpop.eup %5167  ;;  %v3339_v46 = vmul.f32 1.442695, %v3292_v7  ;;  %v3741_v1 = vmin.f32 %v7389_v33, 0.0  ;;  %v3618_v28 = vadd.f32 %v3617_v23, %v8445_v35  ;;  %v4786_v60 = vadd.f32 -1.0, %v5166_v37  ;;  %v2080_v7 = vpop.f32.mrf.mxu2 }
 0x1eb   : > { %v3933_v53 = vadd.f32 %v3901_v0, %v3484_v12  ;;  %v4412_v42 = vadd.f32 -1.0, %v5168_v17  ;;  %v2202_v20 = vmin.f32 %v7392_v16, 0.0  ;;  %vm2714_vm8 = vcmp.gt.f32.partialorder %v7352_v34, 0.0  ;;  %v2625_v12 = vpop.f32.mrf.mxu3 }
 0x1ec   : > { %5171 = vpow2.f32 %v3339_v46  ;;  %v3788_v43 = vmul.f32 1.442695, %v3741_v1  ;;  %v2747_v13 = vmin.f32 %v7395_v31, 0.0  ;;  %v7408_v14 = vadd.f32 %v7102_v56, %v3169_v21 }
 0x1ed   : > { %v5170_v63 = vpop.eup %5169  ;;  %3965 = vst [vmem:[%s6809_s12 + $0x68] sm:$0xff] %v3933_v53  ;;  %v2329_v62 = vsel %vm2169_vm7, %v7347_v51, %v4412_v42  ;;  %v2249_v4 = vmul.f32 1.442695, %v2202_v20  ;;  %v7411_v29 = vadd.f32 %v7110_v45, %v3618_v28  ;;  %v3419_v11 = vsel %vm3259_vm5, %v7322_v47, %v4704_v22 }
 0x1ee   : > { %v2363_v40 = vmul.f32 %v6649_v19, %v2329_v62  ;;  %v4558_v49 = vadd.f32 -1.0, %v5170_v63  ;;  %5173 = vpow2.f32 %v3788_v43  ;;  %v2794_v2 = vmul.f32 1.442695, %v2747_v13 }
 0x1ef   : > { %v3868_v51 = vsel %vm3708_vm6, %v7326_v52, %v4786_v60  ;;  %5175 = vpow2.f32 %v2249_v4  ;;  %v3293_v24 = vmin.f32 %v7408_v14, 0.0  ;;  %v3742_v25 = vmin.f32 %v7411_v29, 0.0  ;;  %v3619_v52 = vpop.f32.mrf.mxu1 }
 0x1f0   : > { %v2395_v61 = vadd.f32 %v2363_v40, %v8446_v39  ;;  %v2874_v8 = vsel %vm2714_vm8, %v7352_v34, %v4558_v49  ;;  %5177 = vpow2.f32 %v2794_v2  ;;  %v2079_v47 = vadd.f32 %v2078_v41, %v8445_v35  ;;  %v3173_v40 = vpop.f32.mrf.mxu0 }
 0x1f1   : > { %v2908_v32 = vmul.f32 %v6684_v44, %v2874_v8  ;;  %v3341_v54 = vmul.f32 1.442695, %v3293_v24  ;;  %v2624_v5 = vadd.f32 %v2623_v36, %v8445_v35  ;;  %v1915_v48 = vmul.f32 %v8448_v18, %v8447_v38 }
 0x1f2   : > { %v5172_v27 = vpop.eup %5171  ;;  %v3453_v50 = vmul.f32 %v6621_v55, %v3419_v11  ;;  %v3790_v26 = vmul.f32 1.442695, %v3742_v25  ;;  %v3171_v34 = vadd.f32 %v3170_v15, %v8449_v9  ;;  %v3902_v23 = vmul.f32 %v6624_v3, %v3868_v51 }
 0x1f3   : > { %v2940_v37 = vadd.f32 %v2908_v32, %v2395_v61  ;;  %vm3260_vm9 = vcmp.gt.f32.partialorder %v7379_v59, 0.0  ;;  %v7436_v0 = vadd.f32 %v7118_v30, %v2079_v47  ;;  %vm3709_vm10 = vcmp.gt.f32.partialorder %v7389_v33, 0.0 }
 0x1f4   : > { %v5174_v35 = vpop.eup %5173  ;;  %5179 = vpow2.f32 %v3341_v54  ;;  %v7440_v21 = vadd.f32 %v7190_v58, %v2624_v5  ;;  %v3620_v41 = vadd.f32 %v3619_v52, %v8449_v9  ;;  %vm2170_vm11 = vcmp.gt.f32.partialorder %v7392_v16, 0.0  ;;  %v2083_v52 = vpop.f32.mrf.mxu2 }
 0x1f5   : > { %v5176_v36 = vpop.eup %5175  ;;  %v3485_v17 = vadd.f32 %v3453_v50, %v2940_v37  ;;  %5181 = vpow2.f32 %v3790_v26  ;;  %v7445_v22 = vadd.f32 %v7102_v56, %v3171_v34  ;;  %v4705_v1 = vadd.f32 -1.0, %v5172_v27  ;;  %v2628_v27 = vpop.f32.mrf.mxu3  ;;  %v8450_v37 = vld [vmem:[#allocation18_spill] sm:$0xff] }
 0x1f6   : > { %v5178_v46 = vpop.eup %5177  ;;  %v4787_v28 = vadd.f32 -1.0, %v5174_v35  ;;  %v4413_v53 = vadd.f32 -1.0, %v5176_v36  ;;  %v2203_v60 = vmin.f32 %v7436_v0, 0.0  ;;  %vm2715_vm12 = vcmp.gt.f32.partialorder %v7395_v31, 0.0 }
 0x1f7   : > { %v3934_v42 = vadd.f32 %v3902_v23, %v3485_v17  ;;  %v4559_v20 = vadd.f32 -1.0, %v5178_v46  ;;  %v2748_v43 = vmin.f32 %v7440_v21, 0.0  ;;  %v7452_v62 = vadd.f32 %v7110_v45, %v3620_v41 }
 0x1f8   : > { %v2330_v13 = vsel %vm2170_vm11, %v7392_v16, %v4413_v53  ;;  %v2251_v63 = vmul.f32 1.442695, %v2203_v60  ;;  %v2081_v4 = vadd.f32 %v2080_v7, %v8449_v9  ;;  %v3294_v11 = vmin.f32 %v7445_v22, 0.0 }
 0x1f9   : > { %3966 = vst [vmem:[%s6809_s12 + $0x70] sm:$0xff] %v3934_v42  ;;  %v2364_v49 = vmul.f32 %v6649_v19, %v2330_v13  ;;  %v2875_v2 = vsel %vm2715_vm12, %v7395_v31, %v4559_v20  ;;  %v2796_v15 = vmul.f32 1.442695, %v2748_v43  ;;  %v3420_v16 = vsel %vm3260_vm9, %v7379_v59, %v4705_v1  ;;  %v3622_v31 = vpop.f32.mrf.mxu1  ;;  %v3175_v20 = vpop.f32.mrf.mxu0 }
 0x1fa   : > { %v5180_v51 = vpop.eup %5179  ;;  %v3869_v24 = vsel %vm3709_vm10, %v7389_v33, %v4787_v28  ;;  %vm3261_vm13 = vcmp.gt.f32.partialorder %v7408_v14, 0.0  ;;  %5183 = vpow2.f32 %v2251_v63  ;;  %v2909_v8 = vmul.f32 %v6684_v44, %v2875_v2  ;;  %v8451_v2 = vld [vmem:[#allocation47_spill] sm:$0xff] }
 0x1fb   : > { %v5182_v39 = vpop.eup %5181  ;;  %v2396_v61 = vadd.f32 %v2364_v49, %v1915_v48  ;;  %vm3710_vm14 = vcmp.gt.f32.partialorder %v7411_v29, 0.0  ;;  %vm2171_vm15 = vcmp.gt.f32.partialorder %v7436_v0, 0.0  ;;  %5185 = vpow2.f32 %v2796_v15 }
 0x1fc   : > { %v3343_v25 = vmul.f32 1.442695, %v3294_v11  ;;  %v3743_v59 = vmin.f32 %v7452_v62, 0.0  ;;  %v7471_v32 = vadd.f32 %v7118_v30, %v2081_v4  ;;  %v2626_v33 = vadd.f32 %v2625_v12, %v8449_v9 }
 0x1fd   : > { %v3454_v54 = vmul.f32 %v6621_v55, %v3420_v16  ;;  %v3903_v47 = vmul.f32 %v6624_v3, %v3869_v24  ;;  %v2941_v5 = vadd.f32 %v2909_v8, %v2396_v61  ;;  %vm2716_vm0 = vcmp.gt.f32.partialorder %v7440_v21, 0.0  ;;  %v2085_v61 = vpop.f32.mrf.mxu2 }
 0x1fe   : > { %v4706_v38 = vadd.f32 -1.0, %v5180_v51  ;;  %v4788_v48 = vadd.f32 -1.0, %v5182_v39  ;;  %v3792_v50 = vmul.f32 1.442695, %v3743_v59  ;;  %v2204_v26 = vmin.f32 %v7471_v32, 0.0 }
 0x1ff   : > { %v3486_v34 = vadd.f32 %v3454_v54, %v2941_v5  ;;  %v7479_v23 = vadd.f32 %v7190_v58, %v2626_v33  ;;  %v3174_v9 = vadd.f32 %v3173_v40, %v8450_v37  ;;  %v3623_v7 = vadd.f32 %v3622_v31, %v8450_v37 }
 0x200   : > { %v5184_v12 = vpop.eup %5183  ;;  %5187 = vpow2.f32 %v3343_v25  ;;  %v2253_v35 = vmul.f32 1.442695, %v2204_v26  ;;  %v2084_v41 = vadd.f32 %v2083_v52, %v8450_v37  ;;  %v2629_v36 = vadd.f32 %v2628_v27, %v8450_v37  ;;  %v8452_v26 = vld [vmem:[#allocation25_spill] sm:$0xff] }
 0x201   : > { %v5186_v17 = vpop.eup %5185  ;;  %v3935_v46 = vadd.f32 %v3903_v47, %v3486_v34  ;;  %v4414_v1 = vadd.f32 -1.0, %v5184_v12  ;;  %5189 = vpow2.f32 %v3792_v50  ;;  %v2749_v28 = vmin.f32 %v7479_v23, 0.0 }
 0x202   : > { %v4560_v53 = vadd.f32 -1.0, %v5186_v17  ;;  %5191 = vpow2.f32 %v2253_v35  ;;  %v7487_v60 = vadd.f32 %v7102_v56, %v3174_v9  ;;  %v7490_v42 = vadd.f32 %v7110_v45, %v3623_v7  ;;  %v3178_v35 = vpop.f32.mrf.mxu0  ;;  %v7545_v17 = vld [vmem:[%s8153_s7 + $0x4] ss:$0 sm:$0xff] }
 0x203   : > { %3967 = vst [vmem:[%s6809_s12 + $0x78] sm:$0xff] %v3935_v46  ;;  %v3421_v43 = vsel %vm3261_vm13, %v7408_v14, %v4706_v38  ;;  %v2331_v13 = vsel %vm2171_vm15, %v7436_v0, %v4414_v1  ;;  %v2798_v63 = vmul.f32 1.442695, %v2749_v28  ;;  %v7500_v4 = vadd.f32 %v7118_v30, %v2084_v41  ;;  %v3624_v0 = vpop.f32.mrf.mxu1  ;;  %v2630_v38 = vpop.f32.mrf.mxu3  ;;  %v8453_v28 = vld [vmem:[#allocation50_spill] sm:$0xff] }
 0x204   : > { %v3870_v56 = vsel %vm3710_vm14, %v7411_v29, %v4788_v48  ;;  %v2365_v45 = vmul.f32 %v6649_v19, %v2331_v13  ;;  %v2876_v40 = vsel %vm2716_vm0, %v7440_v21, %v4560_v53  ;;  %v7510_v14 = vadd.f32 %v7190_v58, %v2629_v36 }
 0x205   : > { %vm3262_vm1 = vcmp.gt.f32.partialorder %v7445_v22, 0.0  ;;  %vm3711_vm2 = vcmp.gt.f32.partialorder %v7452_v62, 0.0  ;;  %5193 = vpow2.f32 %v2798_v63  ;;  %v3295_v30 = vmin.f32 %v7487_v60, 0.0 }
 0x206   : > { %v5188_v49 = vpop.eup %5187  ;;  %v3455_v29 = vmul.f32 %v6621_v55, %v3421_v43  ;;  %v2397_v15 = vadd.f32 %v2365_v45, %v8451_v2  ;;  %v2910_v11 = vmul.f32 %v6684_v44, %v2876_v40  ;;  %v3744_v21 = vmin.f32 %v7490_v42, 0.0  ;;  %v8454_v45 = vld [vmem:[#allocation33_spill] sm:$0xff] }
 0x207   : > { %v5190_v51 = vpop.eup %5189  ;;  %v3904_v16 = vmul.f32 %v6624_v3, %v3870_v56  ;;  %vm2172_vm3 = vcmp.gt.f32.partialorder %v7471_v32, 0.0  ;;  %v3345_v24 = vmul.f32 1.442695, %v3295_v30  ;;  %v2205_v39 = vmin.f32 %v7500_v4, 0.0 }
 0x208   : > { %v5192_v8 = vpop.eup %5191  ;;  %v2942_v31 = vadd.f32 %v2910_v11, %v2397_v15  ;;  %vm2717_vm4 = vcmp.gt.f32.partialorder %v7479_v23, 0.0  ;;  %v3794_v25 = vmul.f32 1.442695, %v3744_v21  ;;  %v2750_v59 = vmin.f32 %v7510_v14, 0.0 }
 0x209   : > { %v4707_v33 = vadd.f32 -1.0, %v5188_v49  ;;  %v4415_v54 = vadd.f32 -1.0, %v5192_v8  ;;  %5195 = vpow2.f32 %v3345_v24  ;;  %v2255_v47 = vmul.f32 1.442695, %v2205_v39 }
 0x20a   : > { %v3487_v5 = vadd.f32 %v3455_v29, %v2942_v31  ;;  %v4789_v52 = vadd.f32 -1.0, %v5190_v51  ;;  %5197 = vpow2.f32 %v3794_v25  ;;  %v2800_v27 = vmul.f32 1.442695, %v2750_v59  ;;  %v8455_v25 = vld [vmem:[#allocation64_spill] sm:$0xff] }
 0x20b   : > { %v5194_v48 = vpop.eup %5193  ;;  %v2332_v50 = vsel %vm2172_vm3, %v7471_v32, %v4415_v54  ;;  %vm3263_vm5 = vcmp.gt.f32.partialorder %v7487_v60, 0.0  ;;  %5199 = vpow2.f32 %v2255_v47  ;;  %v3176_v34 = vadd.f32 %v3175_v20, %v8452_v26  ;;  %v7537_v32 = vld [vmem:[%s8153_s7 + $0x3] ss:$0 sm:$0xff]  ;;  %v3627_v30 = vpop.f32.mrf.mxu1 }
 0x20c   : > { %v3625_v37 = vadd.f32 %v3624_v0, %v8452_v26  ;;  %v3936_v9 = vadd.f32 %v3904_v16, %v3487_v5  ;;  %v2366_v7 = vmul.f32 %v6649_v19, %v2332_v50  ;;  %v4561_v12 = vadd.f32 -1.0, %v5194_v48  ;;  %v2088_v16 = vpop.f32.mrf.mxu2 }
 0x20d   : > { %5201 = vpow2.f32 %v2800_v27  ;;  %v3422_v41 = vsel %vm3262_vm1, %v7445_v22, %v4707_v33  ;;  %v7540_v36 = vadd.f32 %v7537_v32, %v3176_v34  ;;  %v2086_v1 = vadd.f32 %v2085_v61, %v8452_v26 }
 0x20e   : > { %v7548_v46 = vadd.f32 %v7545_v17, %v3625_v37  ;;  %3968 = vst [vmem:[%s6809_s12 + $0x80] sm:$0xff] %v3936_v9  ;;  %v3871_v22 = vsel %vm3711_vm2, %v7452_v62, %v4789_v52  ;;  %v2398_v53 = vadd.f32 %v2366_v7, %v8453_v28  ;;  %v2877_v20 = vsel %vm2717_vm4, %v7479_v23, %v4561_v12  ;;  %v7569_v23 = vld [vmem:[%s8153_s7 + $0x1] ss:$0 sm:$0xff]  ;;  %v8456_v9 = vld [vmem:[#allocation14_spill] sm:$0xff] }
 0x20f   : > { %v2631_v43 = vadd.f32 %v2630_v38, %v8452_v26  ;;  %v5196_v13 = vpop.eup %5195  ;;  %v2911_v63 = vmul.f32 %v6684_v44, %v2877_v20  ;;  %vm3712_vm6 = vcmp.gt.f32.partialorder %v7490_v42, 0.0  ;;  %v3296_v56 = vmin.f32 %v7540_v36, 0.0  ;;  %v2633_v38 = vpop.f32.mrf.mxu3 }
 0x210   : > { %v3179_v40 = vadd.f32 %v3178_v35, %v8454_v45  ;;  %v5198_v0 = vpop.eup %5197  ;;  %v4708_v62 = vadd.f32 -1.0, %v5196_v13  ;;  %vm2173_vm7 = vcmp.gt.f32.partialorder %v7500_v4, 0.0  ;;  %v3745_v49 = vmin.f32 %v7548_v46, 0.0 }
 0x211   : > { %v7572_v29 = vadd.f32 %v7569_v23, %v2086_v1  ;;  %v5200_v2 = vpop.eup %5199  ;;  %v3456_v15 = vmul.f32 %v6621_v55, %v3422_v41  ;;  %v3905_v11 = vmul.f32 %v6624_v3, %v3871_v22  ;;  %v2943_v21 = vadd.f32 %v2911_v63, %v2398_v53 }
 0x212   : > { %v3347_v51 = vmul.f32 1.442695, %v3296_v56  ;;  %v4790_v39 = vadd.f32 -1.0, %v5198_v0  ;;  %v4416_v61 = vadd.f32 -1.0, %v5200_v2  ;;  %v3796_v8 = vmul.f32 1.442695, %v3745_v49 }
 0x213   : > { %v5202_v24 = vpop.eup %5201  ;;  %v7577_v31 = vadd.f32 %v7190_v58, %v2631_v43  ;;  %vm1735_vm8 = vcmp.gt.f32.partialorder %v8455_v25, 0.0  ;;  %v3488_v59 = vadd.f32 %v3456_v15, %v2943_v21  ;;  %v7581_v54 = vadd.f32 %v7537_v32, %v3179_v40  ;;  %v3629_v43 = vpop.f32.mrf.mxu1  ;;  %v8457_v56 = vld [vmem:[#allocation39_spill] sm:$0xff]  ;;  %v8458_v0 = vld [vmem:[#allocation65_spill] sm:$0xff] }
 0x214   : > { %v4562_v33 = vadd.f32 -1.0, %v5202_v24  ;;  %v3628_v47 = vadd.f32 %v3627_v30, %v8454_v45  ;;  %v3423_v5 = vsel %vm3263_vm5, %v7487_v60, %v4708_v62  ;;  %v2333_v52 = vsel %vm2173_vm7, %v7500_v4, %v4416_v61  ;;  %v3180_v4 = vpop.f32.mrf.mxu0  ;;  %v8459_v62 = vld [vmem:[#allocation68_spill] sm:$0xff] }
 0x215   : > { %vm2718_vm9 = vcmp.gt.f32.partialorder %v7510_v14, 0.0  ;;  %v2206_v27 = vmin.f32 %v7572_v29, 0.0  ;;  %v3937_v48 = vadd.f32 %v3905_v11, %v3488_v59  ;;  %v2367_v50 = vmul.f32 %v6649_v19, %v2333_v52  ;;  %v2090_v11 = vpop.f32.mrf.mxu2 }
 0x216   : > { %v2878_v26 = vsel %vm2718_vm9, %v7510_v14, %v4562_v33  ;;  %5203 = vpow2.f32 %v3347_v51  ;;  %v3872_v34 = vsel %vm3712_vm6, %v7490_v42, %v4790_v39  ;;  %v2751_v37 = vmin.f32 %v7577_v31, 0.0 }
 0x217   : > { %5205 = vpow2.f32 %v3796_v8  ;;  %v2257_v60 = vmul.f32 1.442695, %v2206_v27  ;;  %3969 = vst [vmem:[%s6809_s12 + $0x88] sm:$0xff] %v3937_v48  ;;  %v2399_v7 = vadd.f32 %v2367_v50, %v8456_v9  ;;  %v2912_v12 = vmul.f32 %v6684_v44, %v2878_v26 }
 0x218   : > { %v3297_v35 = vmin.f32 %v7581_v54, 0.0  ;;  %v7603_v41 = vadd.f32 %v7545_v17, %v3628_v47  ;;  %v2802_v14 = vmul.f32 1.442695, %v2751_v37  ;;  %v2089_v1 = vadd.f32 %v2088_v16, %v8454_v45 }
 0x219   : > { %5207 = vpow2.f32 %v2257_v60  ;;  %v2634_v42 = vadd.f32 %v2633_v38, %v8454_v45  ;;  %v3457_v22 = vmul.f32 %v6621_v55, %v3423_v5  ;;  %v2944_v28 = vadd.f32 %v2912_v12, %v2399_v7 }
 0x21a   : > { %v3349_v53 = vmul.f32 1.442695, %v3297_v35  ;;  %v3746_v20 = vmin.f32 %v7603_v41, 0.0  ;;  %5209 = vpow2.f32 %v2802_v14  ;;  %v7610_v13 = vadd.f32 %v7569_v23, %v2089_v1  ;;  %v8460_v1 = vld [vmem:[#allocation52_spill] sm:$0xff] }
 0x21b   : > { %v7613_v63 = vadd.f32 %v7190_v58, %v2634_v42  ;;  %v3181_v40 = vadd.f32 %v3180_v4, %v8457_v56  ;;  %v7618_v45 = vadd.f32 %v8459_v62, %v8458_v0  ;;  %v3906_v49 = vmul.f32 %v6624_v3, %v3872_v34  ;;  %v3632_v14 = vpop.f32.mrf.mxu1  ;;  %v7672_v62 = vld [vmem:[%s8153_s7 + $0x2] ss:$0 sm:$0xff] }
 0x21c   : > { %v5204_v30 = vpop.eup %5203  ;;  %v3489_v2 = vadd.f32 %v3457_v22, %v2944_v28  ;;  %v3798_v15 = vmul.f32 1.442695, %v3746_v20  ;;  %v7625_v58 = vsel %vm1735_vm8, %v8455_v25, %v7281_v10  ;;  %vm3264_vm10 = vcmp.gt.f32.partialorder %v7540_v36, 0.0  ;;  %v2635_v10 = vpop.f32.mrf.mxu3 }
 0x21d   : > { %v5206_v21 = vpop.eup %5205  ;;  %5211 = vpow2.f32 %v3349_v53  ;;  %v2207_v51 = vmin.f32 %v7610_v13, 0.0  ;;  %vm3713_vm11 = vcmp.gt.f32.partialorder %v7548_v46, 0.0  ;;  %vm2174_vm12 = vcmp.gt.f32.partialorder %v7572_v29, 0.0  ;;  %v3183_v48 = vpop.f32.mrf.mxu0 }
 0x21e   : > { %v3938_v16 = vadd.f32 %v3906_v49, %v3489_v2  ;;  %v2752_v24 = vmin.f32 %v7613_v63, 0.0  ;;  %v4709_v61 = vadd.f32 -1.0, %v5204_v30  ;;  %5213 = vpow2.f32 %v3798_v15 }
 0x21f   : > { %v5208_v39 = vpop.eup %5207  ;;  %v2259_v8 = vmul.f32 1.442695, %v2207_v51  ;;  %v7633_v59 = vadd.f32 %v7537_v32, %v3181_v40  ;;  %vm2719_vm13 = vcmp.gt.f32.partialorder %v7577_v31, 0.0  ;;  %v3630_v47 = vadd.f32 %v3629_v43, %v8457_v56  ;;  %v2093_v43 = vpop.f32.mrf.mxu2 }
 0x220   : > { %3970 = vst [vmem:[%s6809_s12 + $0x90] sm:$0xff] %v3938_v16  ;;  %v4417_v25 = vadd.f32 -1.0, %v5208_v39  ;;  %v2804_v33 = vmul.f32 1.442695, %v2752_v24  ;;  %v5210_v5 = vpop.eup %5209  ;;  %v4791_v52 = vadd.f32 -1.0, %v5206_v21  ;;  %v2091_v38 = vadd.f32 %v2090_v11, %v8457_v56 }
 0x221   : > { %5215 = vpow2.f32 %v2259_v8  ;;  %v3298_v27 = vmin.f32 %v7633_v59, 0.0  ;;  %v4563_v26 = vadd.f32 -1.0, %v5210_v5  ;;  %v7644_v34 = vadd.f32 %v7545_v17, %v3630_v47 }
 0x222   : > { %v2334_v50 = vsel %vm2174_vm12, %v7572_v29, %v4417_v25  ;;  %5217 = vpow2.f32 %v2804_v33  ;;  %v3424_v37 = vsel %vm3264_vm10, %v7540_v36, %v4709_v61  ;;  %vm3265_vm14 = vcmp.gt.f32.partialorder %v7581_v54, 0.0 }
 0x223   : > { %v5212_v60 = vpop.eup %5211  ;;  %v2368_v4 = vmul.f32 %v6649_v19, %v2334_v50  ;;  %v3351_v9 = vmul.f32 1.442695, %v3298_v27  ;;  %v7652_v7 = vadd.f32 %v7569_v23, %v2091_v38  ;;  %v2879_v29 = vsel %vm2719_vm13, %v7577_v31, %v4563_v26 }
 0x224   : > { %vm3714_vm15 = vcmp.gt.f32.partialorder %v7603_v41, 0.0  ;;  %v3747_v12 = vmin.f32 %v7644_v34, 0.0  ;;  %v2636_v35 = vadd.f32 %v2635_v10, %v8457_v56  ;;  %v5214_v36 = vpop.eup %5213  ;;  %v2913_v22 = vmul.f32 %v6684_v44, %v2879_v29  ;;  %v2638_v61 = vpop.f32.mrf.mxu3 }
 0x225   : > { %v2400_v42 = vadd.f32 %v2368_v4, %v8460_v1  ;;  %vm2175_vm0 = vcmp.gt.f32.partialorder %v7610_v13, 0.0  ;;  %vm2720_vm1 = vcmp.gt.f32.partialorder %v7613_v63, 0.0  ;;  %v3458_v28 = vmul.f32 %v6621_v55, %v3424_v37  ;;  %v3185_v27 = vpop.f32.mrf.mxu0 }
 0x226   : > { %v3873_v31 = vsel %vm3713_vm11, %v7548_v46, %v4791_v52  ;;  %v4710_v53 = vadd.f32 -1.0, %v5212_v60  ;;  %v3800_v20 = vmul.f32 1.442695, %v3747_v12  ;;  %5219 = vpow2.f32 %v3351_v9  ;;  %v8461_v46 = vld [vmem:[#allocation43_spill] sm:$0xff] }
 0x227   : > { %v5216_v56 = vpop.eup %5215  ;;  %v2945_v40 = vadd.f32 %v2913_v22, %v2400_v42  ;;  %v2208_v30 = vmin.f32 %v7652_v7, 0.0  ;;  %v7675_v49 = vadd.f32 %v7672_v62, %v2636_v35  ;;  %v4792_v15 = vadd.f32 -1.0, %v5214_v36  ;;  %v8462_v60 = vld [vmem:[#allocation55_spill] sm:$0xff] }
 0x228   : > { %v5218_v2 = vpop.eup %5217  ;;  %v4418_v11 = vadd.f32 -1.0, %v5216_v56  ;;  %5221 = vpow2.f32 %v3800_v20  ;;  %v3184_v21 = vadd.f32 %v3183_v48, %v8461_v46  ;;  %v3907_v51 = vmul.f32 %v6624_v3, %v3873_v31  ;;  %v2095_v20 = vpop.f32.mrf.mxu2 }
 0x229   : > { %v3490_v16 = vadd.f32 %v3458_v28, %v2945_v40  ;;  %v4564_v24 = vadd.f32 -1.0, %v5218_v2  ;;  %v2261_v39 = vmul.f32 1.442695, %v2208_v30  ;;  %v2753_v10 = vmin.f32 %v7675_v49, 0.0 }
 0x22a   : > { %v2335_v8 = vsel %vm2175_vm0, %v7610_v13, %v4418_v11  ;;  %v7684_v25 = vadd.f32 %v7537_v32, %v3184_v21  ;;  %v3633_v33 = vadd.f32 %v3632_v14, %v8461_v46  ;;  %v3425_v13 = vsel %vm3265_vm14, %v7581_v54, %v4710_v53  ;;  %v3634_v14 = vpop.f32.mrf.mxu1 }
 0x22b   : > { %v3939_v47 = vadd.f32 %v3907_v51, %v3490_v16  ;;  %v2369_v5 = vmul.f32 %v6649_v19, %v2335_v8  ;;  %v2880_v52 = vsel %vm2720_vm1, %v7613_v63, %v4564_v24  ;;  %5223 = vpow2.f32 %v2261_v39 }
 0x22c   : > { %v3874_v38 = vsel %vm3714_vm15, %v7603_v41, %v4792_v15  ;;  %v2806_v48 = vmul.f32 1.442695, %v2753_v10  ;;  %v3299_v50 = vmin.f32 %v7684_v25, 0.0  ;;  %v5220_v26 = vpop.eup %5219  ;;  %v2914_v4 = vmul.f32 %v6684_v44, %v2880_v52  ;;  %v8463_v41 = vld [vmem:[#allocation45_spill] sm:$0xff]  ;;  %v2640_v51 = vpop.f32.mrf.mxu3 }
 0x22d   : > { %3971 = vst [vmem:[%s6809_s12 + $0x98] sm:$0xff] %v3939_v47  ;;  %v2401_v37 = vadd.f32 %v2369_v5, %v8462_v60  ;;  %v7702_v63 = vadd.f32 %v7545_v17, %v3633_v33  ;;  %v2094_v9 = vadd.f32 %v2093_v43, %v8461_v46  ;;  %v2639_v12 = vadd.f32 %v2638_v61, %v8461_v46 }
 0x22e   : > { %v5222_v29 = vpop.eup %5221  ;;  %5225 = vpow2.f32 %v2806_v48  ;;  %v3353_v54 = vmul.f32 1.442695, %v3299_v50  ;;  %v3186_v35 = vadd.f32 %v3185_v27, %v8463_v41  ;;  %v3459_v36 = vmul.f32 %v6621_v55, %v3425_v13 }
 0x22f   : > { %v3908_v1 = vmul.f32 %v6624_v3, %v3874_v38  ;;  %v2946_v42 = vadd.f32 %v2914_v4, %v2401_v37  ;;  %vm3266_vm2 = vcmp.gt.f32.partialorder %v7633_v59, 0.0  ;;  %v4711_v22 = vadd.f32 -1.0, %v5220_v26 }
 0x230   : > { %v4793_v28 = vadd.f32 -1.0, %v5222_v29  ;;  %v3748_v31 = vmin.f32 %v7702_v63, 0.0  ;;  %v7712_v53 = vadd.f32 %v7569_v23, %v2094_v9  ;;  %5227 = vpow2.f32 %v3353_v54  ;;  %v5320_v9 = vld [vmem:[%s8153_s7] ss:$0 sm:$0xff]  ;;  %v8465_v54 = vld [vmem:[#allocation49_spill] sm:$0xff] }
 0x231   : > { %v5224_v43 = vpop.eup %5223  ;;  %v3491_v56 = vadd.f32 %v3459_v36, %v2946_v42  ;;  %v7715_v40 = vadd.f32 %v7672_v62, %v2639_v12  ;;  %v7718_v30 = vadd.f32 %v7537_v32, %v3186_v35  ;;  %vm3715_vm3 = vcmp.gt.f32.partialorder %v7644_v34, 0.0 }
 0x232   : > { %vm2176_vm4 = vcmp.gt.f32.partialorder %v7652_v7, 0.0  ;;  %v4419_v2 = vadd.f32 -1.0, %v5224_v43  ;;  %v3802_v15 = vmul.f32 1.442695, %v3748_v31  ;;  %vm2721_vm5 = vcmp.gt.f32.partialorder %v7675_v49, 0.0  ;;  %v3637_v4 = vpop.f32.mrf.mxu1 }
 0x233   : > { %v3940_v11 = vadd.f32 %v3908_v1, %v3491_v56  ;;  %v2209_v46 = vmin.f32 %v7712_v53, 0.0  ;;  %v2754_v21 = vmin.f32 %v7715_v40, 0.0  ;;  %v3426_v24 = vsel %vm3266_vm2, %v7633_v59, %v4711_v22  ;;  %v3188_v59 = vpop.f32.mrf.mxu0  ;;  %v2098_v1 = vpop.f32.mrf.mxu2 }
 0x234   : > { %v5226_v16 = vpop.eup %5225  ;;  %v3875_v39 = vsel %vm3715_vm3, %v7644_v34, %v4793_v28  ;;  %v2336_v61 = vsel %vm2176_vm4, %v7652_v7, %v4419_v2  ;;  %v3300_v8 = vmin.f32 %v7718_v30, 0.0  ;;  %5229 = vpow2.f32 %v3802_v15  ;;  %v8464_v34 = vld [vmem:[#allocation34_spill] sm:$0xff] }
 0x235   : > { %3972 = vst [vmem:[%s6809_s12 + $0xa0] sm:$0xff] %v3940_v11  ;;  %v2370_v10 = vmul.f32 %v6649_v19, %v2336_v61  ;;  %v4565_v33 = vadd.f32 -1.0, %v5226_v16  ;;  %v2263_v47 = vmul.f32 1.442695, %v2209_v46  ;;  %v2808_v5 = vmul.f32 1.442695, %v2754_v21 }
 0x236   : > { %v3635_v52 = vadd.f32 %v3634_v14, %v8463_v41  ;;  %v2096_v27 = vadd.f32 %v2095_v20, %v8463_v41  ;;  %v2641_v13 = vadd.f32 %v2640_v51, %v8463_v41  ;;  %v5228_v38 = vpop.eup %5227  ;;  %v3355_v50 = vmul.f32 1.442695, %v3300_v8 }
 0x237   : > { %v2402_v48 = vadd.f32 %v2370_v10, %v8464_v34  ;;  %v2881_v7 = vsel %vm2721_vm5, %v7675_v49, %v4565_v33  ;;  %5231 = vpow2.f32 %v2263_v47  ;;  %v7751_v29 = vadd.f32 %v5320_v9, %v7618_v45 }
 0x238   : > { %v2915_v26 = vmul.f32 %v6684_v44, %v2881_v7  ;;  %5233 = vpow2.f32 %v2808_v5  ;;  %v7742_v60 = vadd.f32 %v7545_v17, %v3635_v52  ;;  %v7745_v37 = vadd.f32 %v7569_v23, %v2096_v27 }
 0x239   : > { %vm3267_vm6 = vcmp.gt.f32.partialorder %v7684_v25, 0.0  ;;  %v7755_v49 = vadd.f32 %v7672_v62, %v2641_v13  ;;  %v3189_v12 = vadd.f32 %v3188_v59, %v8465_v54  ;;  %v3460_v41 = vmul.f32 %v6621_v55, %v3426_v24  ;;  %v2643_v24 = vpop.f32.mrf.mxu3 }
 0x23a   : > { %v2947_v35 = vadd.f32 %v2915_v26, %v2402_v48  ;;  %v4712_v14 = vadd.f32 -1.0, %v5228_v38  ;;  %v3749_v36 = vmin.f32 %v7742_v60, 0.0  ;;  %v3909_v42 = vmul.f32 %v6624_v3, %v3875_v39  ;;  %v5230_v22 = vpop.eup %5229  ;;  %v3639_v38 = vpop.f32.mrf.mxu1  ;;  %v8466_v48 = vld [vmem:[#allocation57_spill] sm:$0xff] }
 0x23b   : > { %vm3716_vm7 = vcmp.gt.f32.partialorder %v7702_v63, 0.0  ;;  %5235 = vpow2.f32 %v3355_v50  ;;  %v2210_v45 = vmin.f32 %v7745_v37, 0.0  ;;  %v2755_v20 = vmin.f32 %v7755_v49, 0.0  ;;  %v3190_v5 = vpop.f32.mrf.mxu0 }
 0x23c   : > { %v3492_v28 = vadd.f32 %v3460_v41, %v2947_v35  ;;  %v3804_v31 = vmul.f32 1.442695, %v3749_v36  ;;  %v7765_v43 = vadd.f32 %v7537_v32, %v3189_v12  ;;  %vm2177_vm8 = vcmp.gt.f32.partialorder %v7712_v53, 0.0  ;;  %v8467_v41 = vld [vmem:[#allocation16_spill] sm:$0xff] }
 0x23d   : > { %v5232_v56 = vpop.eup %5231  ;;  %v2265_v2 = vmul.f32 1.442695, %v2210_v45  ;;  %v3638_v15 = vadd.f32 %v3637_v4, %v8465_v54  ;;  %v2099_v11 = vadd.f32 %v2098_v1, %v8465_v54  ;;  %v3427_v51 = vsel %vm3267_vm6, %v7684_v25, %v4712_v14  ;;  %v2100_v14 = vpop.f32.mrf.mxu2 }
 0x23e   : > { %v5234_v46 = vpop.eup %5233  ;;  %v3941_v21 = vadd.f32 %v3909_v42, %v3492_v28  ;;  %v4420_v16 = vadd.f32 -1.0, %v5232_v56  ;;  %5237 = vpow2.f32 %v3804_v31  ;;  %v4794_v39 = vadd.f32 -1.0, %v5230_v22 }
 0x23f   : > { %v4566_v61 = vadd.f32 -1.0, %v5234_v46  ;;  %5239 = vpow2.f32 %v2265_v2  ;;  %v2810_v8 = vmul.f32 1.442695, %v2755_v20  ;;  %vm2722_vm9 = vcmp.gt.f32.partialorder %v7715_v40, 0.0 }
 0x240   : > { %3973 = vst [vmem:[%s6809_s12 + $0xa8] sm:$0xff] %v3941_v21  ;;  %v2337_v10 = vsel %vm2177_vm8, %v7712_v53, %v4420_v16  ;;  %v3301_v33 = vmin.f32 %v7765_v43, 0.0  ;;  %v7778_v47 = vadd.f32 %v7545_v17, %v3638_v15  ;;  %v7783_v13 = vadd.f32 %v7569_v23, %v2099_v11 }
 0x241   : > { %v5236_v52 = vpop.eup %5235  ;;  %v2371_v25 = vmul.f32 %v6649_v19, %v2337_v10  ;;  %v2882_v27 = vsel %vm2722_vm9, %v7715_v40, %v4566_v61  ;;  %5241 = vpow2.f32 %v2810_v8  ;;  %v3461_v59 = vmul.f32 %v6621_v55, %v3427_v51  ;;  %v2645_v21 = vpop.f32.mrf.mxu3 }
 0x242   : > { %vm3268_vm10 = vcmp.gt.f32.partialorder %v7718_v30, 0.0  ;;  %vm2178_vm11 = vcmp.gt.f32.partialorder %v7745_v37, 0.0  ;;  %v3357_v53 = vmul.f32 1.442695, %v3301_v33  ;;  %v3876_v34 = vsel %vm3716_vm7, %v7702_v63, %v4794_v39 }
 0x243   : > { %v2403_v7 = vadd.f32 %v2371_v25, %v8466_v48  ;;  %v2916_v40 = vmul.f32 %v6684_v44, %v2882_v27  ;;  %v3750_v50 = vmin.f32 %v7778_v47, 0.0  ;;  %v4713_v4 = vadd.f32 -1.0, %v5236_v52  ;;  %v3193_v8 = vpop.f32.mrf.mxu0 }
 0x244   : > { %v5238_v26 = vpop.eup %5237  ;;  %v2211_v9 = vmin.f32 %v7783_v13, 0.0  ;;  %v2644_v12 = vadd.f32 %v2643_v24, %v8465_v54  ;;  %v3191_v35 = vadd.f32 %v3190_v5, %v8467_v41  ;;  %5243 = vpow2.f32 %v3357_v53  ;;  %v8468_v5 = vld [vmem:[#allocation59_spill] sm:$0xff] }
 0x245   : > { %v5240_v36 = vpop.eup %5239  ;;  %v2948_v1 = vadd.f32 %v2916_v40, %v2403_v7  ;;  %v3806_v42 = vmul.f32 1.442695, %v3750_v50  ;;  %v3640_v63 = vadd.f32 %v3639_v38, %v8467_v41  ;;  %v3910_v54 = vmul.f32 %v6624_v3, %v3876_v34  ;;  %v8469_v7 = vld [vmem:[#allocation32_spill] sm:$0xff] }
 0x246   : > { %v4421_v45 = vadd.f32 -1.0, %v5240_v36  ;;  %v2267_v22 = vmul.f32 1.442695, %v2211_v9  ;;  %v7799_v28 = vadd.f32 %v7672_v62, %v2644_v12  ;;  %v7802_v31 = vadd.f32 %v7537_v32, %v3191_v35  ;;  %v2103_v9 = vpop.f32.mrf.mxu2 }
 0x247   : > { %v5242_v20 = vpop.eup %5241  ;;  %v3493_v56 = vadd.f32 %v3461_v59, %v2948_v1  ;;  %v4795_v2 = vadd.f32 -1.0, %v5238_v26  ;;  %5245 = vpow2.f32 %v3806_v42  ;;  %v7809_v46 = vadd.f32 %v7545_v17, %v3640_v63 }
 0x248   : > { %v2338_v15 = vsel %vm2178_vm11, %v7745_v37, %v4421_v45  ;;  %v4567_v11 = vadd.f32 -1.0, %v5242_v20  ;;  %5247 = vpow2.f32 %v2267_v22  ;;  %vm2723_vm12 = vcmp.gt.f32.partialorder %v7755_v49, 0.0 }
 0x249   : > { %v3942_v51 = vadd.f32 %v3910_v54, %v3493_v56  ;;  %v2372_v16 = vmul.f32 %v6649_v19, %v2338_v15  ;;  %v2756_v24 = vmin.f32 %v7799_v28, 0.0  ;;  %v3428_v39 = vsel %vm3268_vm10, %v7718_v30, %v4713_v4 }
 0x24a   : > { %vm3717_vm13 = vcmp.gt.f32.partialorder %v7742_v60, 0.0  ;;  %v2883_v37 = vsel %vm2723_vm12, %v7755_v49, %v4567_v11  ;;  %v3302_v61 = vmin.f32 %v7802_v31, 0.0  ;;  %v5244_v10 = vpop.eup %5243  ;;  %v3751_v53 = vmin.f32 %v7809_v46, 0.0 }
 0x24b   : > { %3974 = vst [vmem:[%s6809_s12 + $0xb0] sm:$0xff] %v3942_v51  ;;  %v3877_v33 = vsel %vm3717_vm13, %v7742_v60, %v4795_v2  ;;  %v2404_v52 = vadd.f32 %v2372_v16, %v8468_v5  ;;  %v2917_v25 = vmul.f32 %v6684_v44, %v2883_v37  ;;  %v2812_v27 = vmul.f32 1.442695, %v2756_v24  ;;  %v3642_v60 = vpop.f32.mrf.mxu1  ;;  %v2648_v2 = vpop.f32.mrf.mxu3 }
 0x24c   : > { %v3359_v59 = vmul.f32 1.442695, %v3302_v61  ;;  %v2101_v30 = vadd.f32 %v2100_v14, %v8467_v41  ;;  %v2646_v38 = vadd.f32 %v2645_v21, %v8467_v41  ;;  %v3462_v34 = vmul.f32 %v6621_v55, %v3428_v39 }
 0x24d   : > { %v5246_v49 = vpop.eup %5245  ;;  %v2949_v48 = vadd.f32 %v2917_v25, %v2404_v52  ;;  %5249 = vpow2.f32 %v2812_v27  ;;  %v3194_v40 = vadd.f32 %v3193_v8, %v8469_v7  ;;  %v3911_v26 = vmul.f32 %v6624_v3, %v3877_v33  ;;  %v8470_v8 = vld [vmem:[#allocation60_spill] sm:$0xff]  ;;  %v3195_v27 = vpop.f32.mrf.mxu0 }
 0x24e   : > { %v5248_v50 = vpop.eup %5247  ;;  %vm3269_vm14 = vcmp.gt.f32.partialorder %v7765_v43, 0.0  ;;  %5251 = vpow2.f32 %v3359_v59  ;;  %v3808_v4 = vmul.f32 1.442695, %v3751_v53  ;;  %v7832_v41 = vadd.f32 %v7569_v23, %v2101_v30 }
 0x24f   : > { %v3494_v12 = vadd.f32 %v3462_v34, %v2949_v48  ;;  %v4422_v35 = vadd.f32 -1.0, %v5248_v50  ;;  %v7835_v14 = vadd.f32 %v7672_v62, %v2646_v38  ;;  %v4714_v36 = vadd.f32 -1.0, %v5244_v10  ;;  %v2105_v34 = vpop.f32.mrf.mxu2  ;;  %v8471_v50 = vld [vmem:[#allocation19_spill] sm:$0xff] }
 0x250   : > { %vm2179_vm15 = vcmp.gt.f32.partialorder %v7783_v13, 0.0  ;;  %v7839_v1 = vadd.f32 %v7537_v32, %v3194_v40  ;;  %v3643_v42 = vadd.f32 %v3642_v60, %v8469_v7  ;;  %v4796_v45 = vadd.f32 -1.0, %v5246_v49 }
 0x251   : > { %v3943_v63 = vadd.f32 %v3911_v26, %v3494_v12  ;;  %v2339_v22 = vsel %vm2179_vm15, %v7783_v13, %v4422_v35  ;;  %5253 = vpow2.f32 %v3808_v4  ;;  %vm3718_vm0 = vcmp.gt.f32.partialorder %v7778_v47, 0.0 }
 0x252   : > { %v2373_v20 = vmul.f32 %v6649_v19, %v2339_v22  ;;  %v2212_v54 = vmin.f32 %v7832_v41, 0.0  ;;  %v2757_v56 = vmin.f32 %v7835_v14, 0.0  ;;  %vm2724_vm1 = vcmp.gt.f32.partialorder %v7799_v28, 0.0 }
 0x253   : > { %v5250_v15 = vpop.eup %5249  ;;  %3975 = vst [vmem:[%s6809_s12 + $0xb8] sm:$0xff] %v3943_v63  ;;  %v3303_v11 = vmin.f32 %v7839_v1, 0.0  ;;  %v7851_v21 = vadd.f32 %v7545_v17, %v3643_v42  ;;  %v2104_v13 = vadd.f32 %v2103_v9, %v8469_v7  ;;  %v3429_v16 = vsel %vm3269_vm14, %v7765_v43, %v4714_v36  ;;  %v2650_v22 = vpop.f32.mrf.mxu3 }
 0x254   : > { %v5252_v51 = vpop.eup %5251  ;;  %v4568_v24 = vadd.f32 -1.0, %v5250_v15  ;;  %v2269_v39 = vmul.f32 1.442695, %v2212_v54  ;;  %v2814_v37 = vmul.f32 1.442695, %v2757_v56  ;;  %v3878_v61 = vsel %vm3718_vm0, %v7778_v47, %v4796_v45  ;;  %v3644_v47 = vpop.f32.mrf.mxu1 }
 0x255   : > { %v2405_v10 = vadd.f32 %v2373_v20, %v8470_v8  ;;  %v3361_v33 = vmul.f32 1.442695, %v3303_v11  ;;  %v3752_v5 = vmin.f32 %v7851_v21, 0.0  ;;  %v7864_v25 = vadd.f32 %v7569_v23, %v2104_v13 }
 0x256   : > { %v2884_v52 = vsel %vm2724_vm1, %v7799_v28, %v4568_v24  ;;  %5255 = vpow2.f32 %v2269_v39  ;;  %v2649_v43 = vadd.f32 %v2648_v2, %v8469_v7  ;;  %vm3270_vm2 = vcmp.gt.f32.partialorder %v7802_v31, 0.0 }
 0x257   : > { %v5254_v59 = vpop.eup %5253  ;;  %v2918_v53 = vmul.f32 %v6684_v44, %v2884_v52  ;;  %vm3719_vm3 = vcmp.gt.f32.partialorder %v7809_v46, 0.0  ;;  %5257 = vpow2.f32 %v2814_v37  ;;  %v3463_v30 = vmul.f32 %v6621_v55, %v3429_v16 }
 0x258   : > { %v3912_v28 = vmul.f32 %v6624_v3, %v3878_v61  ;;  %v4715_v38 = vadd.f32 -1.0, %v5252_v51  ;;  %v3810_v49 = vmul.f32 1.442695, %v3752_v5  ;;  %5259 = vpow2.f32 %v3361_v33  ;;  %v3198_v33 = vpop.f32.mrf.mxu0 }
 0x259   : > { %v2950_v48 = vadd.f32 %v2918_v53, %v2405_v10  ;;  %v2213_v7 = vmin.f32 %v7864_v25, 0.0  ;;  %v7874_v40 = vadd.f32 %v7672_v62, %v2649_v43  ;;  %v4797_v60 = vadd.f32 -1.0, %v5254_v59 }
 0x25a   : > { %5261 = vpow2.f32 %v3810_v49  ;;  %v3196_v26 = vadd.f32 %v3195_v27, %v8471_v50  ;;  %v3645_v4 = vadd.f32 %v3644_v47, %v8471_v50  ;;  %vm2180_vm4 = vcmp.gt.f32.partialorder %v7832_v41, 0.0  ;;  %v8472_v27 = vld [vmem:[#allocation22_spill] sm:$0xff] }
 0x25b   : > { %v3495_v9 = vadd.f32 %v3463_v30, %v2950_v48  ;;  %v2271_v12 = vmul.f32 1.442695, %v2213_v7  ;;  %v2758_v35 = vmin.f32 %v7874_v40, 0.0  ;;  %vm2725_vm5 = vcmp.gt.f32.partialorder %v7835_v14, 0.0  ;;  %v8473_v7 = vld [vmem:[#allocation35_spill] sm:$0xff] }
 0x25c   : > { %v5256_v36 = vpop.eup %5255  ;;  %v7882_v42 = vadd.f32 %v7537_v32, %v3196_v26  ;;  %v7885_v63 = vadd.f32 %v7545_v17, %v3645_v4  ;;  %v2106_v45 = vadd.f32 %v2105_v34, %v8471_v50  ;;  %v3430_v15 = vsel %vm3270_vm2, %v7802_v31, %v4715_v38  ;;  %v3647_v52 = vpop.f32.mrf.mxu1 }
 0x25d   : > { %v5258_v20 = vpop.eup %5257  ;;  %v3944_v54 = vadd.f32 %v3912_v28, %v3495_v9  ;;  %v4423_v56 = vadd.f32 -1.0, %v5256_v36  ;;  %5263 = vpow2.f32 %v2271_v12  ;;  %v2816_v2 = vmul.f32 1.442695, %v2758_v35 }
 0x25e   : > { %v3879_v11 = vsel %vm3719_vm3, %v7809_v46, %v4797_v60  ;;  %v4569_v13 = vadd.f32 -1.0, %v5258_v20  ;;  %v3304_v51 = vmin.f32 %v7882_v42, 0.0  ;;  %v5260_v16 = vpop.eup %5259  ;;  %vm3271_vm6 = vcmp.gt.f32.partialorder %v7839_v1, 0.0 }
 0x25f   : > { %3976 = vst [vmem:[%s6809_s12 + $0xc0] sm:$0xff] %v3944_v54  ;;  %v2340_v24 = vsel %vm2180_vm4, %v7832_v41, %v4423_v56  ;;  %5265 = vpow2.f32 %v2816_v2  ;;  %v3753_v39 = vmin.f32 %v7885_v63, 0.0  ;;  %v2651_v31 = vadd.f32 %v2650_v22, %v8471_v50  ;;  %v2653_v56 = vpop.f32.mrf.mxu3 }
 0x260   : > { %v5262_v37 = vpop.eup %5261  ;;  %v2374_v61 = vmul.f32 %v6649_v19, %v2340_v24  ;;  %v2885_v46 = vsel %vm2725_vm5, %v7835_v14, %v4569_v13  ;;  %v3363_v8 = vmul.f32 1.442695, %v3304_v51  ;;  %v7907_v10 = vadd.f32 %v7569_v23, %v2106_v45  ;;  %v2108_v14 = vpop.f32.mrf.mxu2  ;;  %v8474_v51 = vld [vmem:[#allocation66_spill] sm:$0xff] }
 0x261   : > { %v3464_v41 = vmul.f32 %v6621_v55, %v3430_v15  ;;  %vm3720_vm7 = vcmp.gt.f32.partialorder %v7851_v21, 0.0  ;;  %vm2181_vm8 = vcmp.gt.f32.partialorder %v7864_v25, 0.0  ;;  %v3812_v5 = vmul.f32 1.442695, %v3753_v39 }
 0x262   : > { %v3913_v43 = vmul.f32 %v6624_v3, %v3879_v11  ;;  %v2406_v59 = vadd.f32 %v2374_v61, %v8472_v27  ;;  %v2919_v53 = vmul.f32 %v6684_v44, %v2885_v46  ;;  %vm2726_vm9 = vcmp.gt.f32.partialorder %v7874_v40, 0.0 }
 0x263   : > { %v5264_v47 = vpop.eup %5263  ;;  %v4716_v30 = vadd.f32 -1.0, %v5260_v16  ;;  %v4798_v28 = vadd.f32 -1.0, %v5262_v37  ;;  %v2214_v38 = vmin.f32 %v7907_v10, 0.0  ;;  %v7918_v49 = vadd.f32 %v7672_v62, %v2651_v31  ;;  %v3200_v31 = vpop.f32.mrf.mxu0 }
 0x264   : > { %v2951_v34 = vadd.f32 %v2919_v53, %v2406_v59  ;;  %v4424_v48 = vadd.f32 -1.0, %v5264_v47  ;;  %5267 = vpow2.f32 %v3363_v8  ;;  %v3199_v60 = vadd.f32 %v3198_v33, %v8473_v7  ;;  %v3649_v33 = vpop.f32.mrf.mxu1 }
 0x265   : > { %v5266_v50 = vpop.eup %5265  ;;  %5269 = vpow2.f32 %v3812_v5  ;;  %v2273_v26 = vmul.f32 1.442695, %v2214_v38  ;;  %v2759_v4 = vmin.f32 %v7918_v49, 0.0  ;;  %v3648_v9 = vadd.f32 %v3647_v52, %v8473_v7 }
 0x266   : > { %v3496_v12 = vadd.f32 %v3464_v41, %v2951_v34  ;;  %v2341_v35 = vsel %vm2181_vm8, %v7864_v25, %v4424_v48  ;;  %v4570_v36 = vadd.f32 -1.0, %v5266_v50  ;;  %v7927_v45 = vadd.f32 %v7537_v32, %v3199_v60 }
 0x267   : > { %v2375_v22 = vmul.f32 %v6649_v19, %v2341_v35  ;;  %5271 = vpow2.f32 %v2273_v26  ;;  %v2818_v20 = vmul.f32 1.442695, %v2759_v4  ;;  %v7931_v54 = vadd.f32 %v7545_v17, %v3648_v9 }
 0x268   : > { %v3945_v2 = vadd.f32 %v3913_v43, %v3496_v12  ;;  %v3431_v15 = vsel %vm3271_vm6, %v7839_v1, %v4716_v30  ;;  %v2886_v25 = vsel %vm2726_vm9, %v7874_v40, %v4570_v36  ;;  %v3305_v11 = vmin.f32 %v7927_v45, 0.0  ;;  %v2110_v52 = vpop.f32.mrf.mxu2  ;;  %v8475_v30 = vld [vmem:[#allocation13_spill] sm:$0xff] }
 0x269   : > { %v3880_v13 = vsel %vm3720_vm7, %v7851_v21, %v4798_v28  ;;  %v2407_v16 = vadd.f32 %v2375_v22, %v8474_v51  ;;  %v2920_v24 = vmul.f32 %v6684_v44, %v2886_v25  ;;  %5273 = vpow2.f32 %v2818_v20  ;;  %v2655_v20 = vpop.f32.mrf.mxu3 }
 0x26a   : > { %v5268_v39 = vpop.eup %5267  ;;  %3977 = vst [vmem:[%s6809_s12 + $0xc8] sm:$0xff] %v3945_v2  ;;  %vm3272_vm10 = vcmp.gt.f32.partialorder %v7882_v42, 0.0  ;;  %vm3721_vm11 = vcmp.gt.f32.partialorder %v7885_v63, 0.0  ;;  %v3365_v1 = vmul.f32 1.442695, %v3305_v11  ;;  %v3754_v40 = vmin.f32 %v7931_v54, 0.0 }
 0x26b   : > { %v5270_v37 = vpop.eup %5269  ;;  %v3465_v61 = vmul.f32 %v6621_v55, %v3431_v15  ;;  %v2952_v46 = vadd.f32 %v2920_v24, %v2407_v16  ;;  %v2109_v21 = vadd.f32 %v2108_v14, %v8473_v7  ;;  %v2654_v8 = vadd.f32 %v2653_v56, %v8473_v7 }
 0x26c   : > { %v3914_v41 = vmul.f32 %v6624_v3, %v3880_v13  ;;  %vm2182_vm12 = vcmp.gt.f32.partialorder %v7907_v10, 0.0  ;;  %vm2727_vm13 = vcmp.gt.f32.partialorder %v7918_v49, 0.0  ;;  %v3814_v5 = vmul.f32 1.442695, %v3754_v40 }
 0x26d   : > { %v5272_v43 = vpop.eup %5271  ;;  %v3497_v27 = vadd.f32 %v3465_v61, %v2952_v46  ;;  %v4717_v59 = vadd.f32 -1.0, %v5268_v39  ;;  %v7956_v53 = vadd.f32 %v7569_v23, %v2109_v21  ;;  %v7959_v14 = vadd.f32 %v7672_v62, %v2654_v8  ;;  %v3652_v61 = vpop.f32.mrf.mxu1 }
 0x26e   : > { %v4425_v47 = vadd.f32 -1.0, %v5272_v43  ;;  %5275 = vpow2.f32 %v3365_v1  ;;  %v3201_v28 = vadd.f32 %v3200_v31, %v8475_v30  ;;  %v3650_v38 = vadd.f32 %v3649_v33, %v8475_v30 }
 0x26f   : > { %v5274_v34 = vpop.eup %5273  ;;  %v3946_v48 = vadd.f32 %v3914_v41, %v3497_v27  ;;  %v4799_v7 = vadd.f32 -1.0, %v5270_v37  ;;  %5277 = vpow2.f32 %v3814_v5  ;;  %v2215_v60 = vmin.f32 %v7956_v53, 0.0  ;;  %v8477_v5 = vld [vmem:[#allocation61_spill] sm:$0xff] }
 0x270   : > { %v2342_v50 = vsel %vm2182_vm12, %v7907_v10, %v4425_v47  ;;  %v4571_v26 = vadd.f32 -1.0, %v5274_v34  ;;  %v2760_v4 = vmin.f32 %v7959_v14, 0.0  ;;  %v7969_v9 = vadd.f32 %v7537_v32, %v3201_v28  ;;  %v2113_v46 = vpop.f32.mrf.mxu2 }
 0x271   : > { %3978 = vst [vmem:[%s6809_s12 + $0xd0] sm:$0xff] %v3946_v48  ;;  %v2376_v12 = vmul.f32 %v6649_v19, %v2342_v50  ;;  %v2275_v35 = vmul.f32 1.442695, %v2215_v60  ;;  %v7974_v36 = vadd.f32 %v7545_v17, %v3650_v38  ;;  %v2111_v22 = vadd.f32 %v2110_v52, %v8475_v30  ;;  %v8476_v17 = vld [vmem:[#allocation8_spill] sm:$0xff] }
 0x272   : > { %v3432_v10 = vsel %vm3272_vm10, %v7882_v42, %v4717_v59  ;;  %v2887_v56 = vsel %vm2727_vm13, %v7918_v49, %v4571_v26  ;;  %v2820_v32 = vmul.f32 1.442695, %v2760_v4  ;;  %v3306_v2 = vmin.f32 %v7969_v9, 0.0  ;;  %v3203_v49 = vpop.f32.mrf.mxu0  ;;  %v5321_v48 = vld [vmem:[%s8153_s7 + $0x3] ss:$0 sm:$0xff]  ;;  %v2658_v26 = vpop.f32.mrf.mxu3 }
 0x273   : > { %v3881_v15 = vsel %vm3721_vm11, %v7885_v63, %v4799_v7  ;;  %v2408_v25 = vadd.f32 %v2376_v12, %v8476_v17  ;;  %v2921_v11 = vmul.f32 %v6684_v44, %v2887_v56  ;;  %5279 = vpow2.f32 %v2275_v35  ;;  %v5322_v35 = vld [vmem:[%s8153_s7 + $0x4] ss:$0 sm:$0xff] }
 0x274   : > { %v5276_v13 = vpop.eup %5275  ;;  %v1769_v51 = vmin.f32 %v7751_v29, 0.0  ;;  %5281 = vpow2.f32 %v2820_v32  ;;  %v3367_v42 = vmul.f32 1.442695, %v3306_v2  ;;  %v3755_v16 = vmin.f32 %v7974_v36, 0.0 }
 0x275   : > { %v5278_v24 = vpop.eup %5277  ;;  %v3466_v39 = vmul.f32 %v6621_v55, %v3432_v10  ;;  %v2953_v1 = vadd.f32 %v2921_v11, %v2408_v25  ;;  %vm3273_vm14 = vcmp.gt.f32.partialorder %v7927_v45, 0.0  ;;  %v7994_v63 = vadd.f32 %v7569_v23, %v2111_v22 }
 0x276   : > { %v3915_v40 = vmul.f32 %v6624_v3, %v3881_v15  ;;  %vm3722_vm15 = vcmp.gt.f32.partialorder %v7931_v54, 0.0  ;;  %v3816_v31 = vmul.f32 1.442695, %v3755_v16  ;;  %v2656_v37 = vadd.f32 %v2655_v20, %v8475_v30  ;;  %v3654_v16 = vpop.f32.mrf.mxu1 }
 0x277   : > { %v3498_v21 = vadd.f32 %v3466_v39, %v2953_v1  ;;  %v4718_v8 = vadd.f32 -1.0, %v5276_v13  ;;  %vm2183_vm0 = vcmp.gt.f32.partialorder %v7956_v53, 0.0  ;;  %v2216_v33 = vmin.f32 %v7994_v63, 0.0 }
 0x278   : > { %v4800_v41 = vadd.f32 -1.0, %v5278_v24  ;;  %5283 = vpow2.f32 %v3367_v42  ;;  %v8002_v23 = vadd.f32 %v7672_v62, %v2656_v37  ;;  %v3204_v52 = vadd.f32 %v3203_v49, %v8477_v5 }
 0x279   : > { %v5280_v43 = vpop.eup %5279  ;;  %v3947_v27 = vadd.f32 %v3915_v40, %v3498_v21  ;;  %v2277_v59 = vmul.f32 1.442695, %v2216_v33  ;;  %v3653_v47 = vadd.f32 %v3652_v61, %v8477_v5  ;;  %v2114_v30 = vadd.f32 %v2113_v46, %v8477_v5  ;;  %v2115_v40 = vpop.f32.mrf.mxu2 }
 0x27a   : > { %v5282_v28 = vpop.eup %5281  ;;  %v4426_v38 = vadd.f32 -1.0, %v5280_v43  ;;  %5285 = vpow2.f32 %v3816_v31  ;;  %v2761_v34 = vmin.f32 %v8002_v23, 0.0  ;;  %v8011_v7 = vadd.f32 %v5321_v48, %v3204_v52  ;;  %v3205_v25 = vpop.f32.mrf.mxu0 }
 0x27b   : > { %3979 = vst [vmem:[%s6809_s12 + $0xd8] sm:$0xff] %v3947_v27  ;;  %v3433_v60 = vsel %vm3273_vm14, %v7927_v45, %v4718_v8  ;;  %vm2728_vm1 = vcmp.gt.f32.partialorder %v7959_v14, 0.0  ;;  %v4572_v50 = vadd.f32 -1.0, %v5282_v28  ;;  %5287 = vpow2.f32 %v2277_v59  ;;  %v5323_v45 = vld [vmem:[%s8153_s7 + $0x1] ss:$0 sm:$0xff] }
 0x27c   : > { %v2343_v4 = vsel %vm2183_vm0, %v7956_v53, %v4426_v38  ;;  %v2822_v12 = vmul.f32 1.442695, %v2761_v34  ;;  %v8024_v22 = vadd.f32 %v5322_v35, %v3653_v47  ;;  %v8029_v20 = vadd.f32 %v5323_v45, %v2114_v30  ;;  %v2660_v34 = vpop.f32.mrf.mxu3 }
 0x27d   : > { %5289 = vpow2.f32 %v6962_v57  ;;  %v3882_v10 = vsel %vm3722_vm15, %v7931_v54, %v4800_v41  ;;  %v2377_v53 = vmul.f32 %v6649_v19, %v2343_v4  ;;  %v2888_v56 = vsel %vm2728_vm1, %v7959_v14, %v4572_v50  ;;  %v8478_v57 = vld [vmem:[#allocation70_spill] sm:$0xff] }
 0x27e   : > { %v5284_v32 = vpop.eup %5283  ;;  %v1929_v2 = vmul.f32 %v8448_v18, %v7625_v58  ;;  %v1832_v15 = vmul.f32 1.442695, %v1769_v51  ;;  %5291 = vpow2.f32 %v2822_v12  ;;  %v3307_v17 = vmin.f32 %v8011_v7, 0.0 }
 0x27f   : > { %v3467_v11 = vmul.f32 %v6621_v55, %v3433_v60  ;;  %v2409_v13 = vadd.f32 %v2377_v53, %v8478_v57  ;;  %v2922_v42 = vmul.f32 %v6684_v44, %v2888_v56  ;;  %vm3274_vm2 = vcmp.gt.f32.partialorder %v7969_v9, 0.0 }
 0x280   : > { %v5286_v54 = vpop.eup %5285  ;;  %v3916_v14 = vmul.f32 %v6624_v3, %v3882_v10  ;;  %vm3723_vm3 = vcmp.gt.f32.partialorder %v7974_v36, 0.0  ;;  %vm2184_vm4 = vcmp.gt.f32.partialorder %v7994_v63, 0.0  ;;  %v3756_v58 = vmin.f32 %v8024_v22, 0.0 }
 0x281   : > { %v2217_v51 = vmin.f32 %v8029_v20, 0.0  ;;  %v5288_v49 = vpop.eup %5287  ;;  %v2954_v24 = vadd.f32 %v2922_v42, %v2409_v13  ;;  %vm2729_vm5 = vcmp.gt.f32.partialorder %v8002_v23, 0.0  ;;  %v2659_v39 = vadd.f32 %v2658_v26, %v8477_v5 }
 0x282   : > { %v3206_v1 = vadd.f32 %v3205_v25, %v8458_v0  ;;  %v4719_v31 = vadd.f32 -1.0, %v5284_v32  ;;  %v4427_v37 = vadd.f32 -1.0, %v5288_v49  ;;  %v3369_v61 = vmul.f32 1.442695, %v3307_v17 }
 0x283   : > { %v2279_v46 = vmul.f32 1.442695, %v2217_v51  ;;  %v5290_v21 = vpop.eup %5289  ;;  %v3499_v8 = vadd.f32 %v3467_v11, %v2954_v24  ;;  %v8053_v33 = vadd.f32 %v7672_v62, %v2659_v39  ;;  %v3655_v52 = vadd.f32 %v3654_v16, %v8458_v0 }
 0x284   : > { %v8055_v41 = vadd.f32 %v5321_v48, %v3206_v1  ;;  %v5292_v43 = vpop.eup %5291  ;;  %v2344_v5 = vsel %vm2184_vm4, %v7994_v63, %v4427_v37  ;;  %v3818_v27 = vmul.f32 1.442695, %v3756_v58  ;;  %v2116_v59 = vadd.f32 %v2115_v40, %v8458_v0 }
 0x285   : > { %5293 = vpow2.f32 %v2279_v46  ;;  %v3948_v47 = vadd.f32 %v3916_v14, %v3499_v8  ;;  %v4801_v30 = vadd.f32 -1.0, %v5286_v54  ;;  %v2378_v28 = vmul.f32 %v6649_v19, %v2344_v5 }
 0x286   : > { %v4573_v38 = vadd.f32 -1.0, %v5292_v43  ;;  %v3434_v48 = vsel %vm3274_vm2, %v7969_v9, %v4719_v31  ;;  %5295 = vpow2.f32 %v3369_v61  ;;  %v2762_v60 = vmin.f32 %v8053_v33, 0.0 }
 0x287   : > { %v8067_v50 = vadd.f32 %v5322_v35, %v3655_v52  ;;  %3980 = vst [vmem:[%s6809_s12 + $0xe0] sm:$0xff] %v3948_v47  ;;  %v2410_v63 = vadd.f32 %v2378_v28, %v1929_v2  ;;  %v3308_v4 = vmin.f32 %v8055_v41, 0.0  ;;  %v2154_v12 = vadd.f32 %v5323_v45, %v2116_v59 }
 0x288   : > { %v2889_v26 = vsel %vm2729_vm5, %v8002_v23, %v4573_v38  ;;  %5297 = vpow2.f32 %v3818_v27  ;;  %v2824_v53 = vmul.f32 1.442695, %v2762_v60  ;;  %v2661_v9 = vadd.f32 %v2660_v34, %v8458_v0 }
 0x289   : > { %v2923_v10 = vmul.f32 %v6684_v44, %v2889_v26  ;;  %v4347_v56 = vadd.f32 -1.0, %v5290_v21  ;;  %5299 = vpow2.f32 %v1832_v15  ;;  %v3883_v35 = vsel %vm3723_vm3, %v7974_v36, %v4801_v30 }
 0x28a   : > { %v3757_v32 = vmin.f32 %v8067_v50, 0.0  ;;  %v3468_v23 = vmul.f32 %v6621_v55, %v3434_v48  ;;  %5301 = vpow2.f32 %v2824_v53  ;;  %v2218_v45 = vmin.f32 %v2154_v12, 0.0 }
 0x28b   : > { %v5294_v2 = vpop.eup %5293  ;;  %v2955_v17 = vadd.f32 %v2923_v10, %v2410_v63  ;;  %vm1736_vm6 = vcmp.gt.f32.partialorder %v6668_v6, 0.0  ;;  %vm2185_vm7 = vcmp.gt.f32.partialorder %v8029_v20, 0.0  ;;  %v3371_v0 = vmul.f32 1.442695, %v3308_v4 }
 0x28c   : > { %v4428_v25 = vadd.f32 -1.0, %v5294_v2  ;;  %v5296_v11 = vpop.eup %5295  ;;  %v3917_v15 = vmul.f32 %v6624_v3, %v3883_v35  ;;  %v2281_v36 = vmul.f32 1.442695, %v2218_v45  ;;  %v2699_v13 = vadd.f32 %v7672_v62, %v2661_v9 }
 0x28d   : > { %v3500_v57 = vadd.f32 %v3468_v23, %v2955_v17  ;;  %v1896_v42 = vsel %vm1736_vm6, %v6668_v6, %v4347_v56  ;;  %v3820_v14 = vmul.f32 1.442695, %v3757_v32  ;;  %v4720_v24 = vadd.f32 -1.0, %v5296_v11 }
 0x28e   : > { %v2345_v54 = vsel %vm2185_vm7, %v8029_v20, %v4428_v25  ;;  %v5298_v58 = vpop.eup %5297  ;;  %5303 = vpow2.f32 %v2281_v36  ;;  %v2763_v39 = vmin.f32 %v2699_v13, 0.0  ;;  %v1930_v40 = vmul.f32 %v8448_v18, %v1896_v42 }
 0x28f   : > { %v3949_v51 = vadd.f32 %v3917_v15, %v3500_v57  ;;  %v2379_v16 = vmul.f32 %v6649_v19, %v2345_v54  ;;  %v5300_v49 = vpop.eup %5299  ;;  %5305 = vpow2.f32 %v3371_v0  ;;  %v4802_v31 = vadd.f32 -1.0, %v5298_v58 }
 0x290   : > { %v5302_v1 = vpop.eup %5301  ;;  %5307 = vpow2.f32 %v3820_v14  ;;  %v2826_v6 = vmul.f32 1.442695, %v2763_v39  ;;  %v4348_v37 = vadd.f32 -1.0, %v5300_v49  ;;  %vm3275_vm8 = vcmp.gt.f32.partialorder %v8011_v7, 0.0 }
 0x291   : > { %3981 = vst [vmem:[%s6809_s12 + $0xe8] sm:$0xff] %v3949_v51  ;;  %v4574_v62 = vadd.f32 -1.0, %v5302_v1  ;;  %v2411_v20 = vadd.f32 %v2379_v16, %v1930_v40  ;;  %vm2730_vm9 = vcmp.gt.f32.partialorder %v8053_v33, 0.0  ;;  %v3435_v61 = vsel %vm3275_vm8, %v8011_v7, %v4720_v24 }
 0x292   : > { %5309 = vpow2.f32 %v2826_v6  ;;  %vm3724_vm10 = vcmp.gt.f32.partialorder %v8024_v22, 0.0  ;;  %vm1737_vm11 = vcmp.gt.f32.partialorder %v7751_v29, 0.0  ;;  %v3469_v59 = vmul.f32 %v6621_v55, %v3435_v61 }
 0x293   : > { %v2890_v46 = vsel %vm2730_vm9, %v8053_v33, %v4574_v62  ;;  %v3884_v43 = vsel %vm3724_vm10, %v8024_v22, %v4802_v31  ;;  %v1897_v27 = vsel %vm1737_vm11, %v7751_v29, %v4348_v37  ;;  %vm2186_vm12 = vcmp.gt.f32.partialorder %v2154_v12, 0.0 }
 0x294   : > { %v5304_v21 = vpop.eup %5303  ;;  %v2924_v8 = vmul.f32 %v6684_v44, %v2890_v46  ;;  %v3918_v30 = vmul.f32 %v6624_v3, %v3884_v43  ;;  %v1931_v60 = vmul.f32 %v8448_v18, %v1897_v27  ;;  %vm3276_vm13 = vcmp.gt.f32.partialorder %v8055_v41, 0.0 }
 0x295   : > { %v5306_v52 = vpop.eup %5305  ;;  %v4429_v5 = vadd.f32 -1.0, %v5304_v21  ;;  %vm2731_vm14 = vcmp.gt.f32.partialorder %v2699_v13, 0.0  ;;  %vm3725_vm15 = vcmp.gt.f32.partialorder %v8067_v50, 0.0 }
 0x296   : > { %v2956_v7 = vadd.f32 %v2924_v8, %v2411_v20  ;;  %v5308_v33 = vpop.eup %5307  ;;  %v4721_v38 = vadd.f32 -1.0, %v5306_v52 }
 0x297   : > { %v2346_v47 = vsel %vm2186_vm12, %v2154_v12, %v4429_v5  ;;  %v4803_v29 = vadd.f32 -1.0, %v5308_v33 }
 0x298   : > { %v3501_v28 = vadd.f32 %v3469_v59, %v2956_v7  ;;  %v2380_v34 = vmul.f32 %v6649_v19, %v2346_v47  ;;  %v5310_v48 = vpop.eup %5309  ;;  %v3436_v4 = vsel %vm3276_vm13, %v8055_v41, %v4721_v38 }
 0x299   : > { %v4575_v63 = vadd.f32 -1.0, %v5310_v48  ;;  %v3885_v18 = vsel %vm3725_vm15, %v8067_v50, %v4803_v29  ;;  %v3470_v10 = vmul.f32 %v6621_v55, %v3436_v4 }
 0x29a   : > { %v3950_v22 = vadd.f32 %v3918_v30, %v3501_v28  ;;  %v2412_v26 = vadd.f32 %v2380_v34, %v1931_v60  ;;  %v3919_v41 = vmul.f32 %v6624_v3, %v3885_v18 }
 0x29b   : > { %v2891_v12 = vsel %vm2731_vm14, %v2699_v13, %v4575_v63 }
 0x29c   : > { %3982 = vst [vmem:[%s6809_s12 + $0xf0] sm:$0xff] %v3950_v22  ;;  %v2925_v19 = vmul.f32 %v6684_v44, %v2891_v12 }
 0x29e   : > { %v2957_v53 = vadd.f32 %v2925_v19, %v2412_v26 }
 0x2a0   : > { %v3502_v9 = vadd.f32 %v3470_v10, %v2957_v53 }
 0x2a2   : > { %v3951_v56 = vadd.f32 %v3919_v41, %v3502_v9 }
 0x2a4   : > { %3983 = vst [vmem:[%s6809_s12 + $0xf8] sm:$0xff] %v3951_v56 }
 0x2a5   : > { %5363 = shalt.err (!%p5360_p3)
}
 0x2a6   : > { %s5405_s10 = smov 128   ;;  %s5406_s12 = smov 8  }
 0x2a7   : > { %4939 = dma.vmem_to_hbm [thread:$0]  (%p5498_p5), %s3998_s0, 4096, %s4000_s25, %s3985_s19, %s5405_s10, %s5405_s10, %s5406_s12  }
 0x2a8 PF: > { %p4945_p4 = scmp.ge.s32.totalorder %s5400_s16, 2  ;;  %s4014_s29 = sand.u32 1, %s5388_s13  }
 0x2a9   : > { %s4015_s30 = scalar_lea.sflag [#allocation5], %s4014_s29 }
 0x2aa   : > { %p4942_p7 = pnand %p4945_p4, %p5502_p6 }
 0x2ac   : > { %p4943_p8 = pneg %p4942_p7 }
 0x2ae   : > { %5383 = dma.done.wait (%p4943_p8), %s4015_s30, 4096  }
 0x2af   : > { %5385 = vsyncadd (%p4943_p8), %s4015_s30, 4294963200  ;;  %p27_p9 = scmp.ge.s32.totalorder %s5485_s18, 4   ;;  %s8479_s13 = smov %s5392_s14 }
 0x2b0   : > { %s8480_s14 = smov %s5396_s15  ;;  %s8481_s15 = smov %s5496_s21 }
 0x2b1   : > { %s8482_s16 = smov %s5485_s18  ;;  %29 = sbr.rel (!%p27_p9) target bundleno = 9 (0x9), region = 107 }
 0x2b6   :  { %4021 = vsyncpa [#allocation5], 1 }
 0x2b7   :  { %4023 = vsyncpa [#allocation5 + $0x1], 1 }

</bundles_post_ra>
